<compile_context>
chip_gen: v5e
topology: v5e:2x2
jax: 0.10.0
libtpu: 0.0.40
codegen_flags: <defaults>
</compile_context>

<pallas_src>
import math
import numpy as np
import jax
import jax.numpy as jnp
from jax import lax
from jax.experimental import pallas as pl
from jax.experimental.pallas import tpu as pltpu

EPS = 1e-5
NTAP = 16  # 9 real 3x3 taps, zero-padded to 16 lanes


# ---------------------------------------------------------------------------
# Kernel 1: fused [1x1 conv -> (BN folded) -> ReLU] x 2 -> 256->16 tap matmul
#   x2d:(M,Cin)bf16 @ w1:(Cin,256)bf16 -> relu -> @ w2:(256,256)bf16 -> relu
#                                       -> @ w3:(256,16)bf16 -> taps (M,16) f32
# ---------------------------------------------------------------------------
def _fused_pointwise_taps_kernel(x_ref, w1_ref, w2_ref, w3_ref, o_ref):
    y = jnp.dot(x_ref[...], w1_ref[...], preferred_element_type=jnp.float32)
    y = jnp.maximum(y, 0.0).astype(jnp.bfloat16)
    y = jnp.dot(y, w2_ref[...], preferred_element_type=jnp.float32)
    y = jnp.maximum(y, 0.0).astype(jnp.bfloat16)
    o_ref[...] = jnp.dot(y, w3_ref[...], preferred_element_type=jnp.float32)


def fused_pointwise_taps(x2d, w1, w2, w3, tm=512):
    m, cin = x2d.shape
    cmid = w1.shape[1]
    ntap = w3.shape[1]
    x2d = x2d.astype(jnp.bfloat16)
    m_pad = pl.cdiv(m, tm) * tm
    if m_pad != m:
        x2d = jnp.pad(x2d, ((0, m_pad - m), (0, 0)))
    out = pl.pallas_call(
        _fused_pointwise_taps_kernel,
        out_shape=jax.ShapeDtypeStruct((m_pad, ntap), jnp.float32),
        grid_spec=pltpu.PrefetchScalarGridSpec(
            num_scalar_prefetch=0,
            grid=(m_pad // tm,),
            in_specs=[
                pl.BlockSpec((tm, cin), lambda i: (i, 0)),
                pl.BlockSpec((cin, cmid), lambda i: (0, 0)),
                pl.BlockSpec((cmid, cmid), lambda i: (0, 0)),
                pl.BlockSpec((cmid, ntap), lambda i: (0, 0)),
            ],
            out_specs=pl.BlockSpec((tm, ntap), lambda i: (i, 0)),
        ),
        compiler_params=pltpu.CompilerParams(
            dimension_semantics=("parallel",),
            vmem_limit_bytes=32 * 1024 * 1024,
        ),
    )(x2d, w1, w2, w3)
    return out[:m] if m_pad != m else out


# ---------------------------------------------------------------------------
# Kernel 2: per-batch [3x3-conv shift-add over tap planes -> bilinear upsample
#           (two matmuls, final BN folded into awt) -> sigmoid]
#   taps_pad:(N,16,H+2,W+2) f32 (zero halo), ah:(Ho,H), awt:(W,Wo)
# ---------------------------------------------------------------------------
def _conv3x3_upsample_sigmoid_kernel(t_ref, ah_ref, awt_ref, o_ref):
    hp, wp = t_ref.shape[2], t_ref.shape[3]
    h, w = hp - 2, wp - 2
    y = jnp.zeros((h, w), jnp.float32)
    for t in range(9):                        # static, unrolled 9-way shift-add
        dh, dw = t // 3, t % 3
        y = y + t_ref[0, t, dh:dh + h, dw:dw + w]
    z = jnp.dot(ah_ref[...], y, preferred_element_type=jnp.float32)   # (Ho, W)
    z = jnp.dot(z, awt_ref[...], preferred_element_type=jnp.float32)  # (Ho, Wo)
    o_ref[0] = jax.nn.sigmoid(z)              # final BN(1) scale folded into awt


def conv3x3_upsample_sigmoid(taps_pad, ah, awt):
    n, ntap, hp, wp = taps_pad.shape
    ho, h = ah.shape
    w, wo = awt.shape
    return pl.pallas_call(
        _conv3x3_upsample_sigmoid_kernel,
        out_shape=jax.ShapeDtypeStruct((n, ho, wo), jnp.float32),
        grid_spec=pltpu.PrefetchScalarGridSpec(
            num_scalar_prefetch=0,
            grid=(n,),
            in_specs=[
                pl.BlockSpec((1, ntap, hp, wp), lambda b: (b, 0, 0, 0)),
                pl.BlockSpec((ho, h), lambda b: (0, 0)),
                pl.BlockSpec((w, wo), lambda b: (0, 0)),
            ],
            out_specs=pl.BlockSpec((1, ho, wo), lambda b: (b, 0, 0)),
        ),
        compiler_params=pltpu.CompilerParams(
            dimension_semantics=("parallel",),
            vmem_limit_bytes=32 * 1024 * 1024,
        ),
    )(taps_pad, ah, awt)


# ---------------------------------------------------------------------------
# Parameter setup (deterministic, mirrors segNet.__init__ init scheme)
# ---------------------------------------------------------------------------
def bilinear_matrix(out_size, in_size):
    # align_corners=True interpolation matrix (out_size, in_size)
    A = np.zeros((out_size, in_size), np.float32)
    if out_size == 1 or in_size == 1:
        A[:, 0] = 1.0          # PyTorch align_corners degenerate case: copy idx 0
        return A
    idx = np.arange(out_size)
    src = idx * (in_size - 1) / (out_size - 1)
    lo = np.minimum(np.floor(src).astype(np.int64), in_size - 2)
    hi = lo + 1
    frac = (src - lo).astype(np.float32)
    A[idx, lo] += (1.0 - frac)
    A[idx, hi] += frac
    return A


def init_params(key, cin, in_hw, output_shape):
    k1, k2, k3 = jax.random.split(key, 3)
    bn_scale = 1.0 / math.sqrt(1.0 + EPS)   # eval-mode BN with default init

    # Conv2d(cin,256,1,bias=False): n = 1*1*256
    w_lat = jax.random.normal(k1, (cin, 256), jnp.float32) * math.sqrt(2.0 / 256)
    # Conv2d(256,256,1,bias=False): n = 1*1*256
    w_p1 = jax.random.normal(k2, (256, 256), jnp.float32) * math.sqrt(2.0 / 256)
    # Conv2d(256,1,3,padding=1,bias=False): n = 3*3*1 = 9; tap t = dh*3 + dw
    w_p3 = jax.random.normal(k3, (256, 9), jnp.float32) * math.sqrt(2.0 / 9)

    # Fold BN scales into weights; bf16 matmul operands.
    w1 = (w_lat * bn_scale).astype(jnp.bfloat16)
    w2 = (w_p1 * bn_scale).astype(jnp.bfloat16)
    w3 = jnp.zeros((256, NTAP), jnp.float32).at[:, :9].set(w_p3).astype(jnp.bfloat16)

    h, w = in_hw
    ho, wo = output_shape
    ah = jnp.asarray(bilinear_matrix(ho, h))                    # (Ho, H)
    awt = jnp.asarray(bilinear_matrix(wo, w)).T * bn_scale      # (W, Wo), BN(1) folded
    return dict(w1=w1, w2=w2, w3=w3, ah=ah, awt=awt)


# ---------------------------------------------------------------------------
# Forward pass (NCHW in / NCHW out, like the PyTorch module)
# ---------------------------------------------------------------------------
def segnet_forward(x_nchw, p):
    n, cin, h, w = x_nchw.shape
    x = jnp.transpose(x_nchw, (0, 2, 3, 1)).reshape(n * h * w, cin)
    taps = fused_pointwise_taps(x, p['w1'], p['w2'], p['w3'])     # (N*H*W, 16)
    # XLA-side layout plumbing only: tap map is 16x smaller than the 256-ch map.
    taps = taps.reshape(n, h, w, NTAP)
    taps = jnp.transpose(taps, (0, 3, 1, 2))                      # (N, 16, H, W)
    taps = jnp.pad(taps, ((0, 0), (0, 0), (1, 1), (1, 1)))        # zero halo
    out = conv3x3_upsample_sigmoid(taps, p['ah'], p['awt'])       # (N, Ho, Wo)
    return out[:, None, :, :]                                     # (N, 1, Ho, Wo)


# Pure-JAX reference (structural sanity check for the Pallas kernels)
def reference_forward(x_nchw, p):
    n, cin, h, w = x_nchw.shape
    y = jnp.transpose(x_nchw, (0, 2, 3, 1)).astype(jnp.bfloat16)
    y = jnp.einsum('nhwc,cd->nhwd', y, p['w1'], preferred_element_type=jnp.float32)
    y = jnp.maximum(y, 0.0).astype(jnp.bfloat16)
    y = jnp.einsum('nhwc,cd->nhwd', y, p['w2'], preferred_element_type=jnp.float32)
    y = jnp.maximum(y, 0.0).astype(jnp.bfloat16)
    taps = jnp.einsum('nhwc,ct->nhwt', y, p['w3'], preferred_element_type=jnp.float32)
    tp = jnp.pad(taps, ((0, 0), (1, 1), (1, 1), (0, 0)))
    conv = sum(tp[:, t // 3:t // 3 + h, t % 3:t % 3 + w, t] for t in range(9))
    z = jnp.einsum('oh,nhw->now', p['ah'], conv, precision=lax.Precision.HIGHEST)
    z = jnp.einsum('now,wq->noq', z, p['awt'], precision=lax.Precision.HIGHEST)
    return jax.nn.sigmoid(z)[:, None, :, :]


if __name__ == "__main__":
    key = jax.random.PRNGKey(0)
    kx, kp = jax.random.split(key)

    N, CIN, H, W = 2, 4, 16, 16          # channel_settings = 4
    OUT_SHAPE = (32, 32)                 # output_shape

    x = jax.random.normal(kx, (N, CIN, H, W), jnp.float32)
    params = init_params(kp, CIN, (H, W), OUT_SHAPE)

    out = jax.jit(segnet_forward)(x, params)
    out = jax.block_until_ready(out)
    assert out.shape == (N, 1, OUT_SHAPE[0], OUT_SHAPE[1])

    ref = reference_forward(x, params)
    np.testing.assert_allclose(np.asarray(out), np.asarray(ref), atol=1e-2, rtol=1e-2)

    print("KERNEL_OK")
</pallas_src>

<mosaic_0001>
module attributes {stable_mosaic.version = 11 : i64} {
  func.func @_fused_pointwise_taps_kernel(%arg0: i32, %arg1: memref<512x4xbf16, #tpu.memory_space<vmem>>, %arg2: memref<4x256xbf16, #tpu.memory_space<vmem>>, %arg3: memref<256x256xbf16, #tpu.memory_space<vmem>>, %arg4: memref<256x16xbf16, #tpu.memory_space<vmem>>, %arg5: memref<512x16xf32, #tpu.memory_space<vmem>>) attributes {dimension_semantics = [#tpu.dimension_semantics<parallel>], iteration_bounds = array<i64: 1>, scalar_prefetch = 0 : i64, scratch_operands = 0 : i64, tpu.core_type = #tpu.core_type<tc>, window_params = [{transform_indices = @transform_0, window_bounds = array<i64: 512, 4>}, {pipeline_mode = #tpu.pipeline_mode<synchronous>, transform_indices = @transform_1, window_bounds = array<i64: 4, 256>}, {pipeline_mode = #tpu.pipeline_mode<synchronous>, transform_indices = @transform_2, window_bounds = array<i64: 256, 256>}, {pipeline_mode = #tpu.pipeline_mode<synchronous>, transform_indices = @transform_3, window_bounds = array<i64: 256, 16>}, {transform_indices = @transform_4, window_bounds = array<i64: 512, 16>}]} {
    %c0 = arith.constant 0 : index
    %c0_0 = arith.constant 0 : index
    %0 = vector.load %arg1[%c0, %c0_0] : memref<512x4xbf16, #tpu.memory_space<vmem>>, vector<512x4xbf16>
    %c0_1 = arith.constant 0 : index
    %c0_2 = arith.constant 0 : index
    %1 = vector.load %arg2[%c0_1, %c0_2] : memref<4x256xbf16, #tpu.memory_space<vmem>>, vector<4x256xbf16>
    %cst = arith.constant dense<0.000000e+00> : vector<512x256xf32>
    %2 = tpu.matmul %0, %1, %cst {dimension_numbers = #tpu.dot_dimension_numbers<[1], [0], [0], [1], [0, 0, 1, 1], [], []>} : vector<512x4xbf16>, vector<4x256xbf16>, vector<512x256xf32> -> vector<512x256xf32>
    %cst_3 = arith.constant 0.000000e+00 : f32
    %3 = vector.broadcast %cst_3 : f32 to vector<512x256xf32>
    %4 = arith.maximumf %2, %3 : vector<512x256xf32>
    %5 = arith.truncf %4 : vector<512x256xf32> to vector<512x256xbf16>
    %c0_4 = arith.constant 0 : index
    %c0_5 = arith.constant 0 : index
    %6 = vector.load %arg3[%c0_4, %c0_5] : memref<256x256xbf16, #tpu.memory_space<vmem>>, vector<256x256xbf16>
    %cst_6 = arith.constant dense<0.000000e+00> : vector<512x256xf32>
    %7 = tpu.matmul %5, %6, %cst_6 {dimension_numbers = #tpu.dot_dimension_numbers<[1], [0], [0], [1], [0, 0, 1, 1], [], []>} : vector<512x256xbf16>, vector<256x256xbf16>, vector<512x256xf32> -> vector<512x256xf32>
    %cst_7 = arith.constant 0.000000e+00 : f32
    %8 = vector.broadcast %cst_7 : f32 to vector<512x256xf32>
    %9 = arith.maximumf %7, %8 : vector<512x256xf32>
    %10 = arith.truncf %9 : vector<512x256xf32> to vector<512x256xbf16>
    %c0_8 = arith.constant 0 : index
    %c0_9 = arith.constant 0 : index
    %11 = vector.load %arg4[%c0_8, %c0_9] : memref<256x16xbf16, #tpu.memory_space<vmem>>, vector<256x16xbf16>
    %cst_10 = arith.constant dense<0.000000e+00> : vector<512x16xf32>
    %12 = tpu.matmul %10, %11, %cst_10 {dimension_numbers = #tpu.dot_dimension_numbers<[1], [0], [0], [1], [0, 0, 1, 1], [], []>} : vector<512x256xbf16>, vector<256x16xbf16>, vector<512x16xf32> -> vector<512x16xf32>
    %c0_11 = arith.constant 0 : index
    %c0_12 = arith.constant 0 : index
    %13 = vector.load %arg5[%c0_11, %c0_12] : memref<512x16xf32, #tpu.memory_space<vmem>>, vector<512x16xf32>
    tpu.vector_store %arg5[%c0_11, %c0_12], %12 {strides = array<i32>} : memref<512x16xf32, #tpu.memory_space<vmem>>, vector<512x16xf32>,
    return
  }
  func.func @transform_0(%arg0: i32) -> (i32, i32) {
    %c0_i32 = arith.constant 0 : i32
    %c0_i32_0 = arith.constant 0 : i32
    return %arg0, %c0_i32 : i32, i32
  }
  func.func @transform_1(%arg0: i32) -> (i32, i32) {
    %c0_i32 = arith.constant 0 : i32
    %c0_i32_0 = arith.constant 0 : i32
    %c0_i32_1 = arith.constant 0 : i32
    return %c0_i32, %c0_i32_0 : i32, i32
  }
  func.func @transform_2(%arg0: i32) -> (i32, i32) {
    %c0_i32 = arith.constant 0 : i32
    %c0_i32_0 = arith.constant 0 : i32
    %c0_i32_1 = arith.constant 0 : i32
    return %c0_i32, %c0_i32_0 : i32, i32
  }
  func.func @transform_3(%arg0: i32) -> (i32, i32) {
    %c0_i32 = arith.constant 0 : i32
    %c0_i32_0 = arith.constant 0 : i32
    %c0_i32_1 = arith.constant 0 : i32
    return %c0_i32, %c0_i32_0 : i32, i32
  }
  func.func @transform_4(%arg0: i32) -> (i32, i32) {
    %c0_i32 = arith.constant 0 : i32
    %c0_i32_0 = arith.constant 0 : i32
    return %arg0, %c0_i32 : i32, i32
  }
}

module attributes {stable_mosaic.version = 11 : i64} {
  func.func @_conv3x3_upsample_sigmoid_kernel(%arg0: i32, %arg1: memref<1x16x18x18xf32, #tpu.memory_space<vmem>>, %arg2: memref<32x16xf32, #tpu.memory_space<vmem>>, %arg3: memref<16x32xf32, #tpu.memory_space<vmem>>, %arg4: memref<1x32x32xf32, #tpu.memory_space<vmem>>) attributes {dimension_semantics = [#tpu.dimension_semantics<parallel>], iteration_bounds = array<i64: 2>, scalar_prefetch = 0 : i64, scratch_operands = 0 : i64, tpu.core_type = #tpu.core_type<tc>, window_params = [{transform_indices = @transform_0, window_bounds = array<i64: 1, 16, 18, 18>}, {pipeline_mode = #tpu.pipeline_mode<synchronous>, transform_indices = @transform_1, window_bounds = array<i64: 32, 16>}, {pipeline_mode = #tpu.pipeline_mode<synchronous>, transform_indices = @transform_2, window_bounds = array<i64: 16, 32>}, {transform_indices = @transform_3, window_bounds = array<i64: 1, 32, 32>}]} {
    %cst = arith.constant 0.000000e+00 : f32
    %0 = vector.broadcast %cst : f32 to vector<16x16xf32>
    %c0 = arith.constant 0 : index
    %c0_0 = arith.constant 0 : index
    %c0_1 = arith.constant 0 : index
    %c0_2 = arith.constant 0 : index
    %1 = vector.load %arg1[%c0, %c0_0, %c0_1, %c0_2] : memref<1x16x18x18xf32, #tpu.memory_space<vmem>>, vector<1x1x16x16xf32>
    %2 = vector.shape_cast %1 : vector<1x1x16x16xf32> to vector<16x16xf32>
    %3 = arith.addf %0, %2 : vector<16x16xf32>
    %c0_3 = arith.constant 0 : index
    %c1 = arith.constant 1 : index
    %c0_4 = arith.constant 0 : index
    %c1_5 = arith.constant 1 : index
    %4 = vector.load %arg1[%c0_3, %c1, %c0_4, %c1_5] : memref<1x16x18x18xf32, #tpu.memory_space<vmem>>, vector<1x1x16x16xf32>
    %5 = vector.shape_cast %4 : vector<1x1x16x16xf32> to vector<16x16xf32>
    %6 = arith.addf %3, %5 : vector<16x16xf32>
    %c0_6 = arith.constant 0 : index
    %c2 = arith.constant 2 : index
    %c0_7 = arith.constant 0 : index
    %c2_8 = arith.constant 2 : index
    %7 = vector.load %arg1[%c0_6, %c2, %c0_7, %c2_8] : memref<1x16x18x18xf32, #tpu.memory_space<vmem>>, vector<1x1x16x16xf32>
    %8 = vector.shape_cast %7 : vector<1x1x16x16xf32> to vector<16x16xf32>
    %9 = arith.addf %6, %8 : vector<16x16xf32>
    %c0_9 = arith.constant 0 : index
    %c3 = arith.constant 3 : index
    %c1_10 = arith.constant 1 : index
    %c0_11 = arith.constant 0 : index
    %10 = vector.load %arg1[%c0_9, %c3, %c1_10, %c0_11] : memref<1x16x18x18xf32, #tpu.memory_space<vmem>>, vector<1x1x16x16xf32>
    %11 = vector.shape_cast %10 : vector<1x1x16x16xf32> to vector<16x16xf32>
    %12 = arith.addf %9, %11 : vector<16x16xf32>
    %c0_12 = arith.constant 0 : index
    %c4 = arith.constant 4 : index
    %c1_13 = arith.constant 1 : index
    %c1_14 = arith.constant 1 : index
    %13 = vector.load %arg1[%c0_12, %c4, %c1_13, %c1_14] : memref<1x16x18x18xf32, #tpu.memory_space<vmem>>, vector<1x1x16x16xf32>
    %14 = vector.shape_cast %13 : vector<1x1x16x16xf32> to vector<16x16xf32>
    %15 = arith.addf %12, %14 : vector<16x16xf32>
    %c0_15 = arith.constant 0 : index
    %c5 = arith.constant 5 : index
    %c1_16 = arith.constant 1 : index
    %c2_17 = arith.constant 2 : index
    %16 = vector.load %arg1[%c0_15, %c5, %c1_16, %c2_17] : memref<1x16x18x18xf32, #tpu.memory_space<vmem>>, vector<1x1x16x16xf32>
    %17 = vector.shape_cast %16 : vector<1x1x16x16xf32> to vector<16x16xf32>
    %18 = arith.addf %15, %17 : vector<16x16xf32>
    %c0_18 = arith.constant 0 : index
    %c6 = arith.constant 6 : index
    %c2_19 = arith.constant 2 : index
    %c0_20 = arith.constant 0 : index
    %19 = vector.load %arg1[%c0_18, %c6, %c2_19, %c0_20] : memref<1x16x18x18xf32, #tpu.memory_space<vmem>>, vector<1x1x16x16xf32>
    %20 = vector.shape_cast %19 : vector<1x1x16x16xf32> to vector<16x16xf32>
    %21 = arith.addf %18, %20 : vector<16x16xf32>
    %c0_21 = arith.constant 0 : index
    %c7 = arith.constant 7 : index
    %c2_22 = arith.constant 2 : index
    %c1_23 = arith.constant 1 : index
    %22 = vector.load %arg1[%c0_21, %c7, %c2_22, %c1_23] : memref<1x16x18x18xf32, #tpu.memory_space<vmem>>, vector<1x1x16x16xf32>
    %23 = vector.shape_cast %22 : vector<1x1x16x16xf32> to vector<16x16xf32>
    %24 = arith.addf %21, %23 : vector<16x16xf32>
    %c0_24 = arith.constant 0 : index
    %c8 = arith.constant 8 : index
    %c2_25 = arith.constant 2 : index
    %c2_26 = arith.constant 2 : index
    %25 = vector.load %arg1[%c0_24, %c8, %c2_25, %c2_26] : memref<1x16x18x18xf32, #tpu.memory_space<vmem>>, vector<1x1x16x16xf32>
    %26 = vector.shape_cast %25 : vector<1x1x16x16xf32> to vector<16x16xf32>
    %27 = arith.addf %24, %26 : vector<16x16xf32>
    %c0_27 = arith.constant 0 : index
    %c0_28 = arith.constant 0 : index
    %28 = vector.load %arg2[%c0_27, %c0_28] : memref<32x16xf32, #tpu.memory_space<vmem>>, vector<32x16xf32>
    %cst_29 = arith.constant dense<0.000000e+00> : vector<32x16xf32>
    %29 = tpu.matmul %28, %27, %cst_29 {dimension_numbers = #tpu.dot_dimension_numbers<[1], [0], [0], [1], [0, 0, 1, 1], [], []>} : vector<32x16xf32>, vector<16x16xf32>, vector<32x16xf32> -> vector<32x16xf32>
    %c0_30 = arith.constant 0 : index
    %c0_31 = arith.constant 0 : index
    %30 = vector.load %arg3[%c0_30, %c0_31] : memref<16x32xf32, #tpu.memory_space<vmem>>, vector<16x32xf32>
    %cst_32 = arith.constant dense<0.000000e+00> : vector<32x32xf32>
    %31 = tpu.matmul %29, %30, %cst_32 {dimension_numbers = #tpu.dot_dimension_numbers<[1], [0], [0], [1], [0, 0, 1, 1], [], []>} : vector<32x16xf32>, vector<16x32xf32>, vector<32x32xf32> -> vector<32x32xf32>
    %32 = arith.negf %31 : vector<32x32xf32>
    %33 = math.exp %32 : vector<32x32xf32>
    %cst_33 = arith.constant 1.000000e+00 : f32
    %34 = vector.broadcast %cst_33 : f32 to vector<32x32xf32>
    %35 = arith.addf %34, %33 : vector<32x32xf32>
    %36 = arith.divf %34, %35 : vector<32x32xf32>
    %c0_34 = arith.constant 0 : index
    %c0_35 = arith.constant 0 : index
    %c0_36 = arith.constant 0 : index
    %37 = vector.load %arg4[%c0_34, %c0_35, %c0_36] : memref<1x32x32xf32, #tpu.memory_space<vmem>>, vector<1x32x32xf32>
    %38 = vector.shape_cast %37 : vector<1x32x32xf32> to vector<32x32xf32>
    %39 = vector.shape_cast %36 : vector<32x32xf32> to vector<1x32x32xf32>
    tpu.vector_store %arg4[%c0_34, %c0_35, %c0_36], %39 {strides = array<i32>} : memref<1x32x32xf32, #tpu.memory_space<vmem>>, vector<1x32x32xf32>,
    return
  }
  func.func @transform_0(%arg0: i32) -> (i32, i32, i32, i32) {
    %c0_i32 = arith.constant 0 : i32
    %c0_i32_0 = arith.constant 0 : i32
    %c0_i32_1 = arith.constant 0 : i32
    %c0_i32_2 = arith.constant 0 : i32
    return %arg0, %c0_i32, %c0_i32_0, %c0_i32_1 : i32, i32, i32, i32
  }
  func.func @transform_1(%arg0: i32) -> (i32, i32) {
    %c0_i32 = arith.constant 0 : i32
    %c0_i32_0 = arith.constant 0 : i32
    %c0_i32_1 = arith.constant 0 : i32
    return %c0_i32, %c0_i32_0 : i32, i32
  }
  func.func @transform_2(%arg0: i32) -> (i32, i32) {
    %c0_i32 = arith.constant 0 : i32
    %c0_i32_0 = arith.constant 0 : i32
    %c0_i32_1 = arith.constant 0 : i32
    return %c0_i32, %c0_i32_0 : i32, i32
  }
  func.func @transform_3(%arg0: i32) -> (i32, i32, i32) {
    %c0_i32 = arith.constant 0 : i32
    %c0_i32_0 = arith.constant 0 : i32
    %c0_i32_1 = arith.constant 0 : i32
    return %arg0, %c0_i32, %c0_i32_0 : i32, i32, i32
  }
}

</mosaic_0001>

<bundles_post_ra>
// kernel: segnet_forward.3
= control target key start
LH: loop header
LB: loop body
LE: loop exit
PB: predicated region body
PF: predicated region fallthrough
CT: control target
= control target key end

     0   :  { %8 = vsyncpa [#allocation3], 0  ;;  %s847_s0 = inlined_call_operand.vmem [shape: f32[2,16,18,18], index: 0, kind: input, shape index: {}]   ;;  %s848_s1 = inlined_call_operand.vmem [shape: f32[32,16], index: 1, kind: input, shape index: {}]   ;;  %s849_s2 = inlined_call_operand.vmem [shape: f32[16,32], index: 2, kind: input, shape index: {}]   ;;  %s850_s3 = inlined_call_operand.hbm [shape: f32[2,32,32], index: 3, kind: output, shape index: {}]  }
   0x1   :  { %10 = vsyncpa [#allocation3 + $0x1], 0  ;;  %s701_s12 = smov 0   ;;  %s703_s13 = smov 0  }
   0x2   :  { %s705_s14 = smov 0   ;;  %s707_s15 = smov 0  }
   0x3 LB: > { %s722_s16 = sadd.s32 4294967295, %s675_s15   ;;  %s509_s17 = sadd.s32 4294967294, %s675_s15   ;;  %s675_s15 = sphi %s707_s15, %s856_s15   ;;  %s671_s14 = sphi %s705_s14, %s855_s14   ;;  %s667_s13 = sphi %s703_s13, %s854_s13   ;;  %s663_s12 = sphi %s701_s12, %s853_s12  }
   0x4   : > { %s726_s18 = sadd.s32 1, %s675_s15   ;;  %s91_s19 = sadd.s32 1, %s671_s14 }
   0x5   : > { %s88_s20 = ssub.s32 %s675_s15, %s726_s18  ;;  %p101_p0 = scmp.ne.s32.totalorder %s671_s14, %s667_s13 }
   0x6   : > { %p89_p1 = scmp.eq.s32.totalorder %s88_s20, 0  ;;  %p102_p2 = scmp.eq.s32.totalorder %s722_s16, 1 }
   0x7   : > { %p107_p3 = scmp.ne.s32.totalorder %s667_s13, %s663_s12  ;;  %p108_p4 = scmp.eq.s32.totalorder %s509_s17, 1 }
   0x8   : > { %s737_s21 = scalar_select %p89_p1, %s671_s14, %s91_s19  }
   0x9   : > { %p739_p5 = por %p102_p2, %p101_p0  ;;  %p743_p6 = por %p108_p4, %p107_p3 }
   0xa   : > { %p512_p7 = scmp.ge.s32.totalorder %s675_s15, 1  ;;  %p140_p8 = scmp.lt.s32.totalorder %s675_s15, 3 }
   0xc   : > { %p141_p9 = pnand %p512_p7, %p140_p8 }
   0xd   : > { %p164_p10 = scmp.lt.s32.totalorder (!%p141_p9), %s722_s16, 1  ;;  %s677_s29 = smov (!%p141_p9), 126  }
   0xe   : > { %144 = sbr.rel (%p141_p9) target bundleno = 473 (0x1d9), region = 32  ;;  %s678_s30 = smov (!%p141_p9), 127  }
   0xf   : > { %s633_s11 = scalar_lea.hbm (!%p141_p9), %s850_s3, 64 }
  0x13   : > { %s165_s24 = scalar_select %p164_p10, %s722_s16, 1  ;;  %v308_v19 = vld [vmem:[%s849_s2 + $0x8] sm:$0xff]  ;;  %v261_v47 = vld [vmem:[%s848_s1] sm:$0xff]  ;;  %vm265_vm0 = vcmask 130048   ;;  %v263_v48 = vld [vmem:[%s848_s1 + $0x10] sm:$0xff]  ;;  %vm426_vm5 = vcmask 261120  }
  0x14   : > { %335 = vmatpush.msra.mxu1 %v308_v19  ;;  %551 = vmatpush.msra.mxu3 %v308_v19  ;;  %v262_v49 = vld [vmem:[%s848_s1 + $0x8] sm:$0xff]  ;;  %v264_v50 = vld [vmem:[%s848_s1 + $0x18] sm:$0xff]  ;;  %v307_v51 = vld [vmem:[%s849_s2] sm:$0xff] }
  0x15   : > { %s553_s25 = smul.u32 384, %s165_s24 }
  0x16   : > { %336 = vmatpush.msra.mxu1 %v307_v51  ;;  %552 = vmatpush.msra.mxu3 %v307_v51 }
  0x17   : > { %s754_s28 = scalar_lea.vmem %s847_s0, %s553_s25  ;;  %s161_s25 = sand.u32 1, %s667_s13  }
  0x18   : > { %v518_v0 = vld [vmem:[%s754_s28 + $0x38] sm:$0xff]  ;;  %v516_v1 = vld [vmem:[%s754_s28 + $0x20] sm:$0xff]  ;;  %v522_v2 = vld [vmem:[%s754_s28 + $0x69] sm:$0xff]  ;;  %s513_s26 = sshll.u32 %s161_s25, 5  ;;  %s432_s6 = scalar_lea.sflag [#allocation3], %s161_s25 }
  0x19   : > { %193 = vrot.lane.b32.xlu1 %v518_v0, %s677_s29  ;;  %180 = vrot.lane.b32.xlu0 %v516_v1, %s678_s30  ;;  %v517_v3 = vld [vmem:[%s754_s28 + $0x30] sm:$0xff]  ;;  %v515_v4 = vld [vmem:[%s754_s28 + $0x18] sm:$0xff]  ;;  %s803_s27 = scalar_lea.vmem [#allocation2], %s513_s26 }
  0x1a   : > { %211 = vrot.lane.b32.xlu2 %v522_v2, %s678_s30  ;;  %v521_v5 = vld [vmem:[%s754_s28 + $0x61] sm:$0xff]  ;;  %v523_v6 = vld [vmem:[%s754_s28 + $0x79] sm:$0xff]  ;;  %v530_v9 = vld [vmem:[%s754_s28 + $0xca] sm:$0xff] }
  0x1b   : > { %v524_v7 = vld [vmem:[%s754_s28 + $0x81] sm:$0xff]  ;;  %v528_v8 = vld [vmem:[%s754_s28 + $0xb2] sm:$0xff]  ;;  %v527_v10 = vld [vmem:[%s754_s28 + $0xaa] sm:$0xff] }
  0x1c   : > { %v529_v11 = vld [vmem:[%s754_s28 + $0xc2] sm:$0xff]  ;;  %v520_v21 = vld [vmem:[%s754_s28 + $0x51] sm:$0xff]  ;;  %v526_v34 = vld [vmem:[%s754_s28 + $0x9a] sm:$0xff] }
  0x1d   : > { %v170_v15 = vld [vmem:[%s754_s28 + $0x8] sm:$0xff]  ;;  %v169_v18 = vld [vmem:[%s754_s28] sm:$0xff]  ;;  %v525_v38 = vld [vmem:[%s754_s28 + $0x92] sm:$0xff] }
  0x1e   : > { %v519_v25 = vld [vmem:[%s754_s28 + $0x49] sm:$0xff]  ;;  %s548_s28 = sshll.u32 %s722_s16, 5  ;;  %s444_s16 = sshll.u32 %s803_s27, 4  ;;  %s445_s16 = int_to_ptr.vmem [resolvable:$true] %s444_s16 }
  0x1f   : > { %s443_s4 = scalar_lea.hbm %s850_s3, %s548_s28 }
  0x20   : > { %s446_s5 = sshll.u32 %s443_s4, 4  ;;  %s447_s5 = int_to_ptr.hbm [resolvable:$true] %s446_s5 }
  0x21   : > { %191 = vrot.lane.b32.xlu1 %v517_v3, %s677_s29  ;;  %178 = vrot.lane.b32.xlu0 %v515_v4, %s678_s30  ;;  %s627_s7 = sshra.s32 %s447_s5, 4  ;;  %s628_s7 = int_to_ptr.hbm [resolvable:$true] %s627_s7 }
  0x22   : > { %209 = vrot.lane.b32.xlu2 %v521_v5, %s678_s30  ;;  %s629_s8 = scalar_lea.hbm %s628_s7, 32  ;;  %p634_p0 = scmp.lt.s32.totalorder %s628_s7, %s850_s3 }
  0x23   : > { %p630_p11 = scmp.ne.s32.totalorder %s628_s7, %s629_s8  ;;  %p635_p1 = scmp.lt.s32.totalorder %s633_s11, %s629_s8 }
  0x25   : > { %p631_p12 = pnand %p630_p11, %p739_p5  ;;  %p636_p2 = por %p635_p1, %p634_p0 }
  0x27   : > { %p632_p13 = pneg %p631_p12 }
  0x29   : > { %222 = vrot.lane.b32.xlu1 %v523_v6, %s677_s29  ;;  %224 = vrot.lane.b32.xlu0 %v524_v7, %s677_s29  ;;  %p637_p3 = pnand %p636_p2, %p632_p13 }
  0x2a   : > { %242 = vrot.lane.b32.xlu2 %v528_v8, %s678_s30 }
  0x31   : > { %255 = vrot.lane.b32.xlu1 %v530_v9, %s677_s29  ;;  %240 = vrot.lane.b32.xlu0 %v527_v10, %s678_s30 }
  0x32   : > { %253 = vrot.lane.b32.xlu2 %v529_v11, %s677_s29 }
  0x74   : > { %v212_v12 = vpop.permute.xlu2 %211 }
  0x7c   : > { %v210_v17 = vpop.permute.xlu2 %209 }
  0x84   : > { %v243_v29 = vpop.permute.xlu2 %242 }
  0x8b   : > { %v194_v13 = vpop.permute.xlu1 %193  ;;  %v181_v14 = vpop.permute.xlu0 %180 }
  0x8c   : > { %v185_v16 = vadd.f32 %v181_v14, %v170_v15  ;;  %v254_v41 = vpop.permute.xlu2 %253 }
  0x8e   : > { %v198_v20 = vadd.f32 %v194_v13, %v185_v16 }
  0x90   : > { %v203_v26 = vadd.f32 %v520_v21, %v198_v20 }
  0x92   : > { %v216_v30 = vadd.f32 %v212_v12, %v203_v26 }
  0x93   : > { %v192_v22 = vpop.permute.xlu1 %191  ;;  %v179_v23 = vpop.permute.xlu0 %178 }
  0x94   : > { %v184_v24 = vadd.f32 %v179_v23, %v169_v18 }
  0x96   : > { %v197_v27 = vadd.f32 %v192_v22, %v184_v24 }
  0x98   : > { %v202_v28 = vadd.f32 %v519_v25, %v197_v27 }
  0x9a   : > { %v215_v31 = vadd.f32 %v210_v17, %v202_v28 }
  0x9b   : > { %v223_v32 = vpop.permute.xlu1 %222  ;;  %v225_v33 = vpop.permute.xlu0 %224 }
  0x9c   : > { %v229_v35 = vadd.f32 %v225_v33, %v216_v30  ;;  %v228_v36 = vadd.f32 %v223_v32, %v215_v31 }
  0x9e   : > { %v234_v37 = vadd.f32 %v526_v34, %v229_v35  ;;  %v233_v40 = vadd.f32 %v525_v38, %v228_v36 }
  0xa0   : > { %v247_v39 = vadd.f32 %v243_v29, %v234_v37 }
  0xa3   : > { %v256_v42 = vpop.permute.xlu1 %255  ;;  %v241_v43 = vpop.permute.xlu0 %240 }
  0xa4   : > { %v260_v44 = vadd.f32 %v256_v42, %v247_v39  ;;  %v246_v45 = vadd.f32 %v241_v43, %v233_v40 }
  0xa6   : > { %v259_v46 = vadd.f32 %v254_v41, %v246_v45  ;;  %292 = vmatpush.msra.mxu0 %v260_v44  ;;  %549 = vmatpush.msra.mxu2 %v260_v44 }
  0xa8   : > { %293 = vmatpush.msra.mxu0 %v259_v46  ;;  %550 = vmatpush.msra.mxu2 %v259_v46 }
  0xa9   : > { %531 = vmatmul.msk.f32.vlgmr.msra.gmra.mxu0 %vm265_vm0, %v261_v47  ;;  %533 = vmatmul.msk.f32.vlgmr.msra.gmra.mxu2 %vm265_vm0, %v263_v48 }
  0xb1   : > { %532 = vmatmul.msk.f32.gmra.mxu0 %vm265_vm0, %v262_v49  ;;  %534 = vmatmul.msk.f32.gmra.mxu2 %vm265_vm0, %v264_v50 }
 0x126   : > { %v295_v52 = vpop.f32.mrf.mxu0 }
 0x127   : > { %535 = vmatmul.msk.f32.vlgmr.msra.gmra.mxu1 %vm265_vm0, %v295_v52 }
 0x12c   : > { %v301_v53 = vpop.f32.mrf.mxu2 }
 0x12d   : > { %537 = vmatmul.msk.f32.vlgmr.msra.gmra.mxu3 %vm265_vm0, %v301_v53 }
 0x12e   : > { %v298_v54 = vpop.f32.mrf.mxu0 }
 0x12f   : > { %536 = vmatmul.msk.f32.gmra.mxu1 %vm265_vm0, %v298_v54 }
 0x134   : > { %v304_v55 = vpop.f32.mrf.mxu2 }
 0x135   : > { %538 = vmatmul.msk.f32.gmra.mxu3 %vm265_vm0, %v304_v55 }
 0x1a4   : > { %v338_v56 = vpop.f32.mrf.mxu1 }
 0x1a5   : > { %v539_v57 = vmul.f32 -1.442695, %v338_v56 }
 0x1a7   : > { %597 = vpow2.f32 %v539_v57 }
 0x1ac   : > { %v341_v58 = vpop.f32.mrf.mxu1 }
 0x1ad   : > { %v598_v59 = vpop.eup %597  ;;  %v540_v60 = vmul.f32 -1.442695, %v341_v58 }
 0x1ae   : > { %v362_v61 = vadd.f32 1.0, %v598_v59 }
 0x1af   : > { %599 = vpow2.f32 %v540_v60 }
 0x1b0   : > { %601 = vrcp.f32 %v362_v61  ;;  %v344_v62 = vpop.f32.mrf.mxu3  ;;  %vm371_vm1 = vweird.f32 %v362_v61  ;;  %v377_v4 = vand.u32 2147483648, %v362_v61  ;;  %v375_v8 = vand.u32 2147483647, %v362_v61 }
 0x1b1   : > { %v541_v63 = vmul.f32 -1.442695, %v344_v62 }
 0x1b2   : > { %v378_v12 = vor.u32 1.1754944e-38, %v377_v4  ;;  %vm376_vm4 = vcmp.eq.f32.partialorder %v375_v8, 8.507059e+37 }
 0x1b3   : > { %603 = vpow2.f32 %v541_v63 }
 0x1b5   : > { %v600_v0 = vpop.eup %599 }
 0x1b6   : > { %v602_v1 = vpop.eup %601  ;;  %v363_v2 = vadd.f32 1.0, %v600_v0 }
 0x1b7   : > { %v367_v3 = vmul.f32 %v602_v1, %v362_v61  ;;  %vm372_vm2 = vweird.f32 %v602_v1 }
 0x1b8   : > { %605 = vrcp.f32 %v363_v2  ;;  %v347_v5 = vpop.f32.mrf.mxu3  ;;  %vm373_vm3 = vmor %vm371_vm1, %vm372_vm2  ;;  %v392_v18 = vand.u32 2147483648, %v363_v2  ;;  %vm386_vm6 = vweird.f32 %v363_v2  ;;  %v390_v21 = vand.u32 2147483647, %v363_v2 }
 0x1b9   : > { %v604_v6 = vpop.eup %603  ;;  %v368_v7 = vsub.f32 1.0, %v367_v3  ;;  %v542_v9 = vmul.f32 -1.442695, %v347_v5 }
 0x1ba   : > { %v364_v10 = vadd.f32 1.0, %v604_v6  ;;  %v393_v26 = vor.u32 1.1754944e-38, %v392_v18  ;;  %vm391_vm9 = vcmp.eq.f32.partialorder %v390_v21, 8.507059e+37 }
 0x1bb   : > { %v369_v11 = vmul.f32 %v602_v1, %v368_v7  ;;  %607 = vpow2.f32 %v542_v9 }
 0x1bc   : > { %609 = vrcp.f32 %v364_v10  ;;  %v407_v29 = vand.u32 2147483648, %v364_v10  ;;  %v405_v32 = vand.u32 2147483647, %v364_v10  ;;  %vm401_vm11 = vweird.f32 %v364_v10 }
 0x1bd   : > { %v370_v13 = vadd.f32 %v602_v1, %v369_v11 }
 0x1be   : > { %v606_v14 = vpop.eup %605  ;;  %v408_v36 = vor.u32 1.1754944e-38, %v407_v29  ;;  %vm406_vm13 = vcmp.eq.f32.partialorder %v405_v32, 8.507059e+37 }
 0x1bf   : > { %v374_v15 = vsel %vm373_vm3, %v602_v1, %v370_v13  ;;  %v382_v16 = vmul.f32 %v606_v14, %v363_v2  ;;  %vm387_vm7 = vweird.f32 %v606_v14 }
 0x1c0   : > { %v379_v17 = vsel %vm376_vm4, %v378_v12, %v374_v15  ;;  %vm388_vm8 = vmor %vm386_vm6, %vm387_vm7 }
 0x1c1   : > { %v608_v19 = vpop.eup %607  ;;  %v383_v20 = vsub.f32 1.0, %v382_v16  ;;  %427 = vst.msk [vmem:[%s803_s27] sm:$0xff] %vm426_vm5, %v379_v17 }
 0x1c2   : > { %v610_v22 = vpop.eup %609  ;;  %v365_v23 = vadd.f32 1.0, %v608_v19 }
 0x1c3   : > { %v384_v24 = vmul.f32 %v606_v14, %v383_v20  ;;  %v397_v25 = vmul.f32 %v610_v22, %v364_v10  ;;  %vm402_vm10 = vweird.f32 %v610_v22 }
 0x1c4   : > { %611 = vrcp.f32 %v365_v23  ;;  %vm403_vm12 = vmor %vm401_vm11, %vm402_vm10  ;;  %v422_v41 = vand.u32 2147483648, %v365_v23  ;;  %v420_v43 = vand.u32 2147483647, %v365_v23  ;;  %vm416_vm15 = vweird.f32 %v365_v23 }
 0x1c5   : > { %v385_v27 = vadd.f32 %v606_v14, %v384_v24  ;;  %v398_v28 = vsub.f32 1.0, %v397_v25 }
 0x1c6   : > { %v423_v45 = vor.u32 1.1754944e-38, %v422_v41  ;;  %vm421_vm1 = vcmp.eq.f32.partialorder %v420_v43, 8.507059e+37 }
 0x1c7   : > { %v389_v30 = vsel %vm388_vm8, %v606_v14, %v385_v27  ;;  %v399_v31 = vmul.f32 %v610_v22, %v398_v28 }
 0x1c8   : > { %v394_v33 = vsel %vm391_vm9, %v393_v26, %v389_v30 }
 0x1c9   : > { %428 = vst.msk [vmem:[%s803_s27 + $0x8] sm:$0xff] %vm426_vm5, %v394_v33  ;;  %v400_v34 = vadd.f32 %v610_v22, %v399_v31 }
 0x1ca   : > { %v612_v35 = vpop.eup %611 }
 0x1cb   : > { %v404_v37 = vsel %vm403_vm12, %v610_v22, %v400_v34  ;;  %v412_v38 = vmul.f32 %v612_v35, %v365_v23  ;;  %vm417_vm14 = vweird.f32 %v612_v35 }
 0x1cc   : > { %v409_v39 = vsel %vm406_vm13, %v408_v36, %v404_v37  ;;  %vm418_vm0 = vmor %vm416_vm15, %vm417_vm14 }
 0x1cd   : > { %429 = vst.msk [vmem:[%s803_s27 + $0x10] sm:$0xff] %vm426_vm5, %v409_v39  ;;  %v413_v40 = vsub.f32 1.0, %v412_v38 }
 0x1cf   : > { %v414_v42 = vmul.f32 %v612_v35, %v413_v40 }
 0x1d1   : > { %v415_v44 = vadd.f32 %v612_v35, %v414_v42 }
 0x1d3   : > { %v419_v46 = vsel %vm418_vm0, %v612_v35, %v415_v44 }
 0x1d4   : > { %v424_v47 = vsel %vm421_vm1, %v423_v45, %v419_v46 }
 0x1d5   : > { %430 = vst.msk [vmem:[%s803_s27 + $0x18] sm:$0xff] %vm426_vm5, %v424_v47 }
 0x1d6   : > { %640 = shalt.err (!%p637_p3)
}
 0x1d7   : > { %s679_s20 = smov 128   ;;  %s680_s24 = smov 8  }
 0x1d8   : > { %554 = dma.vmem_to_hbm [thread:$0]  (%p739_p5), %s445_s16, 512, %s447_s5, %s432_s6, %s679_s20, %s679_s20, %s680_s24  }
 0x1d9 PF: > { %p560_p4 = scmp.ge.s32.totalorder %s675_s15, 2  ;;  %s461_s25 = sand.u32 1, %s663_s12  }
 0x1da   : > { %s462_s26 = scalar_lea.sflag [#allocation3], %s461_s25 }
 0x1db   : > { %p557_p7 = pnand %p560_p4, %p743_p6 }
 0x1dd   : > { %p558_p8 = pneg %p557_p7 }
 0x1df   : > { %658 = dma.done.wait (%p558_p8), %s462_s26, 512  }
 0x1e0   : > { %660 = vsyncadd (%p558_p8), %s462_s26, 4294966784  ;;  %p13_p9 = scmp.ge.s32.totalorder %s726_s18, 4   ;;  %s853_s12 = smov %s667_s13 }
 0x1e1   : > { %s854_s13 = smov %s671_s14  ;;  %s855_s14 = smov %s737_s21 }
 0x1e2   : > { %s856_s15 = smov %s726_s18  ;;  %15 = sbr.rel (!%p13_p9) target bundleno = 3 (0x3), region = 75 }
 0x1e7   :  { %468 = vsyncpa [#allocation3], 1 }
 0x1e8   :  { %470 = vsyncpa [#allocation3 + $0x1], 1 }

// kernel: segnet_forward.2
= control target key start
LH: loop header
LB: loop body
LE: loop exit
PB: predicated region body
PF: predicated region fallthrough
CT: control target
= control target key end

     0   :  { %vm344_vm0 = vcmask 1041408   ;;  %vm247_vm1 = vcmask 31744   ;;  %vm2405_vm2 = vcmask 130048   ;;  %s3974_s1 = inlined_call_operand.vmem [shape: bf16[4,256], index: 1, kind: input, shape index: {}]   ;;  %s3975_s2 = inlined_call_operand.vmem [shape: bf16[256,256], index: 2, kind: input, shape index: {}]   ;;  %s3976_s0 = inlined_call_operand.vmem [shape: bf16[512,4], index: 0, kind: input, shape index: {}]   ;;  %s3977_s3 = inlined_call_operand.vmem [shape: bf16[256,16], index: 3, kind: input, shape index: {}]   ;;  %s3978_s4 = inlined_call_operand.vmem [shape: f32[512,16], index: 4, kind: output, shape index: {}]  }
   0x1   :  { %v82_v0 = vld [vmem:[%s3974_s1] sm:$0xf]  ;;  %v2904_v1 = vld [vmem:[%s3975_s2 + $0x74] sm:$0xf]  ;;  %v2726_v2 = vld [vmem:[%s3975_s2 + $0x78] sm:$0xf0] }
   0x2   :  { %244 = vst [vmem:[#allocation1] ss:$4 sm:$0xff] %v82_v0  ;;  %v2920_v3 = vld [vmem:[%s3975_s2 + $0xf4] sm:$0xf]  ;;  %v2790_v4 = vld [vmem:[%s3975_s2 + $0xf8] sm:$0xf0]  ;;  %v2729_v5 = vor.u32 %v2904_v1, %v2726_v2 }
   0x3   :  { %v2793_v6 = vor.u32 %v2920_v3, %v2790_v4  ;;  %v2858_v11 = vld [vmem:[%s3976_s0] sm:$0xff]  ;;  %v2859_v12 = vld [vmem:[%s3976_s0 + $0x8] sm:$0xff]  ;;  %v2860_v13 = vld [vmem:[%s3976_s0 + $0x10] sm:$0xff] }
   0x4   :  { %v2902_v14 = vld [vmem:[%s3975_s2 + $0x64] sm:$0xf]  ;;  %v2718_v15 = vld [vmem:[%s3975_s2 + $0x68] sm:$0xf0]  ;;  %v2861_v20 = vld [vmem:[%s3976_s0 + $0x18] sm:$0xff] }
   0x5   :  { %v2918_v16 = vld [vmem:[%s3975_s2 + $0xe4] sm:$0xf]  ;;  %v2721_v17 = vor.u32 %v2902_v14, %v2718_v15  ;;  %v2782_v18 = vld [vmem:[%s3975_s2 + $0xe8] sm:$0xf0]  ;;  %v2724_v22 = vld [vmem:[%s3975_s2 + $0x70] sm:$0xf] }
   0x6   :  { %v2785_v19 = vor.u32 %v2918_v16, %v2782_v18  ;;  %v2862_v21 = vld [vmem:[%s3976_s0 + $0x20] sm:$0xff]  ;;  %v2905_v23 = vld [vmem:[%s3975_s2 + $0x74] sm:$0xf0]  ;;  %v2788_v24 = vld [vmem:[%s3975_s2 + $0xf0] sm:$0xf] }
   0x7   :  { %v2725_v25 = vor.u32 %v2905_v23, %v2724_v22  ;;  %v2921_v26 = vld [vmem:[%s3975_s2 + $0xf4] sm:$0xf0]  ;;  %v2716_v27 = vld [vmem:[%s3975_s2 + $0x60] sm:$0xf]  ;;  %v2903_v28 = vld [vmem:[%s3975_s2 + $0x64] sm:$0xf0] }
   0x8   :  { %v2789_v29 = vor.u32 %v2921_v26, %v2788_v24  ;;  %v2780_v30 = vld [vmem:[%s3975_s2 + $0xe0] sm:$0xf]  ;;  %v2919_v31 = vld [vmem:[%s3975_s2 + $0xe4] sm:$0xf0]  ;;  %v2717_v32 = vor.u32 %v2903_v28, %v2716_v27  ;;  %v2708_v35 = vld [vmem:[%s3975_s2 + $0x50] sm:$0xf] }
   0x9   :  { %v245_v7 = vld.sshfl [vmem:[#allocation1] sm:$0xff pattern:$0x73625140]  ;;  %v246_v8 = vld.sshfl [vmem:[#allocation1 + $0x8] sm:$0xff pattern:$0x73625140]  ;;  %1071 = vmatpush.bf16.msra.mxu2 %v2725_v25  ;;  %v2781_v33 = vor.u32 %v2919_v31, %v2780_v30 }
   0xa   :  { %v345_v9 = vsel %vm344_vm0, %v245_v7, 0  ;;  %v347_v10 = vsel %vm344_vm0, %v246_v8, 0  ;;  %1240 = vmatpush.bf16.msra.mxu3 %v2789_v29  ;;  %v2863_v34 = vld [vmem:[%s3976_s0 + $0x28] sm:$0xff]  ;;  %v2901_v36 = vld [vmem:[%s3975_s2 + $0x54] sm:$0xf0]  ;;  %v2864_v53 = vld [vmem:[%s3976_s0 + $0x30] sm:$0xff] }
   0xb   :  { %356 = vmatpush.bf16.msra.mxu0 %v345_v9  ;;  %525 = vmatpush.bf16.msra.mxu1 %v347_v10  ;;  %v2772_v37 = vld [vmem:[%s3975_s2 + $0xd0] sm:$0xf]  ;;  %v2709_v38 = vor.u32 %v2901_v36, %v2708_v35  ;;  %v2917_v39 = vld [vmem:[%s3975_s2 + $0xd4] sm:$0xf0]  ;;  %v2700_v40 = vld [vmem:[%s3975_s2 + $0x40] sm:$0xf] }
   0xc   :  { %v2899_v41 = vld [vmem:[%s3975_s2 + $0x44] sm:$0xf0]  ;;  %v2773_v42 = vor.u32 %v2917_v39, %v2772_v37  ;;  %v2764_v43 = vld [vmem:[%s3975_s2 + $0xc0] sm:$0xf]  ;;  %v2692_v47 = vld [vmem:[%s3975_s2 + $0x30] sm:$0xf] }
   0xd   :  { %1072 = vmatpush.bf16.msra.mxu2 %v2717_v32  ;;  %v2915_v44 = vld [vmem:[%s3975_s2 + $0xc4] sm:$0xf0]  ;;  %v2701_v45 = vor.u32 %v2899_v41, %v2700_v40  ;;  %v2897_v48 = vld [vmem:[%s3975_s2 + $0x34] sm:$0xf0]  ;;  %v2756_v49 = vld [vmem:[%s3975_s2 + $0xb0] sm:$0xf] }
   0xe   :  { %2602 = vmatmul.msk.bf16.vlgmr.msra.gmra.mxu0 %vm247_vm1, %v2858_v11  ;;  %2634 = vmatmul.msk.bf16.vlgmr.msra.gmra.mxu1 %vm247_vm1, %v2858_v11  ;;  %v2765_v46 = vor.u32 %v2915_v44, %v2764_v43  ;;  %v2913_v50 = vld [vmem:[%s3975_s2 + $0xb4] sm:$0xf0]  ;;  %v2693_v51 = vor.u32 %v2897_v48, %v2692_v47  ;;  %v2684_v54 = vld [vmem:[%s3975_s2 + $0x20] sm:$0xf]  ;;  %v2895_v55 = vld [vmem:[%s3975_s2 + $0x24] sm:$0xf0] }
   0xf   :  { %1409 = vmatpush.bf16.msrb.mxu0 %v2729_v5  ;;  %1578 = vmatpush.bf16.msrb.mxu1 %v2793_v6  ;;  %v2757_v52 = vor.u32 %v2913_v50, %v2756_v49  ;;  %v2748_v56 = vld [vmem:[%s3975_s2 + $0xa0] sm:$0xf]  ;;  %v2685_v57 = vor.u32 %v2895_v55, %v2684_v54  ;;  %v2911_v58 = vld [vmem:[%s3975_s2 + $0xa4] sm:$0xf0]  ;;  %v2900_v60 = vld [vmem:[%s3975_s2 + $0x54] sm:$0xf] }
  0x10   :  { %1241 = vmatpush.bf16.msra.mxu3 %v2781_v33  ;;  %v2749_v59 = vor.u32 %v2911_v58, %v2748_v56  ;;  %v2710_v61 = vld [vmem:[%s3975_s2 + $0x58] sm:$0xf0]  ;;  %v2916_v62 = vld [vmem:[%s3975_s2 + $0xd4] sm:$0xf]  ;;  %v2676_v1 = vld [vmem:[%s3975_s2 + $0x10] sm:$0xf] }
  0x11   :  { %1073 = vmatpush.bf16.msra.mxu2 %v2709_v38  ;;  %v2713_v63 = vor.u32 %v2900_v60, %v2710_v61  ;;  %v2774_v0 = vld [vmem:[%s3975_s2 + $0xd8] sm:$0xf0]  ;;  %v2893_v2 = vld [vmem:[%s3975_s2 + $0x14] sm:$0xf0]  ;;  %v2740_v5 = vld [vmem:[%s3975_s2 + $0x90] sm:$0xf] }
  0x12   :  { %v2777_v3 = vor.u32 %v2916_v62, %v2774_v0  ;;  %v2677_v4 = vor.u32 %v2893_v2, %v2676_v1  ;;  %v2909_v6 = vld [vmem:[%s3975_s2 + $0x94] sm:$0xf0]  ;;  %v2668_v8 = vld [vmem:[%s3975_s2] sm:$0xf]  ;;  %v2891_v9 = vld [vmem:[%s3975_s2 + $0x4] sm:$0xf0] }
  0x13   :  { %1410 = vmatpush.bf16.msrb.mxu0 %v2721_v17  ;;  %1579 = vmatpush.bf16.msrb.mxu1 %v2785_v19  ;;  %v2741_v7 = vor.u32 %v2909_v6, %v2740_v5  ;;  %v2732_v10 = vld [vmem:[%s3975_s2 + $0x80] sm:$0xf]  ;;  %v2669_v11 = vor.u32 %v2891_v9, %v2668_v8  ;;  %v2929_v14 = vld [vmem:[%s3977_s3 + $0x38] sm:$0xff]  ;;  %v2867_v28 = vld [vmem:[%s3976_s0 + $0x48] sm:$0xff] }
  0x14   :  { %1242 = vmatpush.bf16.msra.mxu3 %v2773_v42  ;;  %v2937_v15 = vld [vmem:[%s3977_s3 + $0x78] sm:$0xff]  ;;  %v2866_v17 = vld [vmem:[%s3976_s0 + $0x40] sm:$0xff]  ;;  %v2868_v39 = vld [vmem:[%s3976_s0 + $0x50] sm:$0xff] }
  0x15   :  { %1074 = vmatpush.bf16.msra.mxu2 %v2701_v45  ;;  %v2865_v16 = vld [vmem:[%s3976_s0 + $0x38] sm:$0xff]  ;;  %v2898_v42 = vld [vmem:[%s3975_s2 + $0x44] sm:$0xf]  ;;  %v2702_v43 = vld [vmem:[%s3975_s2 + $0x48] sm:$0xf0] }
  0x16   :  { %v2914_v44 = vld [vmem:[%s3975_s2 + $0xc4] sm:$0xf]  ;;  %v2705_v45 = vor.u32 %v2898_v42, %v2702_v43  ;;  %v2928_v56 = vld [vmem:[%s3977_s3 + $0x30] sm:$0xff]  ;;  %v2869_v58 = vld [vmem:[%s3976_s0 + $0x58] sm:$0xff] }
  0x17   :  { %1411 = vmatpush.bf16.msrb.mxu0 %v2713_v63  ;;  %1580 = vmatpush.bf16.msrb.mxu1 %v2777_v3  ;;  %v2870_v5 = vld [vmem:[%s3976_s0 + $0x60] sm:$0xff] }
  0x18   :  { %1243 = vmatpush.bf16.msra.mxu3 %v2765_v46  ;;  %v2766_v46 = vld [vmem:[%s3975_s2 + $0xc8] sm:$0xf0] }
  0x19   :  { %1075 = vmatpush.bf16.msra.mxu2 %v2693_v51  ;;  %v2769_v47 = vor.u32 %v2914_v44, %v2766_v46 }
  0x1b   :  { %1412 = vmatpush.bf16.msrb.mxu0 %v2705_v45  ;;  %1581 = vmatpush.bf16.msrb.mxu1 %v2769_v47 }
  0x1c   :  { %1244 = vmatpush.bf16.msra.mxu3 %v2757_v52 }
  0x1d   :  { %1076 = vmatpush.bf16.msra.mxu2 %v2685_v57  ;;  %v2936_v57 = vld [vmem:[%s3977_s3 + $0x70] sm:$0xff] }
  0x1e   :  { %2603 = vmatmul.msk.bf16.gmra.mxu0 %vm247_vm1, %v2859_v12  ;;  %2635 = vmatmul.msk.bf16.gmra.mxu1 %vm247_vm1, %v2859_v12  ;;  %v2907_v12 = vld [vmem:[%s3975_s2 + $0x84] sm:$0xf0] }
  0x20   :  { %1245 = vmatpush.bf16.msra.mxu3 %v2749_v59 }
  0x21   :  { %1077 = vmatpush.bf16.msra.mxu2 %v2677_v4 }
  0x24   :  { %1246 = vmatpush.bf16.msra.mxu3 %v2741_v7 }
  0x25   :  { %1078 = vmatpush.bf16.msra.mxu2 %v2669_v11 }
  0x29   :  { %2067 = vmatpush.bf16.msrb.mxu2 %v2929_v14 }
  0x2d   :  { %2068 = vmatpush.bf16.msrb.mxu2 %v2928_v56 }
  0x2e   :  { %2604 = vmatmul.msk.bf16.gmra.mxu0 %vm247_vm1, %v2860_v13  ;;  %2636 = vmatmul.msk.bf16.gmra.mxu1 %vm247_vm1, %v2860_v13  ;;  %v2733_v13 = vor.u32 %v2907_v12, %v2732_v10 }
  0x30   :  { %1247 = vmatpush.bf16.msra.mxu3 %v2733_v13 }
  0x34   :  { %2236 = vmatpush.bf16.msrb.mxu3 %v2937_v15 }
  0x38   :  { %2237 = vmatpush.bf16.msrb.mxu3 %v2936_v57 }
  0x3e   :  { %2605 = vmatmul.msk.bf16.gmra.mxu0 %vm247_vm1, %v2861_v20  ;;  %2637 = vmatmul.msk.bf16.gmra.mxu1 %vm247_vm1, %v2861_v20 }
  0x4e   :  { %2606 = vmatmul.msk.bf16.gmra.mxu0 %vm247_vm1, %v2862_v21  ;;  %2638 = vmatmul.msk.bf16.gmra.mxu1 %vm247_vm1, %v2862_v21 }
  0x5e   :  { %2607 = vmatmul.msk.bf16.gmra.mxu0 %vm247_vm1, %v2863_v34  ;;  %2639 = vmatmul.msk.bf16.gmra.mxu1 %vm247_vm1, %v2863_v34 }
  0x6e   :  { %2608 = vmatmul.msk.bf16.gmra.mxu0 %vm247_vm1, %v2864_v53  ;;  %2640 = vmatmul.msk.bf16.gmra.mxu1 %vm247_vm1, %v2864_v53 }
  0x7e   :  { %2609 = vmatmul.msk.bf16.gmra.mxu0 %vm247_vm1, %v2865_v16  ;;  %2641 = vmatmul.msk.bf16.gmra.mxu1 %vm247_vm1, %v2865_v16  ;;  %v2871_v16 = vld [vmem:[%s3976_s0 + $0x68] sm:$0xff] }
  0x8b   :  { %v358_v18 = vpop.f32.mrf.mxu0  ;;  %v527_v19 = vpop.f32.mrf.mxu1 }
  0x8c   :  { %v687_v22 = vmax.f32 %v358_v18, 0.0  ;;  %v688_v23 = vmax.f32 %v527_v19, 0.0 }
  0x8e   :  { %2610 = vmatmul.msk.bf16.gmra.mxu0 %vm247_vm1, %v2866_v17  ;;  %2642 = vmatmul.msk.bf16.gmra.mxu1 %vm247_vm1, %v2866_v17 }
  0x93   :  { %v360_v20 = vpop.f32.mrf.mxu0  ;;  %v529_v21 = vpop.f32.mrf.mxu1 }
  0x94   :  { %v689_v24 = vmax.f32 %v360_v20, 0.0  ;;  %v690_v25 = vmax.f32 %v529_v21, 0.0 }
  0x96   :  { %v3149_v26 = vpack.c.bf16 %v689_v24, %v687_v22  ;;  %v3151_v27 = vpack.c.bf16 %v690_v25, %v688_v23 }
  0x98   :  { %1079 = vmatmul.bf16.vlgmr.msra.gmra.mxu2 %v3149_v26  ;;  %1248 = vmatmul.bf16.vlgmr.msra.gmra.mxu3 %v3151_v27 }
  0x9b   :  { %v363_v29 = vpop.f32.mrf.mxu0  ;;  %v532_v30 = vpop.f32.mrf.mxu1 }
  0x9c   :  { %v691_v33 = vmax.f32 %v363_v29, 0.0  ;;  %v692_v34 = vmax.f32 %v532_v30, 0.0  ;;  %v2872_v29 = vld [vmem:[%s3976_s0 + $0x70] sm:$0xff] }
  0x9e   :  { %2611 = vmatmul.msk.bf16.gmra.mxu0 %vm247_vm1, %v2867_v28  ;;  %2643 = vmatmul.msk.bf16.gmra.mxu1 %vm247_vm1, %v2867_v28 }
  0xa3   :  { %v365_v31 = vpop.f32.mrf.mxu0  ;;  %v534_v32 = vpop.f32.mrf.mxu1 }
  0xa4   :  { %v693_v35 = vmax.f32 %v365_v31, 0.0  ;;  %v694_v36 = vmax.f32 %v534_v32, 0.0  ;;  %v2896_v32 = vld [vmem:[%s3975_s2 + $0x34] sm:$0xf] }
  0xa6   :  { %v3160_v37 = vpack.c.bf16 %v693_v35, %v691_v33  ;;  %v3162_v38 = vpack.c.bf16 %v694_v36, %v692_v34  ;;  %v2694_v33 = vld [vmem:[%s3975_s2 + $0x38] sm:$0xf0]  ;;  %v2912_v34 = vld [vmem:[%s3975_s2 + $0xb4] sm:$0xf] }
  0xa7   :  { %v2697_v35 = vor.u32 %v2896_v32, %v2694_v33  ;;  %v2758_v36 = vld [vmem:[%s3975_s2 + $0xb8] sm:$0xf0] }
  0xa8   :  { %1084 = vmatmul.bf16.gmra.mxu2 %v3160_v37  ;;  %1253 = vmatmul.bf16.gmra.mxu3 %v3162_v38 }
  0xa9   :  { %1413 = vmatpush.bf16.msrb.mxu0 %v2697_v35 }
  0xab   :  { %v368_v40 = vpop.f32.mrf.mxu0  ;;  %v537_v41 = vpop.f32.mrf.mxu1 }
  0xac   :  { %v695_v50 = vmax.f32 %v368_v40, 0.0  ;;  %v696_v51 = vmax.f32 %v537_v41, 0.0 }
  0xae   :  { %2612 = vmatmul.msk.bf16.gmra.mxu0 %vm247_vm1, %v2868_v39  ;;  %2644 = vmatmul.msk.bf16.gmra.mxu1 %vm247_vm1, %v2868_v39  ;;  %v2761_v39 = vor.u32 %v2912_v34, %v2758_v36 }
  0xb0   :  { %1582 = vmatpush.bf16.msrb.mxu1 %v2761_v39 }
  0xb3   :  { %v370_v48 = vpop.f32.mrf.mxu0  ;;  %v539_v49 = vpop.f32.mrf.mxu1 }
  0xb4   :  { %v697_v52 = vmax.f32 %v370_v48, 0.0  ;;  %v698_v53 = vmax.f32 %v539_v49, 0.0  ;;  %v2927_v48 = vld [vmem:[%s3977_s3 + $0x28] sm:$0xff] }
  0xb5   :  { %v2935_v49 = vld [vmem:[%s3977_s3 + $0x68] sm:$0xff]  ;;  %2069 = vmatpush.bf16.msrb.mxu2 %v2927_v48  ;;  %v2894_v48 = vld [vmem:[%s3975_s2 + $0x24] sm:$0xf] }
  0xb6   :  { %v3183_v54 = vpack.c.bf16 %v697_v52, %v695_v50  ;;  %v3185_v55 = vpack.c.bf16 %v698_v53, %v696_v51  ;;  %v2873_v50 = vld [vmem:[%s3976_s0 + $0x78] sm:$0xff]  ;;  %2238 = vmatpush.bf16.msrb.mxu3 %v2935_v49  ;;  %v2686_v49 = vld [vmem:[%s3975_s2 + $0x28] sm:$0xf0] }
  0xb8   :  { %1089 = vmatmul.bf16.gmra.mxu2 %v3183_v54  ;;  %1258 = vmatmul.bf16.gmra.mxu3 %v3185_v55 }
  0xbb   :  { %v373_v59 = vpop.f32.mrf.mxu0  ;;  %v542_v60 = vpop.f32.mrf.mxu1 }
  0xbc   :  { %v699_v63 = vmax.f32 %v373_v59, 0.0  ;;  %v700_v0 = vmax.f32 %v542_v60, 0.0 }
  0xbe   :  { %2613 = vmatmul.msk.bf16.gmra.mxu0 %vm247_vm1, %v2869_v58  ;;  %2645 = vmatmul.msk.bf16.gmra.mxu1 %vm247_vm1, %v2869_v58 }
  0xc3   :  { %v375_v61 = vpop.f32.mrf.mxu0  ;;  %v544_v62 = vpop.f32.mrf.mxu1 }
  0xc4   :  { %v701_v1 = vmax.f32 %v375_v61, 0.0  ;;  %v702_v2 = vmax.f32 %v544_v62, 0.0 }
  0xc6   :  { %v3200_v3 = vpack.c.bf16 %v701_v1, %v699_v63  ;;  %v3202_v4 = vpack.c.bf16 %v702_v2, %v700_v0  ;;  %v2874_v63 = vld [vmem:[%s3976_s0 + $0x80] sm:$0xff] }
  0xc8   :  { %1094 = vmatmul.bf16.gmra.mxu2 %v3200_v3  ;;  %1263 = vmatmul.bf16.gmra.mxu3 %v3202_v4 }
  0xcb   :  { %v378_v6 = vpop.f32.mrf.mxu0  ;;  %v547_v7 = vpop.f32.mrf.mxu1 }
  0xcc   :  { %v703_v10 = vmax.f32 %v378_v6, 0.0  ;;  %v704_v11 = vmax.f32 %v547_v7, 0.0 }
  0xce   :  { %2614 = vmatmul.msk.bf16.gmra.mxu0 %vm247_vm1, %v2870_v5  ;;  %2646 = vmatmul.msk.bf16.gmra.mxu1 %vm247_vm1, %v2870_v5 }
  0xd3   :  { %v380_v8 = vpop.f32.mrf.mxu0  ;;  %v549_v9 = vpop.f32.mrf.mxu1 }
  0xd4   :  { %v705_v12 = vmax.f32 %v380_v8, 0.0  ;;  %v706_v13 = vmax.f32 %v549_v9, 0.0 }
  0xd6   :  { %v3211_v14 = vpack.c.bf16 %v705_v12, %v703_v10  ;;  %v3213_v15 = vpack.c.bf16 %v706_v13, %v704_v11  ;;  %v2875_v12 = vld [vmem:[%s3976_s0 + $0x88] sm:$0xff] }
  0xd8   :  { %1099 = vmatmul.bf16.gmra.mxu2 %v3211_v14  ;;  %1268 = vmatmul.bf16.gmra.mxu3 %v3213_v15 }
  0xdb   :  { %v383_v17 = vpop.f32.mrf.mxu0  ;;  %v552_v18 = vpop.f32.mrf.mxu1 }
  0xdc   :  { %v707_v21 = vmax.f32 %v383_v17, 0.0  ;;  %v708_v22 = vmax.f32 %v552_v18, 0.0 }
  0xde   :  { %2615 = vmatmul.msk.bf16.gmra.mxu0 %vm247_vm1, %v2871_v16  ;;  %2647 = vmatmul.msk.bf16.gmra.mxu1 %vm247_vm1, %v2871_v16 }
  0xe3   :  { %v385_v19 = vpop.f32.mrf.mxu0  ;;  %v554_v20 = vpop.f32.mrf.mxu1 }
  0xe4   :  { %v709_v23 = vmax.f32 %v385_v19, 0.0  ;;  %v710_v24 = vmax.f32 %v554_v20, 0.0 }
  0xe6   :  { %v3222_v25 = vpack.c.bf16 %v709_v23, %v707_v21  ;;  %v3224_v28 = vpack.c.bf16 %v710_v24, %v708_v22 }
  0xe8   :  { %1104 = vmatmul.bf16.gmra.mxu2 %v3222_v25  ;;  %1273 = vmatmul.bf16.gmra.mxu3 %v3224_v28 }
  0xeb   :  { %v388_v30 = vpop.f32.mrf.mxu0  ;;  %v557_v31 = vpop.f32.mrf.mxu1 }
  0xec   :  { %v711_v42 = vmax.f32 %v388_v30, 0.0  ;;  %v712_v43 = vmax.f32 %v557_v31, 0.0 }
  0xee   :  { %2616 = vmatmul.msk.bf16.gmra.mxu0 %vm247_vm1, %v2872_v29  ;;  %2648 = vmatmul.msk.bf16.gmra.mxu1 %vm247_vm1, %v2872_v29 }
  0xf3   :  { %v390_v40 = vpop.f32.mrf.mxu0  ;;  %v559_v41 = vpop.f32.mrf.mxu1 }
  0xf4   :  { %v713_v44 = vmax.f32 %v390_v40, 0.0  ;;  %v714_v45 = vmax.f32 %v559_v41, 0.0  ;;  %v2876_v40 = vld [vmem:[%s3976_s0 + $0x90] sm:$0xff] }
  0xf6   :  { %v3245_v46 = vpack.c.bf16 %v713_v44, %v711_v42  ;;  %v3247_v47 = vpack.c.bf16 %v714_v45, %v712_v43 }
  0xf8   :  { %1109 = vmatmul.bf16.gmra.mxu2 %v3245_v46  ;;  %1278 = vmatmul.bf16.gmra.mxu3 %v3247_v47 }
  0xfb   :  { %v393_v51 = vpop.f32.mrf.mxu0  ;;  %v562_v52 = vpop.f32.mrf.mxu1 }
  0xfc   :  { %v715_v57 = vmax.f32 %v393_v51, 0.0  ;;  %v716_v58 = vmax.f32 %v562_v52, 0.0  ;;  %v2910_v51 = vld [vmem:[%s3975_s2 + $0xa4] sm:$0xf]  ;;  %v2750_v52 = vld [vmem:[%s3975_s2 + $0xa8] sm:$0xf0] }
  0xfe   :  { %2617 = vmatmul.msk.bf16.gmra.mxu0 %vm247_vm1, %v2873_v50  ;;  %2649 = vmatmul.msk.bf16.gmra.mxu1 %vm247_vm1, %v2873_v50  ;;  %v2689_v50 = vor.u32 %v2894_v48, %v2686_v49 }
 0x100   :  { %1414 = vmatpush.bf16.msrb.mxu0 %v2689_v50 }
 0x103   :  { %v395_v53 = vpop.f32.mrf.mxu0  ;;  %v564_v56 = vpop.f32.mrf.mxu1 }
 0x104   :  { %v717_v59 = vmax.f32 %v395_v53, 0.0  ;;  %v718_v60 = vmax.f32 %v564_v56, 0.0  ;;  %v2753_v53 = vor.u32 %v2910_v51, %v2750_v52 }
 0x106   :  { %v3262_v61 = vpack.c.bf16 %v717_v59, %v715_v57  ;;  %v3264_v62 = vpack.c.bf16 %v718_v60, %v716_v58  ;;  %1583 = vmatpush.bf16.msrb.mxu1 %v2753_v53 }
 0x108   :  { %1114 = vmatmul.bf16.gmra.mxu2 %v3262_v61  ;;  %1283 = vmatmul.bf16.gmra.mxu3 %v3264_v62 }
 0x10b   :  { %v398_v0 = vpop.f32.mrf.mxu0  ;;  %v567_v1 = vpop.f32.mrf.mxu1 }
 0x10c   :  { %v719_v6 = vmax.f32 %v398_v0, 0.0  ;;  %v720_v7 = vmax.f32 %v567_v1, 0.0 }
 0x10e   :  { %2618 = vmatmul.msk.bf16.gmra.mxu0 %vm247_vm1, %v2874_v63  ;;  %2650 = vmatmul.msk.bf16.gmra.mxu1 %vm247_vm1, %v2874_v63 }
 0x113   :  { %v400_v2 = vpop.f32.mrf.mxu0  ;;  %v569_v5 = vpop.f32.mrf.mxu1 }
 0x114   :  { %v721_v8 = vmax.f32 %v400_v2, 0.0  ;;  %v722_v9 = vmax.f32 %v569_v5, 0.0 }
 0x116   :  { %v3273_v10 = vpack.c.bf16 %v721_v8, %v719_v6  ;;  %v3275_v11 = vpack.c.bf16 %v722_v9, %v720_v7  ;;  %v2926_v9 = vld [vmem:[%s3977_s3 + $0x20] sm:$0xff] }
 0x117   :  { %2070 = vmatpush.bf16.msrb.mxu2 %v2926_v9 }
 0x118   :  { %1119 = vmatmul.bf16.gmra.mxu2 %v3273_v10  ;;  %1288 = vmatmul.bf16.gmra.mxu3 %v3275_v11 }
 0x11b   :  { %v403_v13 = vpop.f32.mrf.mxu0  ;;  %v572_v16 = vpop.f32.mrf.mxu1 }
 0x11c   :  { %v1080_v17 = vpop.f32.mrf.mxu2  ;;  %v1249_v18 = vpop.f32.mrf.mxu3  ;;  %v723_v22 = vmax.f32 %v403_v13, 0.0  ;;  %v724_v23 = vmax.f32 %v572_v16, 0.0  ;;  %v2877_v16 = vld [vmem:[%s3976_s0 + $0x98] sm:$0xff] }
 0x11d   :  { %v1250_v19 = vadd.f32 %v1249_v18, %v1080_v17 }
 0x11e   :  { %2619 = vmatmul.msk.bf16.gmra.mxu0 %vm247_vm1, %v2875_v12  ;;  %2651 = vmatmul.msk.bf16.gmra.mxu1 %vm247_vm1, %v2875_v12  ;;  %v2934_v12 = vld [vmem:[%s3977_s3 + $0x60] sm:$0xff] }
 0x11f   :  { %v1747_v35 = vmax.f32 %v1250_v19, 0.0  ;;  %2239 = vmatpush.bf16.msrb.mxu3 %v2934_v12 }
 0x123   :  { %v405_v20 = vpop.f32.mrf.mxu0  ;;  %v574_v21 = vpop.f32.mrf.mxu1 }
 0x124   :  { %v725_v24 = vmax.f32 %v405_v20, 0.0  ;;  %v726_v29 = vmax.f32 %v574_v21, 0.0  ;;  %v1082_v30 = vpop.f32.mrf.mxu2  ;;  %v1251_v31 = vpop.f32.mrf.mxu3 }
 0x125   :  { %v1252_v32 = vadd.f32 %v1251_v31, %v1082_v30 }
 0x126   :  { %v3284_v33 = vpack.c.bf16 %v725_v24, %v723_v22  ;;  %v3286_v34 = vpack.c.bf16 %v726_v29, %v724_v23 }
 0x127   :  { %v1749_v36 = vmax.f32 %v1252_v32, 0.0 }
 0x128   :  { %1124 = vmatmul.bf16.gmra.mxu2 %v3284_v33  ;;  %1293 = vmatmul.bf16.gmra.mxu3 %v3286_v34 }
 0x129   :  { %v3290_v39 = vpack.c.bf16 %v1749_v36, %v1747_v35 }
 0x12b   :  { %v408_v41 = vpop.f32.mrf.mxu0  ;;  %v577_v42 = vpop.f32.mrf.mxu1 }
 0x12c   :  { %v1085_v43 = vpop.f32.mrf.mxu2  ;;  %v1254_v44 = vpop.f32.mrf.mxu3  ;;  %v727_v58 = vmax.f32 %v408_v41, 0.0  ;;  %v728_v59 = vmax.f32 %v577_v42, 0.0 }
 0x12d   :  { %v1255_v45 = vadd.f32 %v1254_v44, %v1085_v43 }
 0x12e   :  { %2620 = vmatmul.msk.bf16.gmra.mxu0 %vm247_vm1, %v2876_v40  ;;  %2652 = vmatmul.msk.bf16.gmra.mxu1 %vm247_vm1, %v2876_v40 }
 0x12f   :  { %v1751_v7 = vmax.f32 %v1255_v45, 0.0  ;;  %v2878_v45 = vld [vmem:[%s3976_s0 + $0xa0] sm:$0xff] }
 0x133   :  { %v410_v56 = vpop.f32.mrf.mxu0  ;;  %v579_v57 = vpop.f32.mrf.mxu1 }
 0x134   :  { %v729_v60 = vmax.f32 %v410_v56, 0.0  ;;  %v730_v63 = vmax.f32 %v579_v57, 0.0  ;;  %v1087_v0 = vpop.f32.mrf.mxu2  ;;  %v1256_v1 = vpop.f32.mrf.mxu3 }
 0x135   :  { %v1257_v2 = vadd.f32 %v1256_v1, %v1087_v0 }
 0x136   :  { %v3309_v5 = vpack.c.bf16 %v729_v60, %v727_v58  ;;  %v3311_v6 = vpack.c.bf16 %v730_v63, %v728_v59 }
 0x137   :  { %v1753_v8 = vmax.f32 %v1257_v2, 0.0 }
 0x138   :  { %1129 = vmatmul.bf16.gmra.mxu2 %v3309_v5  ;;  %1298 = vmatmul.bf16.gmra.mxu3 %v3311_v6 }
 0x139   :  { %v3321_v13 = vpack.c.bf16 %v1753_v8, %v1751_v7 }
 0x13b   :  { %v413_v17 = vpop.f32.mrf.mxu0  ;;  %v582_v18 = vpop.f32.mrf.mxu1 }
 0x13c   :  { %v1090_v19 = vpop.f32.mrf.mxu2  ;;  %v1259_v20 = vpop.f32.mrf.mxu3  ;;  %v731_v24 = vmax.f32 %v413_v17, 0.0  ;;  %v732_v29 = vmax.f32 %v582_v18, 0.0 }
 0x13d   :  { %v1260_v21 = vadd.f32 %v1259_v20, %v1090_v19 }
 0x13e   :  { %2621 = vmatmul.msk.bf16.gmra.mxu0 %vm247_vm1, %v2877_v16  ;;  %2653 = vmatmul.msk.bf16.gmra.mxu1 %vm247_vm1, %v2877_v16  ;;  %v2879_v16 = vld [vmem:[%s3976_s0 + $0xa8] sm:$0xff] }
 0x13f   :  { %v1755_v42 = vmax.f32 %v1260_v21, 0.0 }
 0x143   :  { %v415_v22 = vpop.f32.mrf.mxu0  ;;  %v584_v23 = vpop.f32.mrf.mxu1 }
 0x144   :  { %v733_v30 = vmax.f32 %v415_v22, 0.0  ;;  %v734_v31 = vmax.f32 %v584_v23, 0.0  ;;  %v1092_v32 = vpop.f32.mrf.mxu2  ;;  %v1261_v35 = vpop.f32.mrf.mxu3 }
 0x145   :  { %v1262_v36 = vadd.f32 %v1261_v35, %v1092_v32 }
 0x146   :  { %v3328_v40 = vpack.c.bf16 %v733_v30, %v731_v24  ;;  %v3330_v41 = vpack.c.bf16 %v734_v31, %v732_v29 }
 0x147   :  { %v1757_v43 = vmax.f32 %v1262_v36, 0.0 }
 0x148   :  { %1134 = vmatmul.bf16.gmra.mxu2 %v3328_v40  ;;  %1303 = vmatmul.bf16.gmra.mxu3 %v3330_v41 }
 0x149   :  { %v3334_v44 = vpack.c.bf16 %v1757_v43, %v1755_v42 }
 0x14b   :  { %v418_v48 = vpop.f32.mrf.mxu0  ;;  %v587_v49 = vpop.f32.mrf.mxu1 }
 0x14c   :  { %v1095_v50 = vpop.f32.mrf.mxu2  ;;  %v1264_v51 = vpop.f32.mrf.mxu3  ;;  %v735_v57 = vmax.f32 %v418_v48, 0.0  ;;  %v736_v58 = vmax.f32 %v587_v49, 0.0 }
 0x14d   :  { %v1265_v52 = vadd.f32 %v1264_v51, %v1095_v50  ;;  %v2880_v50 = vld [vmem:[%s3976_s0 + $0xb0] sm:$0xff] }
 0x14e   :  { %2622 = vmatmul.msk.bf16.gmra.mxu0 %vm247_vm1, %v2878_v45  ;;  %2654 = vmatmul.msk.bf16.gmra.mxu1 %vm247_vm1, %v2878_v45 }
 0x14f   :  { %v1759_v8 = vmax.f32 %v1265_v52, 0.0 }
 0x153   :  { %v420_v53 = vpop.f32.mrf.mxu0  ;;  %v589_v56 = vpop.f32.mrf.mxu1 }
 0x154   :  { %v737_v59 = vmax.f32 %v420_v53, 0.0  ;;  %v738_v60 = vmax.f32 %v589_v56, 0.0  ;;  %v1097_v63 = vpop.f32.mrf.mxu2  ;;  %v1266_v0 = vpop.f32.mrf.mxu3 }
 0x155   :  { %v1267_v1 = vadd.f32 %v1266_v0, %v1097_v63  ;;  %v2908_v63 = vld [vmem:[%s3975_s2 + $0x94] sm:$0xf]  ;;  %v2742_v0 = vld [vmem:[%s3975_s2 + $0x98] sm:$0xf0] }
 0x156   :  { %v3341_v2 = vpack.c.bf16 %v737_v59, %v735_v57  ;;  %v3343_v7 = vpack.c.bf16 %v738_v60, %v736_v58  ;;  %v2892_v58 = vld [vmem:[%s3975_s2 + $0x14] sm:$0xf]  ;;  %v2678_v59 = vld [vmem:[%s3975_s2 + $0x18] sm:$0xf0] }
 0x157   :  { %v1761_v9 = vmax.f32 %v1267_v1, 0.0  ;;  %v2681_v60 = vor.u32 %v2892_v58, %v2678_v59  ;;  %v2745_v1 = vor.u32 %v2908_v63, %v2742_v0 }
 0x158   :  { %1139 = vmatmul.bf16.gmra.mxu2 %v3341_v2  ;;  %1308 = vmatmul.bf16.gmra.mxu3 %v3343_v7 }
 0x159   :  { %v3347_v12 = vpack.c.bf16 %v1761_v9, %v1759_v8  ;;  %1415 = vmatpush.bf16.msrb.mxu0 %v2681_v60  ;;  %1584 = vmatpush.bf16.msrb.mxu1 %v2745_v1 }
 0x15b   :  { %v423_v17 = vpop.f32.mrf.mxu0  ;;  %v592_v18 = vpop.f32.mrf.mxu1 }
 0x15c   :  { %v1100_v19 = vpop.f32.mrf.mxu2  ;;  %v1269_v20 = vpop.f32.mrf.mxu3  ;;  %v739_v24 = vmax.f32 %v423_v17, 0.0  ;;  %v740_v29 = vmax.f32 %v592_v18, 0.0 }
 0x15d   :  { %v1270_v21 = vadd.f32 %v1269_v20, %v1100_v19 }
 0x15e   :  { %2623 = vmatmul.msk.bf16.gmra.mxu0 %vm247_vm1, %v2879_v16  ;;  %2655 = vmatmul.msk.bf16.gmra.mxu1 %vm247_vm1, %v2879_v16 }
 0x15f   :  { %v1763_v45 = vmax.f32 %v1270_v21, 0.0 }
 0x163   :  { %v425_v22 = vpop.f32.mrf.mxu0  ;;  %v594_v23 = vpop.f32.mrf.mxu1 }
 0x164   :  { %v741_v30 = vmax.f32 %v425_v22, 0.0  ;;  %v742_v31 = vmax.f32 %v594_v23, 0.0  ;;  %v1102_v32 = vpop.f32.mrf.mxu2  ;;  %v1271_v35 = vpop.f32.mrf.mxu3 }
 0x165   :  { %v1272_v36 = vadd.f32 %v1271_v35, %v1102_v32  ;;  %v2933_v32 = vld [vmem:[%s3977_s3 + $0x58] sm:$0xff] }
 0x166   :  { %v3354_v42 = vpack.c.bf16 %v741_v30, %v739_v24  ;;  %v3356_v43 = vpack.c.bf16 %v742_v31, %v740_v29  ;;  %v2925_v31 = vld [vmem:[%s3977_s3 + $0x18] sm:$0xff]  ;;  %2240 = vmatpush.bf16.msrb.mxu3 %v2933_v32 }
 0x167   :  { %v1765_v48 = vmax.f32 %v1272_v36, 0.0  ;;  %v2881_v36 = vld [vmem:[%s3976_s0 + $0xb8] sm:$0xff]  ;;  %2071 = vmatpush.bf16.msrb.mxu2 %v2925_v31 }
 0x168   :  { %1144 = vmatmul.bf16.gmra.mxu2 %v3354_v42  ;;  %1313 = vmatmul.bf16.gmra.mxu3 %v3356_v43 }
 0x169   :  { %v3360_v49 = vpack.c.bf16 %v1765_v48, %v1763_v45 }
 0x16b   :  { %v428_v51 = vpop.f32.mrf.mxu0  ;;  %v597_v52 = vpop.f32.mrf.mxu1 }
 0x16c   :  { %v1105_v53 = vpop.f32.mrf.mxu2  ;;  %v1274_v56 = vpop.f32.mrf.mxu3  ;;  %v743_v16 = vmax.f32 %v428_v51, 0.0  ;;  %v744_v17 = vmax.f32 %v597_v52, 0.0 }
 0x16d   :  { %v1275_v57 = vadd.f32 %v1274_v56, %v1105_v53 }
 0x16e   :  { %2624 = vmatmul.msk.bf16.gmra.mxu0 %vm247_vm1, %v2880_v50  ;;  %2656 = vmatmul.msk.bf16.gmra.mxu1 %vm247_vm1, %v2880_v50 }
 0x16f   :  { %v1767_v29 = vmax.f32 %v1275_v57, 0.0 }
 0x173   :  { %v430_v8 = vpop.f32.mrf.mxu0  ;;  %v599_v9 = vpop.f32.mrf.mxu1 }
 0x174   :  { %v745_v18 = vmax.f32 %v430_v8, 0.0  ;;  %v746_v19 = vmax.f32 %v599_v9, 0.0  ;;  %v1107_v20 = vpop.f32.mrf.mxu2  ;;  %v1276_v21 = vpop.f32.mrf.mxu3 }
 0x175   :  { %v1277_v22 = vadd.f32 %v1276_v21, %v1107_v20 }
 0x176   :  { %v3379_v23 = vpack.c.bf16 %v745_v18, %v743_v16  ;;  %v3381_v24 = vpack.c.bf16 %v746_v19, %v744_v17  ;;  %v2882_v19 = vld [vmem:[%s3976_s0 + $0xc0] sm:$0xff] }
 0x177   :  { %v1769_v30 = vmax.f32 %v1277_v22, 0.0 }
 0x178   :  { %1149 = vmatmul.bf16.gmra.mxu2 %v3379_v23  ;;  %1318 = vmatmul.bf16.gmra.mxu3 %v3381_v24 }
 0x179   :  { %v3391_v35 = vpack.c.bf16 %v1769_v30, %v1767_v29 }
 0x17b   :  { %v433_v45 = vpop.f32.mrf.mxu0  ;;  %v602_v48 = vpop.f32.mrf.mxu1 }
 0x17c   :  { %v1110_v50 = vpop.f32.mrf.mxu2  ;;  %v1279_v51 = vpop.f32.mrf.mxu3  ;;  %v747_v57 = vmax.f32 %v433_v45, 0.0  ;;  %v748_v58 = vmax.f32 %v602_v48, 0.0 }
 0x17d   :  { %v1280_v52 = vadd.f32 %v1279_v51, %v1110_v50 }
 0x17e   :  { %2625 = vmatmul.msk.bf16.gmra.mxu0 %vm247_vm1, %v2881_v36  ;;  %2657 = vmatmul.msk.bf16.gmra.mxu1 %vm247_vm1, %v2881_v36 }
 0x17f   :  { %v1771_v16 = vmax.f32 %v1280_v52, 0.0 }
 0x183   :  { %v435_v53 = vpop.f32.mrf.mxu0  ;;  %v604_v56 = vpop.f32.mrf.mxu1 }
 0x184   :  { %v749_v59 = vmax.f32 %v435_v53, 0.0  ;;  %v750_v60 = vmax.f32 %v604_v56, 0.0  ;;  %v1112_v63 = vpop.f32.mrf.mxu2  ;;  %v1281_v0 = vpop.f32.mrf.mxu3 }
 0x185   :  { %v1282_v1 = vadd.f32 %v1281_v0, %v1112_v63  ;;  %v2883_v63 = vld [vmem:[%s3976_s0 + $0xc8] sm:$0xff] }
 0x186   :  { %v3398_v8 = vpack.c.bf16 %v749_v59, %v747_v57  ;;  %v3400_v9 = vpack.c.bf16 %v750_v60, %v748_v58 }
 0x187   :  { %v1773_v17 = vmax.f32 %v1282_v1, 0.0 }
 0x188   :  { %1154 = vmatmul.bf16.gmra.mxu2 %v3398_v8  ;;  %1323 = vmatmul.bf16.gmra.mxu3 %v3400_v9 }
 0x189   :  { %v3404_v18 = vpack.c.bf16 %v1773_v17, %v1771_v16 }
 0x18b   :  { %v438_v20 = vpop.f32.mrf.mxu0  ;;  %v607_v21 = vpop.f32.mrf.mxu1 }
 0x18c   :  { %v1115_v22 = vpop.f32.mrf.mxu2  ;;  %v1284_v29 = vpop.f32.mrf.mxu3  ;;  %v751_v36 = vmax.f32 %v438_v20, 0.0  ;;  %v752_v45 = vmax.f32 %v607_v21, 0.0 }
 0x18d   :  { %v1285_v30 = vadd.f32 %v1284_v29, %v1115_v22 }
 0x18e   :  { %2626 = vmatmul.msk.bf16.gmra.mxu0 %vm247_vm1, %v2882_v19  ;;  %2658 = vmatmul.msk.bf16.gmra.mxu1 %vm247_vm1, %v2882_v19 }
 0x18f   :  { %v1775_v58 = vmax.f32 %v1285_v30, 0.0 }
 0x193   :  { %v440_v31 = vpop.f32.mrf.mxu0  ;;  %v609_v32 = vpop.f32.mrf.mxu1 }
 0x194   :  { %v753_v48 = vmax.f32 %v440_v31, 0.0  ;;  %v754_v50 = vmax.f32 %v609_v32, 0.0  ;;  %v1117_v51 = vpop.f32.mrf.mxu2  ;;  %v1286_v52 = vpop.f32.mrf.mxu3 }
 0x195   :  { %v1287_v53 = vadd.f32 %v1286_v52, %v1117_v51 }
 0x196   :  { %v3411_v56 = vpack.c.bf16 %v753_v48, %v751_v36  ;;  %v3413_v57 = vpack.c.bf16 %v754_v50, %v752_v45 }
 0x197   :  { %v1777_v59 = vmax.f32 %v1287_v53, 0.0 }
 0x198   :  { %1159 = vmatmul.bf16.gmra.mxu2 %v3411_v56  ;;  %1328 = vmatmul.bf16.gmra.mxu3 %v3413_v57 }
 0x199   :  { %v3417_v60 = vpack.c.bf16 %v1777_v59, %v1775_v58  ;;  %v2884_v58 = vld [vmem:[%s3976_s0 + $0xd0] sm:$0xff] }
 0x19b   :  { %v443_v0 = vpop.f32.mrf.mxu0  ;;  %v612_v1 = vpop.f32.mrf.mxu1 }
 0x19c   :  { %v1120_v16 = vpop.f32.mrf.mxu2  ;;  %v1289_v17 = vpop.f32.mrf.mxu3  ;;  %v755_v22 = vmax.f32 %v443_v0, 0.0  ;;  %v756_v29 = vmax.f32 %v612_v1, 0.0 }
 0x19d   :  { %v1290_v19 = vadd.f32 %v1289_v17, %v1120_v16  ;;  %v2890_v17 = vld [vmem:[%s3975_s2 + $0x4] sm:$0xf] }
 0x19e   :  { %2627 = vmatmul.msk.bf16.gmra.mxu0 %vm247_vm1, %v2883_v63  ;;  %2659 = vmatmul.msk.bf16.gmra.mxu1 %vm247_vm1, %v2883_v63 }
 0x19f   :  { %v1779_v51 = vmax.f32 %v1290_v19, 0.0  ;;  %v2670_v19 = vld [vmem:[%s3975_s2 + $0x8] sm:$0xf0] }
 0x1a3   :  { %v445_v20 = vpop.f32.mrf.mxu0  ;;  %v614_v21 = vpop.f32.mrf.mxu1 }
 0x1a4   :  { %v757_v30 = vmax.f32 %v445_v20, 0.0  ;;  %v758_v31 = vmax.f32 %v614_v21, 0.0  ;;  %v1122_v32 = vpop.f32.mrf.mxu2  ;;  %v1291_v36 = vpop.f32.mrf.mxu3  ;;  %v2673_v20 = vor.u32 %v2890_v17, %v2670_v19  ;;  %v2906_v21 = vld [vmem:[%s3975_s2 + $0x84] sm:$0xf] }
 0x1a5   :  { %v1292_v45 = vadd.f32 %v1291_v36, %v1122_v32 }
 0x1a6   :  { %v3424_v48 = vpack.c.bf16 %v757_v30, %v755_v22  ;;  %v3426_v50 = vpack.c.bf16 %v758_v31, %v756_v29  ;;  %v2734_v22 = vld [vmem:[%s3975_s2 + $0x88] sm:$0xf0]  ;;  %1416 = vmatpush.bf16.msrb.mxu0 %v2673_v20 }
 0x1a7   :  { %v1781_v52 = vmax.f32 %v1292_v45, 0.0  ;;  %v2737_v29 = vor.u32 %v2906_v21, %v2734_v22  ;;  %v2885_v21 = vld [vmem:[%s3976_s0 + $0xd8] sm:$0xff] }
 0x1a8   :  { %4000 = vst [vmem:[#allocation2_spill] sm:$0xff] %v3426_v50  ;;  %1164 = vmatmul.bf16.gmra.mxu2 %v3424_v48  ;;  %1333 = vmatmul.bf16.gmra.mxu3 %v3426_v50 }
 0x1a9   :  { %v3430_v53 = vpack.c.bf16 %v1781_v52, %v1779_v51  ;;  %1585 = vmatpush.bf16.msrb.mxu1 %v2737_v29 }
 0x1ab   :  { %v448_v59 = vpop.f32.mrf.mxu0  ;;  %v617_v63 = vpop.f32.mrf.mxu1 }
 0x1ac   :  { %v1125_v0 = vpop.f32.mrf.mxu2  ;;  %v1294_v1 = vpop.f32.mrf.mxu3  ;;  %v759_v32 = vmax.f32 %v448_v59, 0.0  ;;  %v760_v36 = vmax.f32 %v617_v63, 0.0  ;;  %v2924_v59 = vld [vmem:[%s3977_s3 + $0x10] sm:$0xff] }
 0x1ad   :  { %v1295_v16 = vadd.f32 %v1294_v1, %v1125_v0  ;;  %v2932_v63 = vld [vmem:[%s3977_s3 + $0x50] sm:$0xff]  ;;  %2072 = vmatpush.bf16.msrb.mxu2 %v2924_v59 }
 0x1ae   :  { %2628 = vmatmul.msk.bf16.gmra.mxu0 %vm247_vm1, %v2884_v58  ;;  %2660 = vmatmul.msk.bf16.gmra.mxu1 %vm247_vm1, %v2884_v58 }
 0x1af   :  { %v1783_v19 = vmax.f32 %v1295_v16, 0.0  ;;  %2241 = vmatpush.bf16.msrb.mxu3 %v2932_v63 }
 0x1b3   :  { %v450_v30 = vpop.f32.mrf.mxu0  ;;  %v619_v31 = vpop.f32.mrf.mxu1 }
 0x1b4   :  { %v761_v45 = vmax.f32 %v450_v30, 0.0  ;;  %v762_v51 = vmax.f32 %v619_v31, 0.0  ;;  %v1127_v52 = vpop.f32.mrf.mxu2  ;;  %v1296_v58 = vpop.f32.mrf.mxu3 }
 0x1b5   :  { %v1297_v0 = vadd.f32 %v1296_v58, %v1127_v52 }
 0x1b6   :  { %v3449_v1 = vpack.c.bf16 %v761_v45, %v759_v32  ;;  %v3451_v17 = vpack.c.bf16 %v762_v51, %v760_v36 }
 0x1b7   :  { %v1785_v50 = vmax.f32 %v1297_v0, 0.0 }
 0x1b8   :  { %4001 = vst [vmem:[#allocation3_spill] sm:$0xff] %v3449_v1  ;;  %1169 = vmatmul.bf16.gmra.mxu2 %v3449_v1  ;;  %1338 = vmatmul.bf16.gmra.mxu3 %v3451_v17 }
 0x1b9   :  { %4002 = vst [vmem:[#allocation4_spill] sm:$0xff] %v3451_v17  ;;  %v3461_v20 = vpack.c.bf16 %v1785_v50, %v1783_v19 }
 0x1bb   :  { %v453_v16 = vpop.f32.mrf.mxu0  ;;  %v622_v22 = vpop.f32.mrf.mxu1 }
 0x1bc   :  { %v1130_v29 = vpop.f32.mrf.mxu2  ;;  %v1299_v30 = vpop.f32.mrf.mxu3  ;;  %v763_v45 = vmax.f32 %v453_v16, 0.0  ;;  %v764_v50 = vmax.f32 %v622_v22, 0.0  ;;  %v2886_v16 = vld [vmem:[%s3976_s0 + $0xe0] sm:$0xff] }
 0x1bd   :  { %v1300_v31 = vadd.f32 %v1299_v30, %v1130_v29 }
 0x1be   :  { %2629 = vmatmul.msk.bf16.gmra.mxu0 %vm247_vm1, %v2885_v21  ;;  %2661 = vmatmul.msk.bf16.gmra.mxu1 %vm247_vm1, %v2885_v21 }
 0x1bf   :  { %v1787_v17 = vmax.f32 %v1300_v31, 0.0 }
 0x1c3   :  { %v455_v32 = vpop.f32.mrf.mxu0  ;;  %v624_v36 = vpop.f32.mrf.mxu1 }
 0x1c4   :  { %v765_v51 = vmax.f32 %v455_v32, 0.0  ;;  %v766_v52 = vmax.f32 %v624_v36, 0.0  ;;  %v1132_v58 = vpop.f32.mrf.mxu2  ;;  %v1301_v0 = vpop.f32.mrf.mxu3 }
 0x1c5   :  { %v1302_v19 = vadd.f32 %v1301_v0, %v1132_v58 }
 0x1c6   :  { %v3468_v59 = vpack.c.bf16 %v765_v51, %v763_v45  ;;  %v3470_v63 = vpack.c.bf16 %v766_v52, %v764_v50 }
 0x1c7   :  { %v1789_v1 = vmax.f32 %v1302_v19, 0.0 }
 0x1c8   :  { %4003 = vst [vmem:[#allocation5_spill] sm:$0xff] %v3468_v59  ;;  %1174 = vmatmul.bf16.gmra.mxu2 %v3468_v59  ;;  %1343 = vmatmul.bf16.gmra.mxu3 %v3470_v63 }
 0x1c9   :  { %4004 = vst [vmem:[#allocation6_spill] sm:$0xff] %v3470_v63  ;;  %v3474_v21 = vpack.c.bf16 %v1789_v1, %v1787_v17 }
 0x1cb   :  { %4005 = vst [vmem:[#allocation7_spill] sm:$0xff] %v3474_v21  ;;  %v458_v22 = vpop.f32.mrf.mxu0  ;;  %v627_v29 = vpop.f32.mrf.mxu1 }
 0x1cc   :  { %v1135_v30 = vpop.f32.mrf.mxu2  ;;  %v1304_v32 = vpop.f32.mrf.mxu3  ;;  %v767_v50 = vmax.f32 %v458_v22, 0.0  ;;  %v768_v51 = vmax.f32 %v627_v29, 0.0  ;;  %v2887_v22 = vld [vmem:[%s3976_s0 + $0xe8] sm:$0xff] }
 0x1cd   :  { %v1305_v36 = vadd.f32 %v1304_v32, %v1135_v30 }
 0x1ce   :  { %2630 = vmatmul.msk.bf16.gmra.mxu0 %vm247_vm1, %v2886_v16  ;;  %2662 = vmatmul.msk.bf16.gmra.mxu1 %vm247_vm1, %v2886_v16 }
 0x1cf   :  { %v1791_v59 = vmax.f32 %v1305_v36, 0.0 }
 0x1d3   :  { %v460_v31 = vpop.f32.mrf.mxu0  ;;  %v629_v45 = vpop.f32.mrf.mxu1 }
 0x1d4   :  { %v769_v52 = vmax.f32 %v460_v31, 0.0  ;;  %v770_v1 = vmax.f32 %v629_v45, 0.0  ;;  %v1137_v17 = vpop.f32.mrf.mxu2  ;;  %v1306_v58 = vpop.f32.mrf.mxu3 }
 0x1d5   :  { %v1307_v0 = vadd.f32 %v1306_v58, %v1137_v17 }
 0x1d6   :  { %v3481_v19 = vpack.c.bf16 %v769_v52, %v767_v50  ;;  %v3483_v63 = vpack.c.bf16 %v770_v1, %v768_v51 }
 0x1d7   :  { %v1793_v21 = vmax.f32 %v1307_v0, 0.0 }
 0x1d8   :  { %4006 = vst [vmem:[#allocation8_spill] sm:$0xff] %v3481_v19  ;;  %1179 = vmatmul.bf16.gmra.mxu2 %v3481_v19  ;;  %1348 = vmatmul.bf16.gmra.mxu3 %v3483_v63 }
 0x1d9   :  { %4007 = vst [vmem:[#allocation9_spill] sm:$0xff] %v3483_v63  ;;  %v3487_v16 = vpack.c.bf16 %v1793_v21, %v1791_v59 }
 0x1db   :  { %4008 = vst [vmem:[#allocation10_spill] sm:$0xff] %v3487_v16  ;;  %v463_v29 = vpop.f32.mrf.mxu0  ;;  %v632_v30 = vpop.f32.mrf.mxu1 }
 0x1dc   :  { %v1140_v32 = vpop.f32.mrf.mxu2  ;;  %v1309_v31 = vpop.f32.mrf.mxu3  ;;  %v771_v51 = vmax.f32 %v463_v29, 0.0  ;;  %v772_v52 = vmax.f32 %v632_v30, 0.0  ;;  %v2888_v29 = vld [vmem:[%s3976_s0 + $0xf0] sm:$0xff] }
 0x1dd   :  { %v1310_v45 = vadd.f32 %v1309_v31, %v1140_v32 }
 0x1de   :  { %2631 = vmatmul.msk.bf16.gmra.mxu0 %vm247_vm1, %v2887_v22  ;;  %2663 = vmatmul.msk.bf16.gmra.mxu1 %vm247_vm1, %v2887_v22 }
 0x1df   :  { %v1795_v19 = vmax.f32 %v1310_v45, 0.0 }
 0x1e3   :  { %v465_v36 = vpop.f32.mrf.mxu0  ;;  %v634_v50 = vpop.f32.mrf.mxu1 }
 0x1e4   :  { %v773_v1 = vmax.f32 %v465_v36, 0.0  ;;  %v774_v59 = vmax.f32 %v634_v50, 0.0  ;;  %v1142_v21 = vpop.f32.mrf.mxu2  ;;  %v1311_v17 = vpop.f32.mrf.mxu3 }
 0x1e5   :  { %v1312_v58 = vadd.f32 %v1311_v17, %v1142_v21 }
 0x1e6   :  { %v3494_v0 = vpack.c.bf16 %v773_v1, %v771_v51  ;;  %v3496_v63 = vpack.c.bf16 %v774_v59, %v772_v52 }
 0x1e7   :  { %v1797_v16 = vmax.f32 %v1312_v58, 0.0 }
 0x1e8   :  { %4009 = vst [vmem:[#allocation11_spill] sm:$0xff] %v3494_v0  ;;  %1184 = vmatmul.bf16.gmra.mxu2 %v3494_v0  ;;  %1353 = vmatmul.bf16.gmra.mxu3 %v3496_v63 }
 0x1e9   :  { %4010 = vst [vmem:[#allocation12_spill] sm:$0xff] %v3496_v63  ;;  %v3500_v22 = vpack.c.bf16 %v1797_v16, %v1795_v19 }
 0x1eb   :  { %4011 = vst [vmem:[#allocation13_spill] sm:$0xff] %v3500_v22  ;;  %v468_v30 = vpop.f32.mrf.mxu0  ;;  %v637_v32 = vpop.f32.mrf.mxu1 }
 0x1ec   :  { %v1145_v31 = vpop.f32.mrf.mxu2  ;;  %v1314_v36 = vpop.f32.mrf.mxu3  ;;  %v775_v52 = vmax.f32 %v468_v30, 0.0  ;;  %v776_v1 = vmax.f32 %v637_v32, 0.0  ;;  %v2931_v30 = vld [vmem:[%s3977_s3 + $0x48] sm:$0xff] }
 0x1ed   :  { %v1315_v50 = vadd.f32 %v1314_v36, %v1145_v31  ;;  %v2889_v31 = vld [vmem:[%s3976_s0 + $0xf8] sm:$0xff]  ;;  %2242 = vmatpush.bf16.msrb.mxu3 %v2931_v30 }
 0x1ee   :  { %2632 = vmatmul.msk.bf16.gmra.mxu0 %vm247_vm1, %v2888_v29  ;;  %2664 = vmatmul.msk.bf16.gmra.mxu1 %vm247_vm1, %v2888_v29  ;;  %v2923_v29 = vld [vmem:[%s3977_s3 + $0x8] sm:$0xff] }
 0x1ef   :  { %v1799_v0 = vmax.f32 %v1315_v50, 0.0  ;;  %2073 = vmatpush.bf16.msrb.mxu2 %v2923_v29 }
 0x1f3   :  { %v470_v45 = vpop.f32.mrf.mxu0  ;;  %v639_v51 = vpop.f32.mrf.mxu1 }
 0x1f4   :  { %v777_v59 = vmax.f32 %v470_v45, 0.0  ;;  %v778_v19 = vmax.f32 %v639_v51, 0.0  ;;  %v1147_v16 = vpop.f32.mrf.mxu2  ;;  %v1316_v21 = vpop.f32.mrf.mxu3 }
 0x1f5   :  { %v1317_v17 = vadd.f32 %v1316_v21, %v1147_v16 }
 0x1f6   :  { %v3507_v58 = vpack.c.bf16 %v777_v59, %v775_v52  ;;  %v3509_v63 = vpack.c.bf16 %v778_v19, %v776_v1 }
 0x1f7   :  { %v1801_v22 = vmax.f32 %v1317_v17, 0.0 }
 0x1f8   :  { %4012 = vst [vmem:[#allocation14_spill] sm:$0xff] %v3507_v58  ;;  %1189 = vmatmul.bf16.gmra.mxu2 %v3507_v58  ;;  %1358 = vmatmul.bf16.gmra.mxu3 %v3509_v63 }
 0x1f9   :  { %4013 = vst [vmem:[#allocation15_spill] sm:$0xff] %v3509_v63  ;;  %v3519_v32 = vpack.c.bf16 %v1801_v22, %v1799_v0 }
 0x1fb   :  { %4014 = vst [vmem:[#allocation16_spill] sm:$0xff] %v3519_v32  ;;  %v473_v36 = vpop.f32.mrf.mxu0  ;;  %v642_v50 = vpop.f32.mrf.mxu1 }
 0x1fc   :  { %v1150_v45 = vpop.f32.mrf.mxu2  ;;  %v1319_v51 = vpop.f32.mrf.mxu3  ;;  %v779_v19 = vmax.f32 %v473_v36, 0.0  ;;  %v780_v0 = vmax.f32 %v642_v50, 0.0 }
 0x1fd   :  { %v1320_v52 = vadd.f32 %v1319_v51, %v1150_v45 }
 0x1fe   :  { %2633 = vmatmul.msk.bf16.gmra.mxu0 %vm247_vm1, %v2889_v31  ;;  %2665 = vmatmul.msk.bf16.gmra.mxu1 %vm247_vm1, %v2889_v31 }
 0x1ff   :  { %v1803_v58 = vmax.f32 %v1320_v52, 0.0 }
 0x203   :  { %v475_v1 = vpop.f32.mrf.mxu0  ;;  %v644_v59 = vpop.f32.mrf.mxu1 }
 0x204   :  { %v781_v22 = vmax.f32 %v475_v1, 0.0  ;;  %v782_v16 = vmax.f32 %v644_v59, 0.0  ;;  %v1152_v21 = vpop.f32.mrf.mxu2  ;;  %v1321_v17 = vpop.f32.mrf.mxu3 }
 0x205   :  { %v1322_v63 = vadd.f32 %v1321_v17, %v1152_v21 }
 0x206   :  { %v3526_v29 = vpack.c.bf16 %v781_v22, %v779_v19  ;;  %v3528_v30 = vpack.c.bf16 %v782_v16, %v780_v0 }
 0x207   :  { %v1805_v32 = vmax.f32 %v1322_v63, 0.0 }
 0x208   :  { %4015 = vst [vmem:[#allocation17_spill] sm:$0xff] %v3526_v29  ;;  %1194 = vmatmul.bf16.gmra.mxu2 %v3526_v29  ;;  %1363 = vmatmul.bf16.gmra.mxu3 %v3528_v30 }
 0x209   :  { %4016 = vst [vmem:[#allocation18_spill] sm:$0xff] %v3528_v30  ;;  %v3532_v31 = vpack.c.bf16 %v1805_v32, %v1803_v58 }
 0x20b   :  { %v478_v45 = vpop.f32.mrf.mxu0  ;;  %v647_v36 = vpop.f32.mrf.mxu1 }
 0x20c   :  { %v1155_v50 = vpop.f32.mrf.mxu2  ;;  %v1324_v51 = vpop.f32.mrf.mxu3  ;;  %v783_v0 = vmax.f32 %v478_v45, 0.0  ;;  %v784_v52 = vmax.f32 %v647_v36, 0.0 }
 0x20d   :  { %v1325_v1 = vadd.f32 %v1324_v51, %v1155_v50 }
 0x20e   :  { %1417 = vmatmul.bf16.vlgmr.msrb.gmra.mxu0 %v3149_v26  ;;  %1586 = vmatmul.bf16.vlgmr.msrb.gmra.mxu1 %v3151_v27 }
 0x20f   :  { %v1807_v30 = vmax.f32 %v1325_v1, 0.0 }
 0x213   :  { %v480_v59 = vpop.f32.mrf.mxu0  ;;  %v649_v19 = vpop.f32.mrf.mxu1 }
 0x214   :  { %v785_v63 = vmax.f32 %v480_v59, 0.0  ;;  %v786_v22 = vmax.f32 %v649_v19, 0.0  ;;  %v1157_v16 = vpop.f32.mrf.mxu2  ;;  %v1326_v21 = vpop.f32.mrf.mxu3 }
 0x215   :  { %v1327_v17 = vadd.f32 %v1326_v21, %v1157_v16 }
 0x216   :  { %v3536_v58 = vpack.c.bf16 %v785_v63, %v783_v0  ;;  %v3538_v32 = vpack.c.bf16 %v786_v22, %v784_v52 }
 0x217   :  { %v1809_v29 = vmax.f32 %v1327_v17, 0.0 }
 0x218   :  { %4017 = vst [vmem:[#allocation19_spill] sm:$0xff] %v3538_v32  ;;  %1199 = vmatmul.bf16.gmra.mxu2 %v3536_v58  ;;  %1368 = vmatmul.bf16.gmra.mxu3 %v3538_v32 }
 0x219   :  { %v3542_v26 = vpack.c.bf16 %v1809_v29, %v1807_v30 }
 0x21b   :  { %v483_v27 = vpop.f32.mrf.mxu0  ;;  %v652_v45 = vpop.f32.mrf.mxu1 }
 0x21c   :  { %v1160_v36 = vpop.f32.mrf.mxu2  ;;  %v1329_v50 = vpop.f32.mrf.mxu3  ;;  %v787_v0 = vmax.f32 %v483_v27, 0.0  ;;  %v788_v1 = vmax.f32 %v652_v45, 0.0 }
 0x21d   :  { %v1330_v51 = vadd.f32 %v1329_v50, %v1160_v36 }
 0x21e   :  { %1422 = vmatmul.bf16.gmra.mxu0 %v3160_v37  ;;  %1591 = vmatmul.bf16.gmra.mxu1 %v3162_v38 }
 0x21f   :  { %v1811_v17 = vmax.f32 %v1330_v51, 0.0 }
 0x223   :  { %v485_v59 = vpop.f32.mrf.mxu0  ;;  %v654_v19 = vpop.f32.mrf.mxu1 }
 0x224   :  { %v789_v52 = vmax.f32 %v485_v59, 0.0  ;;  %v790_v63 = vmax.f32 %v654_v19, 0.0  ;;  %v1162_v22 = vpop.f32.mrf.mxu2  ;;  %v1331_v16 = vpop.f32.mrf.mxu3 }
 0x225   :  { %v1332_v21 = vadd.f32 %v1331_v16, %v1162_v22 }
 0x226   :  { %v3546_v29 = vpack.c.bf16 %v789_v52, %v787_v0  ;;  %v3548_v30 = vpack.c.bf16 %v790_v63, %v788_v1 }
 0x227   :  { %v1813_v32 = vmax.f32 %v1332_v21, 0.0 }
 0x228   :  { %4018 = vst [vmem:[#allocation20_spill] sm:$0xff] %v3548_v30  ;;  %1204 = vmatmul.bf16.gmra.mxu2 %v3546_v29  ;;  %1373 = vmatmul.bf16.gmra.mxu3 %v3548_v30 }
 0x229   :  { %v3552_v37 = vpack.c.bf16 %v1813_v32, %v1811_v17 }
 0x22b   :  { %v488_v38 = vpop.f32.mrf.mxu0  ;;  %v657_v27 = vpop.f32.mrf.mxu1 }
 0x22c   :  { %v1165_v45 = vpop.f32.mrf.mxu2  ;;  %v1334_v36 = vpop.f32.mrf.mxu3  ;;  %v791_v0 = vmax.f32 %v488_v38, 0.0  ;;  %v792_v51 = vmax.f32 %v657_v27, 0.0 }
 0x22d   :  { %v1335_v50 = vadd.f32 %v1334_v36, %v1165_v45 }
 0x22e   :  { %1427 = vmatmul.bf16.gmra.mxu0 %v3183_v54  ;;  %1596 = vmatmul.bf16.gmra.mxu1 %v3185_v55  ;;  %v2922_v54 = vld [vmem:[%s3977_s3] sm:$0xff] }
 0x22f   :  { %v1815_v17 = vmax.f32 %v1335_v50, 0.0  ;;  %v2930_v55 = vld [vmem:[%s3977_s3 + $0x40] sm:$0xff]  ;;  %2074 = vmatpush.bf16.msrb.mxu2 %v2922_v54 }
 0x230   :  { %2243 = vmatpush.bf16.msrb.mxu3 %v2930_v55 }
 0x233   :  { %v490_v59 = vpop.f32.mrf.mxu0  ;;  %v659_v19 = vpop.f32.mrf.mxu1 }
 0x234   :  { %v793_v1 = vmax.f32 %v490_v59, 0.0  ;;  %v794_v52 = vmax.f32 %v659_v19, 0.0  ;;  %v1167_v63 = vpop.f32.mrf.mxu2  ;;  %v1336_v22 = vpop.f32.mrf.mxu3 }
 0x235   :  { %v1337_v16 = vadd.f32 %v1336_v22, %v1167_v63 }
 0x236   :  { %v3556_v32 = vpack.c.bf16 %v793_v1, %v791_v0  ;;  %v3558_v21 = vpack.c.bf16 %v794_v52, %v792_v51 }
 0x237   :  { %v1817_v30 = vmax.f32 %v1337_v16, 0.0 }
 0x238   :  { %4019 = vst [vmem:[#allocation21_spill] sm:$0xff] %v3558_v21  ;;  %1209 = vmatmul.bf16.gmra.mxu2 %v3556_v32  ;;  %1378 = vmatmul.bf16.gmra.mxu3 %v3558_v21 }
 0x239   :  { %v3568_v38 = vpack.c.bf16 %v1817_v30, %v1815_v17 }
 0x23b   :  { %v493_v27 = vpop.f32.mrf.mxu0  ;;  %v662_v45 = vpop.f32.mrf.mxu1 }
 0x23c   :  { %v1170_v36 = vpop.f32.mrf.mxu2  ;;  %v1339_v50 = vpop.f32.mrf.mxu3  ;;  %v795_v51 = vmax.f32 %v493_v27, 0.0  ;;  %v796_v1 = vmax.f32 %v662_v45, 0.0 }
 0x23d   :  { %v1340_v59 = vadd.f32 %v1339_v50, %v1170_v36 }
 0x23e   :  { %1432 = vmatmul.bf16.gmra.mxu0 %v3200_v3  ;;  %1601 = vmatmul.bf16.gmra.mxu1 %v3202_v4 }
 0x23f   :  { %v1819_v55 = vmax.f32 %v1340_v59, 0.0 }
 0x243   :  { %v495_v19 = vpop.f32.mrf.mxu0  ;;  %v664_v0 = vpop.f32.mrf.mxu1 }
 0x244   :  { %v797_v52 = vmax.f32 %v495_v19, 0.0  ;;  %v798_v63 = vmax.f32 %v664_v0, 0.0  ;;  %v1172_v22 = vpop.f32.mrf.mxu2  ;;  %v1341_v30 = vpop.f32.mrf.mxu3 }
 0x245   :  { %v1342_v16 = vadd.f32 %v1341_v30, %v1172_v22 }
 0x246   :  { %v3572_v17 = vpack.c.bf16 %v797_v52, %v795_v51  ;;  %v3574_v54 = vpack.c.bf16 %v798_v63, %v796_v1 }
 0x247   :  { %v1821_v21 = vmax.f32 %v1342_v16, 0.0 }
 0x248   :  { %4020 = vst [vmem:[#allocation22_spill] sm:$0xff] %v3574_v54  ;;  %1214 = vmatmul.bf16.gmra.mxu2 %v3572_v17  ;;  %1383 = vmatmul.bf16.gmra.mxu3 %v3574_v54 }
 0x249   :  { %v3578_v3 = vpack.c.bf16 %v1821_v21, %v1819_v55 }
 0x24b   :  { %v498_v4 = vpop.f32.mrf.mxu0  ;;  %v667_v27 = vpop.f32.mrf.mxu1 }
 0x24c   :  { %v1175_v45 = vpop.f32.mrf.mxu2  ;;  %v1344_v36 = vpop.f32.mrf.mxu3  ;;  %v799_v51 = vmax.f32 %v498_v4, 0.0  ;;  %v800_v59 = vmax.f32 %v667_v27, 0.0 }
 0x24d   :  { %v1345_v50 = vadd.f32 %v1344_v36, %v1175_v45 }
 0x24e   :  { %1437 = vmatmul.bf16.gmra.mxu0 %v3211_v14  ;;  %1606 = vmatmul.bf16.gmra.mxu1 %v3213_v15 }
 0x24f   :  { %v1823_v55 = vmax.f32 %v1345_v50, 0.0 }
 0x253   :  { %v500_v19 = vpop.f32.mrf.mxu0  ;;  %v669_v0 = vpop.f32.mrf.mxu1 }
 0x254   :  { %v801_v1 = vmax.f32 %v500_v19, 0.0  ;;  %v802_v52 = vmax.f32 %v669_v0, 0.0  ;;  %v1177_v63 = vpop.f32.mrf.mxu2  ;;  %v1346_v22 = vpop.f32.mrf.mxu3 }
 0x255   :  { %v1347_v30 = vadd.f32 %v1346_v22, %v1177_v63 }
 0x256   :  { %v3582_v21 = vpack.c.bf16 %v801_v1, %v799_v51  ;;  %v3584_v16 = vpack.c.bf16 %v802_v52, %v800_v59 }
 0x257   :  { %v1825_v54 = vmax.f32 %v1347_v30, 0.0 }
 0x258   :  { %4021 = vst [vmem:[#allocation23_spill] sm:$0xff] %v3584_v16  ;;  %1219 = vmatmul.bf16.gmra.mxu2 %v3582_v21  ;;  %1388 = vmatmul.bf16.gmra.mxu3 %v3584_v16 }
 0x259   :  { %v3588_v14 = vpack.c.bf16 %v1825_v54, %v1823_v55 }
 0x25b   :  { %v503_v15 = vpop.f32.mrf.mxu0  ;;  %v672_v4 = vpop.f32.mrf.mxu1 }
 0x25c   :  { %v1180_v27 = vpop.f32.mrf.mxu2  ;;  %v1349_v45 = vpop.f32.mrf.mxu3  ;;  %v803_v51 = vmax.f32 %v503_v15, 0.0  ;;  %v804_v50 = vmax.f32 %v672_v4, 0.0 }
 0x25d   :  { %v1350_v36 = vadd.f32 %v1349_v45, %v1180_v27 }
 0x25e   :  { %1442 = vmatmul.bf16.gmra.mxu0 %v3222_v25  ;;  %1611 = vmatmul.bf16.gmra.mxu1 %v3224_v28 }
 0x25f   :  { %v1827_v55 = vmax.f32 %v1350_v36, 0.0 }
 0x263   :  { %v505_v19 = vpop.f32.mrf.mxu0  ;;  %v674_v0 = vpop.f32.mrf.mxu1 }
 0x264   :  { %v805_v59 = vmax.f32 %v505_v19, 0.0  ;;  %v806_v1 = vmax.f32 %v674_v0, 0.0  ;;  %v1182_v52 = vpop.f32.mrf.mxu2  ;;  %v1351_v63 = vpop.f32.mrf.mxu3 }
 0x265   :  { %v1352_v22 = vadd.f32 %v1351_v63, %v1182_v52 }
 0x266   :  { %v3592_v54 = vpack.c.bf16 %v805_v59, %v803_v51  ;;  %v3594_v30 = vpack.c.bf16 %v806_v1, %v804_v50 }
 0x267   :  { %v1829_v16 = vmax.f32 %v1352_v22, 0.0 }
 0x268   :  { %4022 = vst [vmem:[#allocation24_spill] sm:$0xff] %v3594_v30  ;;  %1224 = vmatmul.bf16.gmra.mxu2 %v3592_v54  ;;  %1393 = vmatmul.bf16.gmra.mxu3 %v3594_v30 }
 0x269   :  { %v3598_v25 = vpack.c.bf16 %v1829_v16, %v1827_v55 }
 0x26b   :  { %v508_v28 = vpop.f32.mrf.mxu0  ;;  %v677_v15 = vpop.f32.mrf.mxu1 }
 0x26c   :  { %v1185_v4 = vpop.f32.mrf.mxu2  ;;  %v1354_v27 = vpop.f32.mrf.mxu3  ;;  %v807_v51 = vmax.f32 %v508_v28, 0.0  ;;  %v808_v36 = vmax.f32 %v677_v15, 0.0 }
 0x26d   :  { %v1355_v45 = vadd.f32 %v1354_v27, %v1185_v4 }
 0x26e   :  { %1447 = vmatmul.bf16.gmra.mxu0 %v3245_v46  ;;  %1616 = vmatmul.bf16.gmra.mxu1 %v3247_v47 }
 0x26f   :  { %v1831_v55 = vmax.f32 %v1355_v45, 0.0 }
 0x273   :  { %v510_v19 = vpop.f32.mrf.mxu0  ;;  %v679_v0 = vpop.f32.mrf.mxu1 }
 0x274   :  { %v809_v50 = vmax.f32 %v510_v19, 0.0  ;;  %v810_v59 = vmax.f32 %v679_v0, 0.0  ;;  %v1187_v1 = vpop.f32.mrf.mxu2  ;;  %v1356_v52 = vpop.f32.mrf.mxu3 }
 0x275   :  { %v1357_v63 = vadd.f32 %v1356_v52, %v1187_v1 }
 0x276   :  { %v3602_v16 = vpack.c.bf16 %v809_v50, %v807_v51  ;;  %v3604_v22 = vpack.c.bf16 %v810_v59, %v808_v36 }
 0x277   :  { %v1833_v30 = vmax.f32 %v1357_v63, 0.0 }
 0x278   :  { %4023 = vst [vmem:[#allocation25_spill] sm:$0xff] %v3604_v22  ;;  %1229 = vmatmul.bf16.gmra.mxu2 %v3602_v16  ;;  %1398 = vmatmul.bf16.gmra.mxu3 %v3604_v22 }
 0x279   :  { %v3608_v46 = vpack.c.bf16 %v1833_v30, %v1831_v55 }
 0x27b   :  { %v513_v47 = vpop.f32.mrf.mxu0  ;;  %v682_v28 = vpop.f32.mrf.mxu1 }
 0x27c   :  { %v1190_v15 = vpop.f32.mrf.mxu2  ;;  %v1359_v4 = vpop.f32.mrf.mxu3  ;;  %v811_v51 = vmax.f32 %v513_v47, 0.0  ;;  %v812_v45 = vmax.f32 %v682_v28, 0.0 }
 0x27d   :  { %v1360_v27 = vadd.f32 %v1359_v4, %v1190_v15 }
 0x27e   :  { %1452 = vmatmul.bf16.gmra.mxu0 %v3262_v61  ;;  %1621 = vmatmul.bf16.gmra.mxu1 %v3264_v62 }
 0x27f   :  { %v1835_v55 = vmax.f32 %v1360_v27, 0.0 }
 0x283   :  { %v515_v19 = vpop.f32.mrf.mxu0  ;;  %v684_v0 = vpop.f32.mrf.mxu1 }
 0x284   :  { %v813_v36 = vmax.f32 %v515_v19, 0.0  ;;  %v814_v50 = vmax.f32 %v684_v0, 0.0  ;;  %v1192_v59 = vpop.f32.mrf.mxu2  ;;  %v1361_v1 = vpop.f32.mrf.mxu3 }
 0x285   :  { %v1362_v52 = vadd.f32 %v1361_v1, %v1192_v59 }
 0x286   :  { %v3612_v30 = vpack.c.bf16 %v813_v36, %v811_v51  ;;  %v3614_v63 = vpack.c.bf16 %v814_v50, %v812_v45 }
 0x287   :  { %v1837_v22 = vmax.f32 %v1362_v52, 0.0 }
 0x288   :  { %4024 = vst [vmem:[#allocation26_spill] sm:$0xff] %v3614_v63  ;;  %1234 = vmatmul.bf16.gmra.mxu2 %v3612_v30  ;;  %1403 = vmatmul.bf16.gmra.mxu3 %v3614_v63 }
 0x289   :  { %v3618_v61 = vpack.c.bf16 %v1837_v22, %v1835_v55 }
 0x28b   :  { %v1418_v62 = vpop.f32.mrf.mxu0  ;;  %v1587_v47 = vpop.f32.mrf.mxu1 }
 0x28c   :  { %v1195_v28 = vpop.f32.mrf.mxu2  ;;  %v1364_v15 = vpop.f32.mrf.mxu3  ;;  %v1588_v19 = vadd.f32 %v1587_v47, %v1418_v62 }
 0x28d   :  { %v1365_v4 = vadd.f32 %v1364_v15, %v1195_v28 }
 0x28e   :  { %1457 = vmatmul.bf16.gmra.mxu0 %v3273_v10  ;;  %1626 = vmatmul.bf16.gmra.mxu1 %v3275_v11  ;;  %v1748_v59 = vmax.f32 %v1588_v19, 0.0 }
 0x28f   :  { %v1839_v22 = vmax.f32 %v1365_v4, 0.0 }
 0x293   :  { %v1420_v0 = vpop.f32.mrf.mxu0  ;;  %v1589_v51 = vpop.f32.mrf.mxu1 }
 0x294   :  { %v1197_v27 = vpop.f32.mrf.mxu2  ;;  %v1366_v45 = vpop.f32.mrf.mxu3  ;;  %v1590_v36 = vadd.f32 %v1589_v51, %v1420_v0 }
 0x295   :  { %v1367_v50 = vadd.f32 %v1366_v45, %v1197_v27 }
 0x296   :  { %v1750_v1 = vmax.f32 %v1590_v36, 0.0 }
 0x297   :  { %v1841_v52 = vmax.f32 %v1367_v50, 0.0 }
 0x298   :  { %v1876_v55 = vpack.c.bf16 %v1750_v1, %v1748_v59  ;;  %2075 = vmatmul.bf16.vlgmr.msrb.gmra.mxu2 %v3290_v39 }
 0x299   :  { %v3623_v63 = vpack.c.bf16 %v1841_v52, %v1839_v22 }
 0x29a   :  { %2244 = vmatmul.bf16.vlgmr.msrb.gmra.mxu3 %v1876_v55 }
 0x29b   :  { %v1423_v10 = vpop.f32.mrf.mxu0  ;;  %v1592_v28 = vpop.f32.mrf.mxu1 }
 0x29c   :  { %v1200_v11 = vpop.f32.mrf.mxu2  ;;  %v1369_v62 = vpop.f32.mrf.mxu3  ;;  %v1593_v15 = vadd.f32 %v1592_v28, %v1423_v10 }
 0x29d   :  { %v1370_v47 = vadd.f32 %v1369_v62, %v1200_v11 }
 0x29e   :  { %1462 = vmatmul.bf16.gmra.mxu0 %v3284_v33  ;;  %1631 = vmatmul.bf16.gmra.mxu1 %v3286_v34  ;;  %v1752_v39 = vmax.f32 %v1593_v15, 0.0 }
 0x29f   :  { %v1843_v50 = vmax.f32 %v1370_v47, 0.0 }
 0x2a3   :  { %v1425_v19 = vpop.f32.mrf.mxu0  ;;  %v1594_v0 = vpop.f32.mrf.mxu1 }
 0x2a4   :  { %v1202_v4 = vpop.f32.mrf.mxu2  ;;  %v1371_v51 = vpop.f32.mrf.mxu3  ;;  %v1595_v27 = vadd.f32 %v1594_v0, %v1425_v19 }
 0x2a5   :  { %v1372_v45 = vadd.f32 %v1371_v51, %v1202_v4 }
 0x2a6   :  { %v1754_v36 = vmax.f32 %v1595_v27, 0.0 }
 0x2a7   :  { %v1845_v59 = vmax.f32 %v1372_v45, 0.0 }
 0x2a8   :  { %2080 = vmatmul.bf16.gmra.mxu2 %v3321_v13  ;;  %v1878_v1 = vpack.c.bf16 %v1754_v36, %v1752_v39 }
 0x2a9   :  { %v3628_v22 = vpack.c.bf16 %v1845_v59, %v1843_v50 }
 0x2aa   :  { %2249 = vmatmul.bf16.gmra.mxu3 %v1878_v1 }
 0x2ab   :  { %v1428_v33 = vpop.f32.mrf.mxu0  ;;  %v1597_v52 = vpop.f32.mrf.mxu1 }
 0x2ac   :  { %v1205_v34 = vpop.f32.mrf.mxu2  ;;  %v1374_v55 = vpop.f32.mrf.mxu3  ;;  %v1598_v28 = vadd.f32 %v1597_v52, %v1428_v33 }
 0x2ad   :  { %v1375_v10 = vadd.f32 %v1374_v55, %v1205_v34 }
 0x2ae   :  { %1467 = vmatmul.bf16.gmra.mxu0 %v3309_v5  ;;  %1636 = vmatmul.bf16.gmra.mxu1 %v3311_v6  ;;  %v1756_v0 = vmax.f32 %v1598_v28, 0.0 }
 0x2af   :  { %v1847_v51 = vmax.f32 %v1375_v10, 0.0 }
 0x2b3   :  { %v1430_v11 = vpop.f32.mrf.mxu0  ;;  %v1599_v62 = vpop.f32.mrf.mxu1 }
 0x2b4   :  { %v1207_v47 = vpop.f32.mrf.mxu2  ;;  %v1376_v15 = vpop.f32.mrf.mxu3  ;;  %v1600_v19 = vadd.f32 %v1599_v62, %v1430_v11 }
 0x2b5   :  { %v1377_v13 = vadd.f32 %v1376_v15, %v1207_v47 }
 0x2b6   :  { %v1758_v4 = vmax.f32 %v1600_v19, 0.0 }
 0x2b7   :  { %v1849_v27 = vmax.f32 %v1377_v13, 0.0 }
 0x2b8   :  { %2085 = vmatmul.bf16.gmra.mxu2 %v3334_v44  ;;  %v1880_v45 = vpack.c.bf16 %v1758_v4, %v1756_v0 }
 0x2b9   :  { %v3633_v39 = vpack.c.bf16 %v1849_v27, %v1847_v51 }
 0x2ba   :  { %2254 = vmatmul.bf16.gmra.mxu3 %v1880_v45 }
 0x2bb   :  { %v1433_v5 = vpop.f32.mrf.mxu0  ;;  %v1602_v36 = vpop.f32.mrf.mxu1 }
 0x2bc   :  { %v1210_v6 = vpop.f32.mrf.mxu2  ;;  %v1379_v50 = vpop.f32.mrf.mxu3  ;;  %v1603_v1 = vadd.f32 %v1602_v36, %v1433_v5 }
 0x2bd   :  { %v1380_v59 = vadd.f32 %v1379_v50, %v1210_v6 }
 0x2be   :  { %1472 = vmatmul.bf16.gmra.mxu0 %v3328_v40  ;;  %1641 = vmatmul.bf16.gmra.mxu1 %v3330_v41  ;;  %v1760_v28 = vmax.f32 %v1603_v1, 0.0 }
 0x2bf   :  { %v1851_v62 = vmax.f32 %v1380_v59, 0.0 }
 0x2c3   :  { %v1435_v33 = vpop.f32.mrf.mxu0  ;;  %v1604_v52 = vpop.f32.mrf.mxu1 }
 0x2c4   :  { %v1212_v34 = vpop.f32.mrf.mxu2  ;;  %v1381_v55 = vpop.f32.mrf.mxu3  ;;  %v1605_v10 = vadd.f32 %v1604_v52, %v1435_v33 }
 0x2c5   :  { %v1382_v44 = vadd.f32 %v1381_v55, %v1212_v34 }
 0x2c6   :  { %v1762_v11 = vmax.f32 %v1605_v10, 0.0 }
 0x2c7   :  { %v1853_v47 = vmax.f32 %v1382_v44, 0.0 }
 0x2c8   :  { %2090 = vmatmul.bf16.gmra.mxu2 %v3347_v12  ;;  %v1882_v15 = vpack.c.bf16 %v1762_v11, %v1760_v28 }
 0x2c9   :  { %v3638_v19 = vpack.c.bf16 %v1853_v47, %v1851_v62 }
 0x2ca   :  { %2259 = vmatmul.bf16.gmra.mxu3 %v1882_v15 }
 0x2cb   :  { %v1438_v40 = vpop.f32.mrf.mxu0  ;;  %v1607_v13 = vpop.f32.mrf.mxu1 }
 0x2cc   :  { %v1215_v41 = vpop.f32.mrf.mxu2  ;;  %v1384_v0 = vpop.f32.mrf.mxu3  ;;  %v1608_v51 = vadd.f32 %v1607_v13, %v1438_v40 }
 0x2cd   :  { %v1385_v4 = vadd.f32 %v1384_v0, %v1215_v41 }
 0x2ce   :  { %1477 = vmatmul.bf16.gmra.mxu0 %v3341_v2  ;;  %1646 = vmatmul.bf16.gmra.mxu1 %v3343_v7  ;;  %v1764_v50 = vmax.f32 %v1608_v51, 0.0 }
 0x2cf   :  { %v1855_v1 = vmax.f32 %v1385_v4, 0.0 }
 0x2d3   :  { %v1440_v27 = vpop.f32.mrf.mxu0  ;;  %v1609_v45 = vpop.f32.mrf.mxu1 }
 0x2d4   :  { %v1217_v5 = vpop.f32.mrf.mxu2  ;;  %v1386_v36 = vpop.f32.mrf.mxu3  ;;  %v1610_v6 = vadd.f32 %v1609_v45, %v1440_v27 }
 0x2d5   :  { %v1387_v12 = vadd.f32 %v1386_v36, %v1217_v5 }
 0x2d6   :  { %v1766_v59 = vmax.f32 %v1610_v6, 0.0 }
 0x2d7   :  { %v1857_v33 = vmax.f32 %v1387_v12, 0.0 }
 0x2d8   :  { %2095 = vmatmul.bf16.gmra.mxu2 %v3360_v49  ;;  %v1884_v52 = vpack.c.bf16 %v1766_v59, %v1764_v50 }
 0x2d9   :  { %v3643_v34 = vpack.c.bf16 %v1857_v33, %v1855_v1 }
 0x2da   :  { %2264 = vmatmul.bf16.gmra.mxu3 %v1884_v52 }
 0x2db   :  { %v1443_v2 = vpop.f32.mrf.mxu0  ;;  %v1612_v55 = vpop.f32.mrf.mxu1 }
 0x2dc   :  { %v1220_v7 = vpop.f32.mrf.mxu2  ;;  %v1389_v10 = vpop.f32.mrf.mxu3  ;;  %v1613_v28 = vadd.f32 %v1612_v55, %v1443_v2 }
 0x2dd   :  { %v1390_v44 = vadd.f32 %v1389_v10, %v1220_v7 }
 0x2de   :  { %1482 = vmatmul.bf16.gmra.mxu0 %v3354_v42  ;;  %1651 = vmatmul.bf16.gmra.mxu1 %v3356_v43  ;;  %v1768_v13 = vmax.f32 %v1613_v28, 0.0 }
 0x2df   :  { %v1859_v0 = vmax.f32 %v1390_v44, 0.0 }
 0x2e3   :  { %v1445_v11 = vpop.f32.mrf.mxu0  ;;  %v1614_v62 = vpop.f32.mrf.mxu1 }
 0x2e4   :  { %v1222_v47 = vpop.f32.mrf.mxu2  ;;  %v1391_v15 = vpop.f32.mrf.mxu3  ;;  %v1615_v40 = vadd.f32 %v1614_v62, %v1445_v11 }
 0x2e5   :  { %v1392_v49 = vadd.f32 %v1391_v15, %v1222_v47 }
 0x2e6   :  { %v1770_v41 = vmax.f32 %v1615_v40, 0.0 }
 0x2e7   :  { %v1861_v4 = vmax.f32 %v1392_v49, 0.0 }
 0x2e8   :  { %2100 = vmatmul.bf16.gmra.mxu2 %v3391_v35  ;;  %v1886_v51 = vpack.c.bf16 %v1770_v41, %v1768_v13 }
 0x2e9   :  { %v3648_v27 = vpack.c.bf16 %v1861_v4, %v1859_v0 }
 0x2ea   :  { %2269 = vmatmul.bf16.gmra.mxu3 %v1886_v51 }
 0x2eb   :  { %v1448_v42 = vpop.f32.mrf.mxu0  ;;  %v1617_v45 = vpop.f32.mrf.mxu1 }
 0x2ec   :  { %v1225_v43 = vpop.f32.mrf.mxu2  ;;  %v1394_v5 = vpop.f32.mrf.mxu3  ;;  %v1618_v6 = vadd.f32 %v1617_v45, %v1448_v42 }
 0x2ed   :  { %v1395_v36 = vadd.f32 %v1394_v5, %v1225_v43 }
 0x2ee   :  { %1487 = vmatmul.bf16.gmra.mxu0 %v3379_v23  ;;  %1656 = vmatmul.bf16.gmra.mxu1 %v3381_v24  ;;  %v1772_v52 = vmax.f32 %v1618_v6, 0.0 }
 0x2ef   :  { %v1863_v55 = vmax.f32 %v1395_v36, 0.0 }
 0x2f3   :  { %v1450_v12 = vpop.f32.mrf.mxu0  ;;  %v1619_v50 = vpop.f32.mrf.mxu1 }
 0x2f4   :  { %v1227_v59 = vpop.f32.mrf.mxu2  ;;  %v1396_v1 = vpop.f32.mrf.mxu3  ;;  %v1620_v33 = vadd.f32 %v1619_v50, %v1450_v12 }
 0x2f5   :  { %v1397_v35 = vadd.f32 %v1396_v1, %v1227_v59 }
 0x2f6   :  { %v1774_v2 = vmax.f32 %v1620_v33, 0.0 }
 0x2f7   :  { %v1865_v7 = vmax.f32 %v1397_v35, 0.0 }
 0x2f8   :  { %2105 = vmatmul.bf16.gmra.mxu2 %v3404_v18  ;;  %v1888_v10 = vpack.c.bf16 %v1774_v2, %v1772_v52 }
 0x2f9   :  { %v3653_v44 = vpack.c.bf16 %v1865_v7, %v1863_v55 }
 0x2fa   :  { %2274 = vmatmul.bf16.gmra.mxu3 %v1888_v10 }
 0x2fb   :  { %v1453_v23 = vpop.f32.mrf.mxu0  ;;  %v1622_v28 = vpop.f32.mrf.mxu1 }
 0x2fc   :  { %v1230_v24 = vpop.f32.mrf.mxu2  ;;  %v1399_v11 = vpop.f32.mrf.mxu3  ;;  %v1623_v47 = vadd.f32 %v1622_v28, %v1453_v23 }
 0x2fd   :  { %v1400_v62 = vadd.f32 %v1399_v11, %v1230_v24 }
 0x2fe   :  { %1492 = vmatmul.bf16.gmra.mxu0 %v3398_v8  ;;  %1661 = vmatmul.bf16.gmra.mxu1 %v3400_v9  ;;  %v1776_v0 = vmax.f32 %v1623_v47, 0.0 }
 0x2ff   :  { %v1867_v51 = vmax.f32 %v1400_v62, 0.0  ;;  %v4025_v62 = vld [vmem:[#allocation2_spill] sm:$0xff] }
 0x303   :  { %v1455_v15 = vpop.f32.mrf.mxu0  ;;  %v1624_v40 = vpop.f32.mrf.mxu1 }
 0x304   :  { %v1232_v49 = vpop.f32.mrf.mxu2  ;;  %v1401_v13 = vpop.f32.mrf.mxu3  ;;  %v1625_v41 = vadd.f32 %v1624_v40, %v1455_v15 }
 0x305   :  { %v1402_v18 = vadd.f32 %v1401_v13, %v1232_v49 }
 0x306   :  { %v1778_v4 = vmax.f32 %v1625_v41, 0.0 }
 0x307   :  { %v1869_v42 = vmax.f32 %v1402_v18, 0.0 }
 0x308   :  { %2110 = vmatmul.bf16.gmra.mxu2 %v3417_v60  ;;  %v1890_v45 = vpack.c.bf16 %v1778_v4, %v1776_v0 }
 0x309   :  { %v3658_v43 = vpack.c.bf16 %v1869_v42, %v1867_v51 }
 0x30a   :  { %2279 = vmatmul.bf16.gmra.mxu3 %v1890_v45 }
 0x30b   :  { %v1458_v8 = vpop.f32.mrf.mxu0  ;;  %v1627_v5 = vpop.f32.mrf.mxu1 }
 0x30c   :  { %v1235_v9 = vpop.f32.mrf.mxu2  ;;  %v1404_v36 = vpop.f32.mrf.mxu3  ;;  %v1628_v12 = vadd.f32 %v1627_v5, %v1458_v8  ;;  %v4026_v5 = vld [vmem:[#allocation3_spill] sm:$0xff] }
 0x30d   :  { %v1405_v6 = vadd.f32 %v1404_v36, %v1235_v9  ;;  %v4027_v9 = vld [vmem:[#allocation4_spill] sm:$0xff] }
 0x30e   :  { %1497 = vmatmul.bf16.gmra.mxu0 %v3411_v56  ;;  %1666 = vmatmul.bf16.gmra.mxu1 %v3413_v57  ;;  %v1780_v52 = vmax.f32 %v1628_v12, 0.0 }
 0x30f   :  { %v1871_v55 = vmax.f32 %v1405_v6, 0.0 }
 0x313   :  { %v1460_v50 = vpop.f32.mrf.mxu0  ;;  %v1629_v59 = vpop.f32.mrf.mxu1 }
 0x314   :  { %v1237_v1 = vpop.f32.mrf.mxu2  ;;  %v1406_v33 = vpop.f32.mrf.mxu3  ;;  %v1630_v35 = vadd.f32 %v1629_v59, %v1460_v50 }
 0x315   :  { %v1407_v60 = vadd.f32 %v1406_v33, %v1237_v1 }
 0x316   :  { %v1782_v2 = vmax.f32 %v1630_v35, 0.0 }
 0x317   :  { %v1873_v7 = vmax.f32 %v1407_v60, 0.0  ;;  %v4028_v60 = vld [vmem:[#allocation7_spill] sm:$0xff] }
 0x318   :  { %2115 = vmatmul.bf16.gmra.mxu2 %v3430_v53  ;;  %v1892_v10 = vpack.c.bf16 %v1782_v2, %v1780_v52 }
 0x319   :  { %v3663_v23 = vpack.c.bf16 %v1873_v7, %v1871_v55 }
 0x31a   :  { %2284 = vmatmul.bf16.gmra.mxu3 %v1892_v10 }
 0x31b   :  { %v1463_v56 = vpop.f32.mrf.mxu0  ;;  %v1632_v28 = vpop.f32.mrf.mxu1 }
 0x31c   :  { %v2076_v57 = vpop.f32.mrf.mxu2  ;;  %v1633_v53 = vadd.f32 %v1632_v28, %v1463_v56  ;;  %v4029_v28 = vld [vmem:[#allocation5_spill] sm:$0xff] }
 0x31d   :  { %v2245_v24 = vpop.f32.mrf.mxu3 }
 0x31e   :  { %v2246_v11 = vadd.f32 %v2245_v24, %v2076_v57  ;;  %1502 = vmatmul.bf16.gmra.mxu0 %v3424_v48  ;;  %1671 = vmatmul.bf16.gmra.mxu1 %v4025_v62  ;;  %v1784_v41 = vmax.f32 %v1633_v53, 0.0  ;;  %v4030_v57 = vld [vmem:[#allocation6_spill] sm:$0xff] }
 0x320   :  { %2406 = vst.msk [vmem:[%s3978_s4] sm:$0xff] %vm2405_vm2, %v2246_v11 }
 0x323   :  { %v1465_v47 = vpop.f32.mrf.mxu0  ;;  %v1634_v15 = vpop.f32.mrf.mxu1 }
 0x324   :  { %v1635_v40 = vadd.f32 %v1634_v15, %v1465_v47  ;;  %v2078_v49 = vpop.f32.mrf.mxu2 }
 0x325   :  { %v2247_v13 = vpop.f32.mrf.mxu3 }
 0x326   :  { %v1786_v18 = vmax.f32 %v1635_v40, 0.0  ;;  %v2248_v0 = vadd.f32 %v2247_v13, %v2078_v49 }
 0x328   :  { %2407 = vst.msk [vmem:[%s3978_s4 + $0x8] sm:$0xff] %vm2405_vm2, %v2248_v0  ;;  %2120 = vmatmul.bf16.gmra.mxu2 %v3461_v20  ;;  %v1894_v48 = vpack.c.bf16 %v1786_v18, %v1784_v41  ;;  %v4031_v41 = vld [vmem:[#allocation10_spill] sm:$0xff] }
 0x32a   :  { %2289 = vmatmul.bf16.gmra.mxu3 %v1894_v48 }
 0x32b   :  { %v1468_v4 = vpop.f32.mrf.mxu0  ;;  %v1637_v51 = vpop.f32.mrf.mxu1 }
 0x32c   :  { %v2081_v42 = vpop.f32.mrf.mxu2  ;;  %v1638_v36 = vadd.f32 %v1637_v51, %v1468_v4 }
 0x32d   :  { %v2250_v45 = vpop.f32.mrf.mxu3 }
 0x32e   :  { %v2251_v8 = vadd.f32 %v2250_v45, %v2081_v42  ;;  %1507 = vmatmul.bf16.gmra.mxu0 %v4026_v5  ;;  %1676 = vmatmul.bf16.gmra.mxu1 %v4027_v9  ;;  %v1788_v1 = vmax.f32 %v1638_v36, 0.0  ;;  %v4032_v45 = vld [vmem:[#allocation8_spill] sm:$0xff] }
 0x330   :  { %2408 = vst.msk [vmem:[%s3978_s4 + $0x10] sm:$0xff] %vm2405_vm2, %v2251_v8  ;;  %v4033_v8 = vld [vmem:[#allocation9_spill] sm:$0xff] }
 0x333   :  { %v1470_v6 = vpop.f32.mrf.mxu0  ;;  %v1639_v12 = vpop.f32.mrf.mxu1 }
 0x334   :  { %v1640_v20 = vadd.f32 %v1639_v12, %v1470_v6  ;;  %v2083_v50 = vpop.f32.mrf.mxu2 }
 0x335   :  { %v2252_v59 = vpop.f32.mrf.mxu3 }
 0x336   :  { %v1790_v33 = vmax.f32 %v1640_v20, 0.0  ;;  %v2253_v35 = vadd.f32 %v2252_v59, %v2083_v50 }
 0x338   :  { %2409 = vst.msk [vmem:[%s3978_s4 + $0x18] sm:$0xff] %vm2405_vm2, %v2253_v35  ;;  %2125 = vmatmul.bf16.gmra.mxu2 %v4028_v60  ;;  %v1896_v52 = vpack.c.bf16 %v1790_v33, %v1788_v1  ;;  %v4034_v33 = vld [vmem:[#allocation13_spill] sm:$0xff] }
 0x33a   :  { %2294 = vmatmul.bf16.gmra.mxu3 %v1896_v52 }
 0x33b   :  { %v1473_v2 = vpop.f32.mrf.mxu0  ;;  %v1642_v55 = vpop.f32.mrf.mxu1 }
 0x33c   :  { %v2086_v7 = vpop.f32.mrf.mxu2  ;;  %v1643_v24 = vadd.f32 %v1642_v55, %v1473_v2 }
 0x33d   :  { %v2255_v10 = vpop.f32.mrf.mxu3 }
 0x33e   :  { %v2256_v56 = vadd.f32 %v2255_v10, %v2086_v7  ;;  %1512 = vmatmul.bf16.gmra.mxu0 %v4029_v28  ;;  %1681 = vmatmul.bf16.gmra.mxu1 %v4030_v57  ;;  %v1792_v40 = vmax.f32 %v1643_v24, 0.0  ;;  %v4035_v10 = vld [vmem:[#allocation11_spill] sm:$0xff] }
 0x340   :  { %2410 = vst.msk [vmem:[%s3978_s4 + $0x20] sm:$0xff] %vm2405_vm2, %v2256_v56  ;;  %v4036_v56 = vld [vmem:[#allocation12_spill] sm:$0xff] }
 0x343   :  { %v1475_v11 = vpop.f32.mrf.mxu0  ;;  %v1644_v62 = vpop.f32.mrf.mxu1 }
 0x344   :  { %v1645_v53 = vadd.f32 %v1644_v62, %v1475_v11  ;;  %v2088_v47 = vpop.f32.mrf.mxu2 }
 0x345   :  { %v2257_v15 = vpop.f32.mrf.mxu3 }
 0x346   :  { %v1794_v49 = vmax.f32 %v1645_v53, 0.0  ;;  %v2258_v13 = vadd.f32 %v2257_v15, %v2088_v47 }
 0x348   :  { %2411 = vst.msk [vmem:[%s3978_s4 + $0x28] sm:$0xff] %vm2405_vm2, %v2258_v13  ;;  %2130 = vmatmul.bf16.gmra.mxu2 %v4031_v41  ;;  %v1898_v18 = vpack.c.bf16 %v1794_v49, %v1792_v40  ;;  %v4037_v49 = vld [vmem:[#allocation16_spill] sm:$0xff] }
 0x34a   :  { %2299 = vmatmul.bf16.gmra.mxu3 %v1898_v18 }
 0x34b   :  { %v1478_v0 = vpop.f32.mrf.mxu0  ;;  %v1647_v48 = vpop.f32.mrf.mxu1 }
 0x34c   :  { %v2091_v4 = vpop.f32.mrf.mxu2  ;;  %v1648_v5 = vadd.f32 %v1647_v48, %v1478_v0 }
 0x34d   :  { %v2260_v51 = vpop.f32.mrf.mxu3 }
 0x34e   :  { %v2261_v42 = vadd.f32 %v2260_v51, %v2091_v4  ;;  %1517 = vmatmul.bf16.gmra.mxu0 %v4032_v45  ;;  %1686 = vmatmul.bf16.gmra.mxu1 %v4033_v8  ;;  %v1796_v50 = vmax.f32 %v1648_v5, 0.0  ;;  %v4038_v51 = vld [vmem:[#allocation14_spill] sm:$0xff] }
 0x350   :  { %2412 = vst.msk [vmem:[%s3978_s4 + $0x30] sm:$0xff] %vm2405_vm2, %v2261_v42  ;;  %v4039_v42 = vld [vmem:[#allocation15_spill] sm:$0xff] }
 0x353   :  { %v1480_v9 = vpop.f32.mrf.mxu0  ;;  %v1649_v36 = vpop.f32.mrf.mxu1 }
 0x354   :  { %v1650_v6 = vadd.f32 %v1649_v36, %v1480_v9  ;;  %v2093_v12 = vpop.f32.mrf.mxu2 }
 0x355   :  { %v2262_v20 = vpop.f32.mrf.mxu3 }
 0x356   :  { %v1798_v59 = vmax.f32 %v1650_v6, 0.0  ;;  %v2263_v1 = vadd.f32 %v2262_v20, %v2093_v12 }
 0x358   :  { %2413 = vst.msk [vmem:[%s3978_s4 + $0x38] sm:$0xff] %vm2405_vm2, %v2263_v1  ;;  %2135 = vmatmul.bf16.gmra.mxu2 %v4034_v33  ;;  %v1900_v35 = vpack.c.bf16 %v1798_v59, %v1796_v50 }
 0x35a   :  { %2304 = vmatmul.bf16.gmra.mxu3 %v1900_v35 }
 0x35b   :  { %v1483_v60 = vpop.f32.mrf.mxu0  ;;  %v1652_v52 = vpop.f32.mrf.mxu1 }
 0x35c   :  { %v2096_v2 = vpop.f32.mrf.mxu2  ;;  %v1653_v28 = vadd.f32 %v1652_v52, %v1483_v60 }
 0x35d   :  { %v2265_v55 = vpop.f32.mrf.mxu3 }
 0x35e   :  { %v2266_v7 = vadd.f32 %v2265_v55, %v2096_v2  ;;  %1522 = vmatmul.bf16.gmra.mxu0 %v4035_v10  ;;  %1691 = vmatmul.bf16.gmra.mxu1 %v4036_v56  ;;  %v1800_v47 = vmax.f32 %v1653_v28, 0.0  ;;  %v4040_v2 = vld [vmem:[#allocation17_spill] sm:$0xff]  ;;  %v4041_v55 = vld [vmem:[#allocation18_spill] sm:$0xff] }
 0x360   :  { %2414 = vst.msk [vmem:[%s3978_s4 + $0x40] sm:$0xff] %vm2405_vm2, %v2266_v7 }
 0x363   :  { %v1485_v57 = vpop.f32.mrf.mxu0  ;;  %v1654_v24 = vpop.f32.mrf.mxu1 }
 0x364   :  { %v1655_v11 = vadd.f32 %v1654_v24, %v1485_v57  ;;  %v2098_v62 = vpop.f32.mrf.mxu2 }
 0x365   :  { %v2267_v53 = vpop.f32.mrf.mxu3 }
 0x366   :  { %v1802_v15 = vmax.f32 %v1655_v11, 0.0  ;;  %v2268_v40 = vadd.f32 %v2267_v53, %v2098_v62 }
 0x368   :  { %2415 = vst.msk [vmem:[%s3978_s4 + $0x48] sm:$0xff] %vm2405_vm2, %v2268_v40  ;;  %2140 = vmatmul.bf16.gmra.mxu2 %v4037_v49  ;;  %v1902_v13 = vpack.c.bf16 %v1802_v15, %v1800_v47 }
 0x36a   :  { %2309 = vmatmul.bf16.gmra.mxu3 %v1902_v13 }
 0x36b   :  { %v1488_v41 = vpop.f32.mrf.mxu0  ;;  %v1657_v18 = vpop.f32.mrf.mxu1 }
 0x36c   :  { %v2101_v0 = vpop.f32.mrf.mxu2  ;;  %v1658_v45 = vadd.f32 %v1657_v18, %v1488_v41  ;;  %v4042_v41 = vld [vmem:[#allocation19_spill] sm:$0xff] }
 0x36d   :  { %v2270_v48 = vpop.f32.mrf.mxu3 }
 0x36e   :  { %v2271_v4 = vadd.f32 %v2270_v48, %v2101_v0  ;;  %1527 = vmatmul.bf16.gmra.mxu0 %v4038_v51  ;;  %1696 = vmatmul.bf16.gmra.mxu1 %v4039_v42  ;;  %v1804_v12 = vmax.f32 %v1658_v45, 0.0 }
 0x370   :  { %2416 = vst.msk [vmem:[%s3978_s4 + $0x50] sm:$0xff] %vm2405_vm2, %v2271_v4 }
 0x373   :  { %v1490_v8 = vpop.f32.mrf.mxu0  ;;  %v1659_v5 = vpop.f32.mrf.mxu1 }
 0x374   :  { %v1660_v9 = vadd.f32 %v1659_v5, %v1490_v8  ;;  %v2103_v36 = vpop.f32.mrf.mxu2 }
 0x375   :  { %v2272_v6 = vpop.f32.mrf.mxu3 }
 0x376   :  { %v1806_v20 = vmax.f32 %v1660_v9, 0.0  ;;  %v2273_v50 = vadd.f32 %v2272_v6, %v2103_v36 }
 0x378   :  { %2417 = vst.msk [vmem:[%s3978_s4 + $0x58] sm:$0xff] %vm2405_vm2, %v2273_v50  ;;  %2145 = vmatmul.bf16.gmra.mxu2 %v3532_v31  ;;  %v1904_v59 = vpack.c.bf16 %v1806_v20, %v1804_v12  ;;  %v4043_v20 = vld [vmem:[#allocation20_spill] sm:$0xff] }
 0x37a   :  { %2314 = vmatmul.bf16.gmra.mxu3 %v1904_v59 }
 0x37b   :  { %v1493_v1 = vpop.f32.mrf.mxu0  ;;  %v1662_v33 = vpop.f32.mrf.mxu1 }
 0x37c   :  { %v2106_v35 = vpop.f32.mrf.mxu2  ;;  %v1663_v7 = vadd.f32 %v1662_v33, %v1493_v1 }
 0x37d   :  { %v2275_v60 = vpop.f32.mrf.mxu3 }
 0x37e   :  { %v2276_v52 = vadd.f32 %v2275_v60, %v2106_v35  ;;  %1532 = vmatmul.bf16.gmra.mxu0 %v4040_v2  ;;  %1701 = vmatmul.bf16.gmra.mxu1 %v4041_v55  ;;  %v1808_v24 = vmax.f32 %v1663_v7, 0.0 }
 0x380   :  { %2418 = vst.msk [vmem:[%s3978_s4 + $0x60] sm:$0xff] %vm2405_vm2, %v2276_v52 }
 0x383   :  { %v1495_v10 = vpop.f32.mrf.mxu0  ;;  %v1664_v56 = vpop.f32.mrf.mxu1 }
 0x384   :  { %v1665_v31 = vadd.f32 %v1664_v56, %v1495_v10  ;;  %v2108_v28 = vpop.f32.mrf.mxu2 }
 0x385   :  { %v2277_v57 = vpop.f32.mrf.mxu3 }
 0x386   :  { %v1810_v11 = vmax.f32 %v1665_v31, 0.0  ;;  %v2278_v62 = vadd.f32 %v2277_v57, %v2108_v28  ;;  %v4044_v28 = vld [vmem:[#allocation21_spill] sm:$0xff] }
 0x388   :  { %2419 = vst.msk [vmem:[%s3978_s4 + $0x68] sm:$0xff] %vm2405_vm2, %v2278_v62  ;;  %2150 = vmatmul.bf16.gmra.mxu2 %v3542_v26  ;;  %v1906_v53 = vpack.c.bf16 %v1810_v11, %v1808_v24 }
 0x38a   :  { %2319 = vmatmul.bf16.gmra.mxu3 %v1906_v53 }
 0x38b   :  { %v1498_v47 = vpop.f32.mrf.mxu0  ;;  %v1667_v15 = vpop.f32.mrf.mxu1 }
 0x38c   :  { %v2111_v40 = vpop.f32.mrf.mxu2  ;;  %v1668_v18 = vadd.f32 %v1667_v15, %v1498_v47 }
 0x38d   :  { %v2280_v49 = vpop.f32.mrf.mxu3 }
 0x38e   :  { %v2281_v13 = vadd.f32 %v2280_v49, %v2111_v40  ;;  %1537 = vmatmul.bf16.gmra.mxu0 %v3536_v58  ;;  %1706 = vmatmul.bf16.gmra.mxu1 %v4042_v41  ;;  %v1812_v42 = vmax.f32 %v1668_v18, 0.0 }
 0x390   :  { %2420 = vst.msk [vmem:[%s3978_s4 + $0x70] sm:$0xff] %vm2405_vm2, %v2281_v13 }
 0x393   :  { %v1500_v0 = vpop.f32.mrf.mxu0  ;;  %v1669_v48 = vpop.f32.mrf.mxu1 }
 0x394   :  { %v1670_v26 = vadd.f32 %v1669_v48, %v1500_v0  ;;  %v2113_v4 = vpop.f32.mrf.mxu2  ;;  %v4045_v48 = vld [vmem:[#allocation22_spill] sm:$0xff] }
 0x395   :  { %v2282_v51 = vpop.f32.mrf.mxu3 }
 0x396   :  { %v1814_v45 = vmax.f32 %v1670_v26, 0.0  ;;  %v2283_v8 = vadd.f32 %v2282_v51, %v2113_v4 }
 0x398   :  { %2421 = vst.msk [vmem:[%s3978_s4 + $0x78] sm:$0xff] %vm2405_vm2, %v2283_v8  ;;  %2155 = vmatmul.bf16.gmra.mxu2 %v3552_v37  ;;  %v1908_v58 = vpack.c.bf16 %v1814_v45, %v1812_v42 }
 0x39a   :  { %2324 = vmatmul.bf16.gmra.mxu3 %v1908_v58 }
 0x39b   :  { %v1503_v5 = vpop.f32.mrf.mxu0  ;;  %v1672_v9 = vpop.f32.mrf.mxu1 }
 0x39c   :  { %v2116_v36 = vpop.f32.mrf.mxu2  ;;  %v1673_v50 = vadd.f32 %v1672_v9, %v1503_v5 }
 0x39d   :  { %v2285_v6 = vpop.f32.mrf.mxu3 }
 0x39e   :  { %v2286_v12 = vadd.f32 %v2285_v6, %v2116_v36  ;;  %1542 = vmatmul.bf16.gmra.mxu0 %v3546_v29  ;;  %1711 = vmatmul.bf16.gmra.mxu1 %v4043_v20  ;;  %v1816_v60 = vmax.f32 %v1673_v50, 0.0  ;;  %v4046_v50 = vld [vmem:[#allocation23_spill] sm:$0xff] }
 0x3a0   :  { %2422 = vst.msk [vmem:[%s3978_s4 + $0x80] sm:$0xff] %vm2405_vm2, %v2286_v12 }
 0x3a3   :  { %v1505_v59 = vpop.f32.mrf.mxu0  ;;  %v1674_v1 = vpop.f32.mrf.mxu1 }
 0x3a4   :  { %v1675_v37 = vadd.f32 %v1674_v1, %v1505_v59  ;;  %v2118_v33 = vpop.f32.mrf.mxu2 }
 0x3a5   :  { %v2287_v35 = vpop.f32.mrf.mxu3 }
 0x3a6   :  { %v1818_v52 = vmax.f32 %v1675_v37, 0.0  ;;  %v2288_v2 = vadd.f32 %v2287_v35, %v2118_v33 }
 0x3a8   :  { %2423 = vst.msk [vmem:[%s3978_s4 + $0x88] sm:$0xff] %vm2405_vm2, %v2288_v2  ;;  %2160 = vmatmul.bf16.gmra.mxu2 %v3568_v38  ;;  %v1910_v29 = vpack.c.bf16 %v1818_v52, %v1816_v60 }
 0x3aa   :  { %2329 = vmatmul.bf16.gmra.mxu3 %v1910_v29 }
 0x3ab   :  { %v1508_v55 = vpop.f32.mrf.mxu0  ;;  %v1677_v7 = vpop.f32.mrf.mxu1 }
 0x3ac   :  { %v2121_v10 = vpop.f32.mrf.mxu2  ;;  %v1678_v57 = vadd.f32 %v1677_v7, %v1508_v55 }
 0x3ad   :  { %v2290_v56 = vpop.f32.mrf.mxu3 }
 0x3ae   :  { %v2291_v31 = vadd.f32 %v2290_v56, %v2121_v10  ;;  %1547 = vmatmul.bf16.gmra.mxu0 %v3556_v32  ;;  %1716 = vmatmul.bf16.gmra.mxu1 %v4044_v28  ;;  %v1820_v47 = vmax.f32 %v1678_v57, 0.0 }
 0x3b0   :  { %2424 = vst.msk [vmem:[%s3978_s4 + $0x90] sm:$0xff] %vm2405_vm2, %v2291_v31  ;;  %v4047_v31 = vld [vmem:[#allocation24_spill] sm:$0xff] }
 0x3b3   :  { %v1510_v24 = vpop.f32.mrf.mxu0  ;;  %v1679_v11 = vpop.f32.mrf.mxu1 }
 0x3b4   :  { %v1680_v38 = vadd.f32 %v1679_v11, %v1510_v24  ;;  %v2123_v62 = vpop.f32.mrf.mxu2 }
 0x3b5   :  { %v2292_v53 = vpop.f32.mrf.mxu3 }
 0x3b6   :  { %v1822_v15 = vmax.f32 %v1680_v38, 0.0  ;;  %v2293_v40 = vadd.f32 %v2292_v53, %v2123_v62 }
 0x3b8   :  { %2425 = vst.msk [vmem:[%s3978_s4 + $0x98] sm:$0xff] %vm2405_vm2, %v2293_v40  ;;  %2165 = vmatmul.bf16.gmra.mxu2 %v3578_v3  ;;  %v1912_v32 = vpack.c.bf16 %v1822_v15, %v1820_v47 }
 0x3ba   :  { %2334 = vmatmul.bf16.gmra.mxu3 %v1912_v32 }
 0x3bb   :  { %v1513_v49 = vpop.f32.mrf.mxu0  ;;  %v1682_v13 = vpop.f32.mrf.mxu1 }
 0x3bc   :  { %v2126_v41 = vpop.f32.mrf.mxu2  ;;  %v1683_v26 = vadd.f32 %v1682_v13, %v1513_v49 }
 0x3bd   :  { %v2295_v18 = vpop.f32.mrf.mxu3 }
 0x3be   :  { %v2296_v0 = vadd.f32 %v2295_v18, %v2126_v41  ;;  %1552 = vmatmul.bf16.gmra.mxu0 %v3572_v17  ;;  %1721 = vmatmul.bf16.gmra.mxu1 %v4045_v48  ;;  %v1824_v8 = vmax.f32 %v1683_v26, 0.0  ;;  %v4048_v41 = vld [vmem:[#allocation25_spill] sm:$0xff] }
 0x3c0   :  { %2426 = vst.msk [vmem:[%s3978_s4 + $0xa0] sm:$0xff] %vm2405_vm2, %v2296_v0 }
 0x3c3   :  { %v1515_v4 = vpop.f32.mrf.mxu0  ;;  %v1684_v51 = vpop.f32.mrf.mxu1 }
 0x3c4   :  { %v1685_v3 = vadd.f32 %v1684_v51, %v1515_v4  ;;  %v2128_v42 = vpop.f32.mrf.mxu2 }
 0x3c5   :  { %v2297_v45 = vpop.f32.mrf.mxu3 }
 0x3c6   :  { %v1826_v58 = vmax.f32 %v1685_v3, 0.0  ;;  %v2298_v5 = vadd.f32 %v2297_v45, %v2128_v42 }
 0x3c8   :  { %2427 = vst.msk [vmem:[%s3978_s4 + $0xa8] sm:$0xff] %vm2405_vm2, %v2298_v5  ;;  %2170 = vmatmul.bf16.gmra.mxu2 %v3588_v14  ;;  %v1914_v17 = vpack.c.bf16 %v1826_v58, %v1824_v8 }
 0x3ca   :  { %2339 = vmatmul.bf16.gmra.mxu3 %v1914_v17 }
 0x3cb   :  { %v1518_v9 = vpop.f32.mrf.mxu0  ;;  %v1687_v36 = vpop.f32.mrf.mxu1 }
 0x3cc   :  { %v2131_v6 = vpop.f32.mrf.mxu2  ;;  %v1688_v59 = vadd.f32 %v1687_v36, %v1518_v9  ;;  %v4049_v9 = vld [vmem:[#allocation26_spill] sm:$0xff] }
 0x3cd   :  { %v2300_v12 = vpop.f32.mrf.mxu3 }
 0x3ce   :  { %v2301_v20 = vadd.f32 %v2300_v12, %v2131_v6  ;;  %1557 = vmatmul.bf16.gmra.mxu0 %v3582_v21  ;;  %1726 = vmatmul.bf16.gmra.mxu1 %v4046_v50  ;;  %v1828_v60 = vmax.f32 %v1688_v59, 0.0 }
 0x3d0   :  { %2428 = vst.msk [vmem:[%s3978_s4 + $0xb0] sm:$0xff] %vm2405_vm2, %v2301_v20 }
 0x3d3   :  { %v1520_v1 = vpop.f32.mrf.mxu0  ;;  %v1689_v37 = vpop.f32.mrf.mxu1 }
 0x3d4   :  { %v1690_v14 = vadd.f32 %v1689_v37, %v1520_v1  ;;  %v2133_v33 = vpop.f32.mrf.mxu2 }
 0x3d5   :  { %v2302_v35 = vpop.f32.mrf.mxu3 }
 0x3d6   :  { %v1830_v52 = vmax.f32 %v1690_v14, 0.0  ;;  %v2303_v2 = vadd.f32 %v2302_v35, %v2133_v33 }
 0x3d8   :  { %v1916_v29 = vpack.c.bf16 %v1830_v52, %v1828_v60  ;;  %2429 = vst.msk [vmem:[%s3978_s4 + $0xb8] sm:$0xff] %vm2405_vm2, %v2303_v2  ;;  %2175 = vmatmul.bf16.gmra.mxu2 %v3598_v25 }
 0x3da   :  { %2344 = vmatmul.bf16.gmra.mxu3 %v1916_v29 }
 0x3db   :  { %v1523_v21 = vpop.f32.mrf.mxu0  ;;  %v1692_v55 = vpop.f32.mrf.mxu1 }
 0x3dc   :  { %v2136_v7 = vpop.f32.mrf.mxu2  ;;  %v1693_v28 = vadd.f32 %v1692_v55, %v1523_v21 }
 0x3dd   :  { %v2305_v10 = vpop.f32.mrf.mxu3 }
 0x3de   :  { %v2306_v56 = vadd.f32 %v2305_v10, %v2136_v7  ;;  %1562 = vmatmul.bf16.gmra.mxu0 %v3592_v54  ;;  %1731 = vmatmul.bf16.gmra.mxu1 %v4047_v31  ;;  %v1832_v62 = vmax.f32 %v1693_v28, 0.0 }
 0x3e0   :  { %2430 = vst.msk [vmem:[%s3978_s4 + $0xc0] sm:$0xff] %vm2405_vm2, %v2306_v56 }
 0x3e3   :  { %v1525_v57 = vpop.f32.mrf.mxu0  ;;  %v1694_v24 = vpop.f32.mrf.mxu1 }
 0x3e4   :  { %v1695_v11 = vadd.f32 %v1694_v24, %v1525_v57  ;;  %v2138_v25 = vpop.f32.mrf.mxu2 }
 0x3e5   :  { %v2307_v38 = vpop.f32.mrf.mxu3 }
 0x3e6   :  { %v1834_v53 = vmax.f32 %v1695_v11, 0.0  ;;  %v2308_v47 = vadd.f32 %v2307_v38, %v2138_v25 }
 0x3e8   :  { %v1918_v15 = vpack.c.bf16 %v1834_v53, %v1832_v62  ;;  %2431 = vst.msk [vmem:[%s3978_s4 + $0xc8] sm:$0xff] %vm2405_vm2, %v2308_v47  ;;  %2180 = vmatmul.bf16.gmra.mxu2 %v3608_v46 }
 0x3ea   :  { %2349 = vmatmul.bf16.gmra.mxu3 %v1918_v15 }
 0x3eb   :  { %v1528_v54 = vpop.f32.mrf.mxu0  ;;  %v1697_v40 = vpop.f32.mrf.mxu1 }
 0x3ec   :  { %v2141_v32 = vpop.f32.mrf.mxu2  ;;  %v1698_v18 = vadd.f32 %v1697_v40, %v1528_v54 }
 0x3ed   :  { %v2310_v49 = vpop.f32.mrf.mxu3 }
 0x3ee   :  { %v2311_v13 = vadd.f32 %v2310_v49, %v2141_v32  ;;  %1567 = vmatmul.bf16.gmra.mxu0 %v3602_v16  ;;  %1736 = vmatmul.bf16.gmra.mxu1 %v4048_v41  ;;  %v1836_v51 = vmax.f32 %v1698_v18, 0.0 }
 0x3f0   :  { %2432 = vst.msk [vmem:[%s3978_s4 + $0xd0] sm:$0xff] %vm2405_vm2, %v2311_v13 }
 0x3f3   :  { %v1530_v0 = vpop.f32.mrf.mxu0  ;;  %v1699_v48 = vpop.f32.mrf.mxu1 }
 0x3f4   :  { %v1700_v26 = vadd.f32 %v1699_v48, %v1530_v0  ;;  %v2143_v46 = vpop.f32.mrf.mxu2 }
 0x3f5   :  { %v2312_v4 = vpop.f32.mrf.mxu3 }
 0x3f6   :  { %v1838_v3 = vmax.f32 %v1700_v26, 0.0  ;;  %v2313_v42 = vadd.f32 %v2312_v4, %v2143_v46 }
 0x3f8   :  { %v1920_v45 = vpack.c.bf16 %v1838_v3, %v1836_v51  ;;  %2433 = vst.msk [vmem:[%s3978_s4 + $0xd8] sm:$0xff] %vm2405_vm2, %v2313_v42  ;;  %2185 = vmatmul.bf16.gmra.mxu2 %v3618_v61 }
 0x3fa   :  { %2354 = vmatmul.bf16.gmra.mxu3 %v1920_v45 }
 0x3fb   :  { %v1533_v16 = vpop.f32.mrf.mxu0  ;;  %v1702_v8 = vpop.f32.mrf.mxu1 }
 0x3fc   :  { %v2146_v58 = vpop.f32.mrf.mxu2  ;;  %v1703_v36 = vadd.f32 %v1702_v8, %v1533_v16 }
 0x3fd   :  { %v2315_v5 = vpop.f32.mrf.mxu3 }
 0x3fe   :  { %v2316_v17 = vadd.f32 %v2315_v5, %v2146_v58  ;;  %1572 = vmatmul.bf16.gmra.mxu0 %v3612_v30  ;;  %1741 = vmatmul.bf16.gmra.mxu1 %v4049_v9  ;;  %v1840_v59 = vmax.f32 %v1703_v36, 0.0 }
 0x400   :  { %2434 = vst.msk [vmem:[%s3978_s4 + $0xe0] sm:$0xff] %vm2405_vm2, %v2316_v17 }
 0x403   :  { %v1535_v6 = vpop.f32.mrf.mxu0  ;;  %v1704_v12 = vpop.f32.mrf.mxu1 }
 0x404   :  { %v1705_v20 = vadd.f32 %v1704_v12, %v1535_v6  ;;  %v2148_v61 = vpop.f32.mrf.mxu2 }
 0x405   :  { %v2317_v50 = vpop.f32.mrf.mxu3 }
 0x406   :  { %v1842_v1 = vmax.f32 %v1705_v20, 0.0  ;;  %v2318_v37 = vadd.f32 %v2317_v50, %v2148_v61 }
 0x408   :  { %v1922_v14 = vpack.c.bf16 %v1842_v1, %v1840_v59  ;;  %2435 = vst.msk [vmem:[%s3978_s4 + $0xe8] sm:$0xff] %vm2405_vm2, %v2318_v37  ;;  %2190 = vmatmul.bf16.gmra.mxu2 %v3623_v63 }
 0x40a   :  { %2359 = vmatmul.bf16.gmra.mxu3 %v1922_v14 }
 0x40b   :  { %v1538_v30 = vpop.f32.mrf.mxu0  ;;  %v1707_v33 = vpop.f32.mrf.mxu1 }
 0x40c   :  { %v2151_v35 = vpop.f32.mrf.mxu2  ;;  %v1708_v2 = vadd.f32 %v1707_v33, %v1538_v30 }
 0x40d   :  { %v2320_v60 = vpop.f32.mrf.mxu3 }
 0x40e   :  { %v2321_v52 = vadd.f32 %v2320_v60, %v2151_v35  ;;  %v1844_v56 = vmax.f32 %v1708_v2, 0.0 }
 0x410   :  { %2436 = vst.msk [vmem:[%s3978_s4 + $0xf0] sm:$0xff] %vm2405_vm2, %v2321_v52 }
 0x413   :  { %v1540_v29 = vpop.f32.mrf.mxu0  ;;  %v1709_v21 = vpop.f32.mrf.mxu1 }
 0x414   :  { %v1710_v55 = vadd.f32 %v1709_v21, %v1540_v29  ;;  %v2153_v7 = vpop.f32.mrf.mxu2 }
 0x415   :  { %v2322_v10 = vpop.f32.mrf.mxu3 }
 0x416   :  { %v1846_v31 = vmax.f32 %v1710_v55, 0.0  ;;  %v2323_v63 = vadd.f32 %v2322_v10, %v2153_v7 }
 0x418   :  { %v1924_v28 = vpack.c.bf16 %v1846_v31, %v1844_v56  ;;  %2437 = vst.msk [vmem:[%s3978_s4 + $0xf8] sm:$0xff] %vm2405_vm2, %v2323_v63  ;;  %2195 = vmatmul.bf16.gmra.mxu2 %v3628_v22 }
 0x41a   :  { %2364 = vmatmul.bf16.gmra.mxu3 %v1924_v28 }
 0x41b   :  { %v1543_v57 = vpop.f32.mrf.mxu0  ;;  %v1712_v24 = vpop.f32.mrf.mxu1 }
 0x41c   :  { %v2156_v11 = vpop.f32.mrf.mxu2  ;;  %v1713_v62 = vadd.f32 %v1712_v24, %v1543_v57 }
 0x41d   :  { %v2325_v25 = vpop.f32.mrf.mxu3 }
 0x41e   :  { %v2326_v38 = vadd.f32 %v2325_v25, %v2156_v11  ;;  %v1848_v32 = vmax.f32 %v1713_v62, 0.0 }
 0x420   :  { %2438 = vst.msk [vmem:[%s3978_s4 + $0x100] sm:$0xff] %vm2405_vm2, %v2326_v38 }
 0x423   :  { %v1545_v53 = vpop.f32.mrf.mxu0  ;;  %v1714_v47 = vpop.f32.mrf.mxu1 }
 0x424   :  { %v1715_v15 = vadd.f32 %v1714_v47, %v1545_v53  ;;  %v2158_v54 = vpop.f32.mrf.mxu2 }
 0x425   :  { %v2327_v40 = vpop.f32.mrf.mxu3 }
 0x426   :  { %v1850_v49 = vmax.f32 %v1715_v15, 0.0  ;;  %v2328_v22 = vadd.f32 %v2327_v40, %v2158_v54 }
 0x428   :  { %v1926_v13 = vpack.c.bf16 %v1850_v49, %v1848_v32  ;;  %2439 = vst.msk [vmem:[%s3978_s4 + $0x108] sm:$0xff] %vm2405_vm2, %v2328_v22  ;;  %2200 = vmatmul.bf16.gmra.mxu2 %v3633_v39 }
 0x42a   :  { %2369 = vmatmul.bf16.gmra.mxu3 %v1926_v13 }
 0x42b   :  { %v1548_v41 = vpop.f32.mrf.mxu0  ;;  %v1717_v18 = vpop.f32.mrf.mxu1 }
 0x42c   :  { %v2161_v0 = vpop.f32.mrf.mxu2  ;;  %v1718_v46 = vadd.f32 %v1717_v18, %v1548_v41 }
 0x42d   :  { %v2330_v48 = vpop.f32.mrf.mxu3 }
 0x42e   :  { %v2331_v26 = vadd.f32 %v2330_v48, %v2161_v0  ;;  %v1852_v16 = vmax.f32 %v1718_v46, 0.0 }
 0x430   :  { %2440 = vst.msk [vmem:[%s3978_s4 + $0x110] sm:$0xff] %vm2405_vm2, %v2331_v26 }
 0x433   :  { %v1550_v4 = vpop.f32.mrf.mxu0  ;;  %v1719_v51 = vpop.f32.mrf.mxu1 }
 0x434   :  { %v1720_v3 = vadd.f32 %v1719_v51, %v1550_v4  ;;  %v2163_v42 = vpop.f32.mrf.mxu2 }
 0x435   :  { %v2332_v45 = vpop.f32.mrf.mxu3 }
 0x436   :  { %v1854_v8 = vmax.f32 %v1720_v3, 0.0  ;;  %v2333_v39 = vadd.f32 %v2332_v45, %v2163_v42 }
 0x438   :  { %v1928_v58 = vpack.c.bf16 %v1854_v8, %v1852_v16  ;;  %2441 = vst.msk [vmem:[%s3978_s4 + $0x118] sm:$0xff] %vm2405_vm2, %v2333_v39  ;;  %2205 = vmatmul.bf16.gmra.mxu2 %v3638_v19 }
 0x43a   :  { %2374 = vmatmul.bf16.gmra.mxu3 %v1928_v58 }
 0x43b   :  { %v1553_v5 = vpop.f32.mrf.mxu0  ;;  %v1722_v17 = vpop.f32.mrf.mxu1 }
 0x43c   :  { %v2166_v9 = vpop.f32.mrf.mxu2  ;;  %v1723_v12 = vadd.f32 %v1722_v17, %v1553_v5 }
 0x43d   :  { %v2335_v36 = vpop.f32.mrf.mxu3 }
 0x43e   :  { %v2336_v6 = vadd.f32 %v2335_v36, %v2166_v9  ;;  %v1856_v37 = vmax.f32 %v1723_v12, 0.0 }
 0x440   :  { %2442 = vst.msk [vmem:[%s3978_s4 + $0x120] sm:$0xff] %vm2405_vm2, %v2336_v6 }
 0x443   :  { %v1555_v20 = vpop.f32.mrf.mxu0  ;;  %v1724_v61 = vpop.f32.mrf.mxu1 }
 0x444   :  { %v1725_v50 = vadd.f32 %v1724_v61, %v1555_v20  ;;  %v2168_v59 = vpop.f32.mrf.mxu2 }
 0x445   :  { %v2337_v1 = vpop.f32.mrf.mxu3 }
 0x446   :  { %v1858_v14 = vmax.f32 %v1725_v50, 0.0  ;;  %v2338_v19 = vadd.f32 %v2337_v1, %v2168_v59 }
 0x448   :  { %v1930_v30 = vpack.c.bf16 %v1858_v14, %v1856_v37  ;;  %2443 = vst.msk [vmem:[%s3978_s4 + $0x128] sm:$0xff] %vm2405_vm2, %v2338_v19  ;;  %2210 = vmatmul.bf16.gmra.mxu2 %v3643_v34 }
 0x44a   :  { %2379 = vmatmul.bf16.gmra.mxu3 %v1930_v30 }
 0x44b   :  { %v1558_v33 = vpop.f32.mrf.mxu0  ;;  %v1727_v35 = vpop.f32.mrf.mxu1 }
 0x44c   :  { %v2171_v60 = vpop.f32.mrf.mxu2  ;;  %v1728_v29 = vadd.f32 %v1727_v35, %v1558_v33 }
 0x44d   :  { %v2340_v52 = vpop.f32.mrf.mxu3 }
 0x44e   :  { %v2341_v2 = vadd.f32 %v2340_v52, %v2171_v60  ;;  %v1860_v31 = vmax.f32 %v1728_v29, 0.0 }
 0x450   :  { %2444 = vst.msk [vmem:[%s3978_s4 + $0x130] sm:$0xff] %vm2405_vm2, %v2341_v2 }
 0x453   :  { %v1560_v21 = vpop.f32.mrf.mxu0  ;;  %v1729_v55 = vpop.f32.mrf.mxu1 }
 0x454   :  { %v1730_v7 = vadd.f32 %v1729_v55, %v1560_v21  ;;  %v2173_v10 = vpop.f32.mrf.mxu2 }
 0x455   :  { %v2342_v56 = vpop.f32.mrf.mxu3 }
 0x456   :  { %v1862_v63 = vmax.f32 %v1730_v7, 0.0  ;;  %v2343_v34 = vadd.f32 %v2342_v56, %v2173_v10 }
 0x458   :  { %v1932_v28 = vpack.c.bf16 %v1862_v63, %v1860_v31  ;;  %2445 = vst.msk [vmem:[%s3978_s4 + $0x138] sm:$0xff] %vm2405_vm2, %v2343_v34  ;;  %2215 = vmatmul.bf16.gmra.mxu2 %v3648_v27 }
 0x45a   :  { %2384 = vmatmul.bf16.gmra.mxu3 %v1932_v28 }
 0x45b   :  { %v1563_v57 = vpop.f32.mrf.mxu0  ;;  %v1732_v24 = vpop.f32.mrf.mxu1 }
 0x45c   :  { %v2176_v11 = vpop.f32.mrf.mxu2  ;;  %v1733_v62 = vadd.f32 %v1732_v24, %v1563_v57 }
 0x45d   :  { %v2345_v25 = vpop.f32.mrf.mxu3 }
 0x45e   :  { %v2346_v38 = vadd.f32 %v2345_v25, %v2176_v11  ;;  %v1864_v32 = vmax.f32 %v1733_v62, 0.0 }
 0x460   :  { %2446 = vst.msk [vmem:[%s3978_s4 + $0x140] sm:$0xff] %vm2405_vm2, %v2346_v38 }
 0x463   :  { %v1565_v53 = vpop.f32.mrf.mxu0  ;;  %v1734_v47 = vpop.f32.mrf.mxu1 }
 0x464   :  { %v1735_v15 = vadd.f32 %v1734_v47, %v1565_v53  ;;  %v2178_v54 = vpop.f32.mrf.mxu2 }
 0x465   :  { %v2347_v40 = vpop.f32.mrf.mxu3 }
 0x466   :  { %v1866_v49 = vmax.f32 %v1735_v15, 0.0  ;;  %v2348_v27 = vadd.f32 %v2347_v40, %v2178_v54 }
 0x468   :  { %v1934_v22 = vpack.c.bf16 %v1866_v49, %v1864_v32  ;;  %2447 = vst.msk [vmem:[%s3978_s4 + $0x148] sm:$0xff] %vm2405_vm2, %v2348_v27  ;;  %2220 = vmatmul.bf16.gmra.mxu2 %v3653_v44 }
 0x46a   :  { %2389 = vmatmul.bf16.gmra.mxu3 %v1934_v22 }
 0x46b   :  { %v1568_v13 = vpop.f32.mrf.mxu0  ;;  %v1737_v41 = vpop.f32.mrf.mxu1 }
 0x46c   :  { %v2181_v18 = vpop.f32.mrf.mxu2  ;;  %v1738_v26 = vadd.f32 %v1737_v41, %v1568_v13 }
 0x46d   :  { %v2350_v0 = vpop.f32.mrf.mxu3 }
 0x46e   :  { %v2351_v48 = vadd.f32 %v2350_v0, %v2181_v18  ;;  %v1868_v45 = vmax.f32 %v1738_v26, 0.0 }
 0x470   :  { %2448 = vst.msk [vmem:[%s3978_s4 + $0x150] sm:$0xff] %vm2405_vm2, %v2351_v48 }
 0x473   :  { %v1570_v46 = vpop.f32.mrf.mxu0  ;;  %v1739_v4 = vpop.f32.mrf.mxu1 }
 0x474   :  { %v1740_v51 = vadd.f32 %v1739_v4, %v1570_v46  ;;  %v2183_v3 = vpop.f32.mrf.mxu2 }
 0x475   :  { %v2352_v42 = vpop.f32.mrf.mxu3 }
 0x476   :  { %v1870_v16 = vmax.f32 %v1740_v51, 0.0  ;;  %v2353_v44 = vadd.f32 %v2352_v42, %v2183_v3 }
 0x478   :  { %v1936_v8 = vpack.c.bf16 %v1870_v16, %v1868_v45  ;;  %2449 = vst.msk [vmem:[%s3978_s4 + $0x158] sm:$0xff] %vm2405_vm2, %v2353_v44  ;;  %2225 = vmatmul.bf16.gmra.mxu2 %v3658_v43 }
 0x47a   :  { %2394 = vmatmul.bf16.gmra.mxu3 %v1936_v8 }
 0x47b   :  { %v1573_v39 = vpop.f32.mrf.mxu0  ;;  %v1742_v58 = vpop.f32.mrf.mxu1 }
 0x47c   :  { %v2186_v5 = vpop.f32.mrf.mxu2  ;;  %v1743_v36 = vadd.f32 %v1742_v58, %v1573_v39 }
 0x47d   :  { %v2355_v17 = vpop.f32.mrf.mxu3 }
 0x47e   :  { %v2356_v9 = vadd.f32 %v2355_v17, %v2186_v5  ;;  %v1872_v59 = vmax.f32 %v1743_v36, 0.0 }
 0x480   :  { %2450 = vst.msk [vmem:[%s3978_s4 + $0x160] sm:$0xff] %vm2405_vm2, %v2356_v9 }
 0x483   :  { %v1575_v6 = vpop.f32.mrf.mxu0  ;;  %v1744_v12 = vpop.f32.mrf.mxu1 }
 0x484   :  { %v1745_v20 = vadd.f32 %v1744_v12, %v1575_v6  ;;  %v2188_v61 = vpop.f32.mrf.mxu2 }
 0x485   :  { %v2357_v50 = vpop.f32.mrf.mxu3 }
 0x486   :  { %v1874_v1 = vmax.f32 %v1745_v20, 0.0  ;;  %v2358_v43 = vadd.f32 %v2357_v50, %v2188_v61 }
 0x488   :  { %v1938_v37 = vpack.c.bf16 %v1874_v1, %v1872_v59  ;;  %2451 = vst.msk [vmem:[%s3978_s4 + $0x168] sm:$0xff] %vm2405_vm2, %v2358_v43  ;;  %2230 = vmatmul.bf16.gmra.mxu2 %v3663_v23 }
 0x48a   :  { %2399 = vmatmul.bf16.gmra.mxu3 %v1938_v37 }
 0x48c   :  { %v2191_v14 = vpop.f32.mrf.mxu2 }
 0x48d   :  { %v2360_v19 = vpop.f32.mrf.mxu3 }
 0x48e   :  { %v2361_v30 = vadd.f32 %v2360_v19, %v2191_v14 }
 0x490   :  { %2452 = vst.msk [vmem:[%s3978_s4 + $0x170] sm:$0xff] %vm2405_vm2, %v2361_v30 }
 0x494   :  { %v2193_v33 = vpop.f32.mrf.mxu2 }
 0x495   :  { %v2362_v35 = vpop.f32.mrf.mxu3 }
 0x496   :  { %v2363_v60 = vadd.f32 %v2362_v35, %v2193_v33 }
 0x498   :  { %2453 = vst.msk [vmem:[%s3978_s4 + $0x178] sm:$0xff] %vm2405_vm2, %v2363_v60 }
 0x49c   :  { %v2196_v52 = vpop.f32.mrf.mxu2 }
 0x49d   :  { %v2365_v2 = vpop.f32.mrf.mxu3 }
 0x49e   :  { %v2366_v23 = vadd.f32 %v2365_v2, %v2196_v52 }
 0x4a0   :  { %2454 = vst.msk [vmem:[%s3978_s4 + $0x180] sm:$0xff] %vm2405_vm2, %v2366_v23 }
 0x4a4   :  { %v2198_v29 = vpop.f32.mrf.mxu2 }
 0x4a5   :  { %v2367_v21 = vpop.f32.mrf.mxu3 }
 0x4a6   :  { %v2368_v55 = vadd.f32 %v2367_v21, %v2198_v29 }
 0x4a8   :  { %2455 = vst.msk [vmem:[%s3978_s4 + $0x188] sm:$0xff] %vm2405_vm2, %v2368_v55 }
 0x4ac   :  { %v2201_v7 = vpop.f32.mrf.mxu2 }
 0x4ad   :  { %v2370_v10 = vpop.f32.mrf.mxu3 }
 0x4ae   :  { %v2371_v56 = vadd.f32 %v2370_v10, %v2201_v7 }
 0x4b0   :  { %2456 = vst.msk [vmem:[%s3978_s4 + $0x190] sm:$0xff] %vm2405_vm2, %v2371_v56 }
 0x4b4   :  { %v2203_v31 = vpop.f32.mrf.mxu2 }
 0x4b5   :  { %v2372_v63 = vpop.f32.mrf.mxu3 }
 0x4b6   :  { %v2373_v34 = vadd.f32 %v2372_v63, %v2203_v31 }
 0x4b8   :  { %2457 = vst.msk [vmem:[%s3978_s4 + $0x198] sm:$0xff] %vm2405_vm2, %v2373_v34 }
 0x4bc   :  { %v2206_v28 = vpop.f32.mrf.mxu2 }
 0x4bd   :  { %v2375_v57 = vpop.f32.mrf.mxu3 }
 0x4be   :  { %v2376_v24 = vadd.f32 %v2375_v57, %v2206_v28 }
 0x4c0   :  { %2458 = vst.msk [vmem:[%s3978_s4 + $0x1a0] sm:$0xff] %vm2405_vm2, %v2376_v24 }
 0x4c4   :  { %v2208_v11 = vpop.f32.mrf.mxu2 }
 0x4c5   :  { %v2377_v25 = vpop.f32.mrf.mxu3 }
 0x4c6   :  { %v2378_v38 = vadd.f32 %v2377_v25, %v2208_v11 }
 0x4c8   :  { %2459 = vst.msk [vmem:[%s3978_s4 + $0x1a8] sm:$0xff] %vm2405_vm2, %v2378_v38 }
 0x4cc   :  { %v2211_v62 = vpop.f32.mrf.mxu2 }
 0x4cd   :  { %v2380_v53 = vpop.f32.mrf.mxu3 }
 0x4ce   :  { %v2381_v47 = vadd.f32 %v2380_v53, %v2211_v62 }
 0x4d0   :  { %2460 = vst.msk [vmem:[%s3978_s4 + $0x1b0] sm:$0xff] %vm2405_vm2, %v2381_v47 }
 0x4d4   :  { %v2213_v15 = vpop.f32.mrf.mxu2 }
 0x4d5   :  { %v2382_v54 = vpop.f32.mrf.mxu3 }
 0x4d6   :  { %v2383_v40 = vadd.f32 %v2382_v54, %v2213_v15 }
 0x4d8   :  { %2461 = vst.msk [vmem:[%s3978_s4 + $0x1b8] sm:$0xff] %vm2405_vm2, %v2383_v40 }
 0x4dc   :  { %v2216_v32 = vpop.f32.mrf.mxu2 }
 0x4dd   :  { %v2385_v49 = vpop.f32.mrf.mxu3 }
 0x4de   :  { %v2386_v27 = vadd.f32 %v2385_v49, %v2216_v32 }
 0x4e0   :  { %2462 = vst.msk [vmem:[%s3978_s4 + $0x1c0] sm:$0xff] %vm2405_vm2, %v2386_v27 }
 0x4e4   :  { %v2218_v22 = vpop.f32.mrf.mxu2 }
 0x4e5   :  { %v2387_v13 = vpop.f32.mrf.mxu3 }
 0x4e6   :  { %v2388_v41 = vadd.f32 %v2387_v13, %v2218_v22 }
 0x4e8   :  { %2463 = vst.msk [vmem:[%s3978_s4 + $0x1c8] sm:$0xff] %vm2405_vm2, %v2388_v41 }
 0x4ec   :  { %v2221_v18 = vpop.f32.mrf.mxu2 }
 0x4ed   :  { %v2390_v0 = vpop.f32.mrf.mxu3 }
 0x4ee   :  { %v2391_v48 = vadd.f32 %v2390_v0, %v2221_v18 }
 0x4f0   :  { %2464 = vst.msk [vmem:[%s3978_s4 + $0x1d0] sm:$0xff] %vm2405_vm2, %v2391_v48 }
 0x4f4   :  { %v2223_v26 = vpop.f32.mrf.mxu2 }
 0x4f5   :  { %v2392_v46 = vpop.f32.mrf.mxu3 }
 0x4f6   :  { %v2393_v4 = vadd.f32 %v2392_v46, %v2223_v26 }
 0x4f8   :  { %2465 = vst.msk [vmem:[%s3978_s4 + $0x1d8] sm:$0xff] %vm2405_vm2, %v2393_v4 }
 0x4fc   :  { %v2226_v51 = vpop.f32.mrf.mxu2 }
 0x4fd   :  { %v2395_v3 = vpop.f32.mrf.mxu3 }
 0x4fe   :  { %v2396_v42 = vadd.f32 %v2395_v3, %v2226_v51 }
 0x500   :  { %2466 = vst.msk [vmem:[%s3978_s4 + $0x1e0] sm:$0xff] %vm2405_vm2, %v2396_v42 }
 0x504   :  { %v2228_v45 = vpop.f32.mrf.mxu2 }
 0x505   :  { %v2397_v16 = vpop.f32.mrf.mxu3 }
 0x506   :  { %v2398_v44 = vadd.f32 %v2397_v16, %v2228_v45 }
 0x508   :  { %2467 = vst.msk [vmem:[%s3978_s4 + $0x1e8] sm:$0xff] %vm2405_vm2, %v2398_v44 }
 0x50c   :  { %v2231_v8 = vpop.f32.mrf.mxu2 }
 0x50d   :  { %v2400_v39 = vpop.f32.mrf.mxu3 }
 0x50e   :  { %v2401_v58 = vadd.f32 %v2400_v39, %v2231_v8 }
 0x510   :  { %2468 = vst.msk [vmem:[%s3978_s4 + $0x1f0] sm:$0xff] %vm2405_vm2, %v2401_v58 }
 0x514   :  { %v2233_v5 = vpop.f32.mrf.mxu2 }
 0x515   :  { %v2402_v17 = vpop.f32.mrf.mxu3 }
 0x516   :  { %v2403_v9 = vadd.f32 %v2402_v17, %v2233_v5 }
 0x518   :  { %2469 = vst.msk [vmem:[%s3978_s4 + $0x1f8] sm:$0xff] %vm2405_vm2, %v2403_v9 }

</bundles_post_ra>
